<compile_context>
chip_gen: v5e
topology: v5e:2x2
jax: 0.10.0
libtpu: 0.0.40
codegen_flags: <defaults>
</compile_context>

<pallas_src>
import functools
import numpy as np

import jax
import jax.numpy as jnp
from jax import lax
from jax.experimental import pallas as pl
from jax.experimental.pallas import tpu as pltpu

# ----------------------------- config (small, deterministic) -----------------------
DIM = 32          # model dim
DEPTH = 2         # decoder depth
HEADS = 2
DIM_HEAD = 16     # HEADS * DIM_HEAD == DIM
NUM_TOKENS = 64   # vocab (small synthetic)
VOCAB_PAD = 128   # lane-dense padded vocab for the head output
IMAGE_SIZE = 32
PATCH = 16
IMG_C = 3
ENC_DIM = 32
ENC_DEPTH = 1
ENC_HEADS = 2
ENC_DIM_HEAD = 16
BATCH = 2
SEQ = 8

LN_EPS = 1e-5
NEG_INF = -1e30


# ----------------------------- in-kernel helpers (traced inside the body) -----------
def _ln(x, g, b, eps=LN_EPS):
    x = x.astype(jnp.float32)
    mu = jnp.mean(x, axis=-1, keepdims=True)
    var = jnp.mean(jnp.square(x - mu), axis=-1, keepdims=True)
    return (x - mu) * lax.rsqrt(var + eps) * g + b


def _softmax_rows(s):
    m = jnp.max(s, axis=-1, keepdims=True)
    p = jnp.exp(s - m)
    denom = jnp.sum(p, axis=-1, keepdims=True)
    return p * pl.reciprocal(denom, approx=True)


def _mha(x, wqkv, wo, bo, mask_bias, *, heads, dh, qk_norm, scale):
    """Fused multi-head attention over all batches at once.

    x:         [R, D]           (R = B * seq)
    wqkv:      [D, 3*H*dh]      columns = [q_h0..q_hH | k_h0.. | v_h0..]
    wo:        [H*dh, D]
    bo:        [1, D]
    mask_bias: [R, R] additive mask (0 allowed / -1e30 forbidden); block-diagonal over
               the batch so no per-(b, h) grid or slicing is needed.
    """
    qkv = jnp.dot(x, wqkv, preferred_element_type=jnp.float32)          # [R, 3*H*dh]
    hd = heads * dh
    q_all = qkv[:, :hd]
    k_all = qkv[:, hd:2 * hd]
    v_all = qkv[:, 2 * hd:3 * hd]

    outs = []
    for h in range(heads):
        hs = slice(h * dh, (h + 1) * dh)
        q, k, v = q_all[:, hs], k_all[:, hs], v_all[:, hs]
        if qk_norm:
            q = q * lax.rsqrt(jnp.sum(q * q, axis=-1, keepdims=True) + 1e-8)
            k = k * lax.rsqrt(jnp.sum(k * k, axis=-1, keepdims=True) + 1e-8)
        s = lax.dot_general(q, k, (((1,), (1,)), ((), ())),
                            preferred_element_type=jnp.float32) * scale
        s = s + mask_bias
        p = _softmax_rows(s)
        outs.append(jnp.dot(p, v, preferred_element_type=jnp.float32))  # [R, dh]
    o = jnp.concatenate(outs, axis=-1)                                  # [R, H*dh]
    return jnp.dot(o, wo, preferred_element_type=jnp.float32) + bo


# ----------------------------- the single fused kernel -------------------------------
def _make_fused_kernel(treedef, n_in):
    def kernel(*refs):
        o_ref = refs[n_in]
        T = jax.tree_util.tree_unflatten(treedef, refs[:n_in])
        vit = T["vit"]
        cab = T["cab"]

        # --- ViT patch embed: LN -> Linear -> LN -> +pos -> post-emb LN --------------
        x = _ln(T["patches"][...], vit["patch_ln1_g"][...], vit["patch_ln1_b"][...])
        x = jnp.dot(x, vit["patch_w"][...],
                    preferred_element_type=jnp.float32) + vit["patch_b"][...]
        x = _ln(x, vit["patch_ln2_g"][...], vit["patch_ln2_b"][...])
        x = x + vit["pos"][...]
        x = _ln(x, vit["post_ln_g"][...], vit["post_ln_b"][...])

        # --- ViT encoder blocks -------------------------------------------------------
        # TODO(synk): x-transformers Encoder internals approximated as pre-norm MHA +
        # pre-norm GELU FF (same approximation as the reference implementation).
        for lp in vit["layers"]:
            h = _ln(x, lp["ln1_g"][...], lp["ln1_b"][...])
            a = _mha(h, lp["wqkv"][...], lp["wo"][...], lp["bo"][...],
                     T["vit_mask"][...], heads=ENC_HEADS, dh=ENC_DIM_HEAD,
                     qk_norm=False, scale=ENC_DIM_HEAD ** -0.5)
            x = x + a
            h = _ln(x, lp["ln2_g"][...], lp["ln2_b"][...])
            h = jnp.dot(h, lp["ff_w1"][...],
                        preferred_element_type=jnp.float32) + lp["ff_b1"][...]
            h = jax.nn.gelu(h, approximate=True)
            h = jnp.dot(h, lp["ff_w2"][...],
                        preferred_element_type=jnp.float32) + lp["ff_b2"][...]
            x = x + h

        # --- connector: final LN + threed_to_text + CAbstractor + add text embedding --
        x = _ln(x, vit["final_ln_g"][...], vit["final_ln_b"][...])
        y = jnp.dot(x, T["t2t_w"][...],
                    preferred_element_type=jnp.float32) + T["t2t_b"][...]
        z = jnp.dot(T["pool"][...], y, preferred_element_type=jnp.float32)   # [B*S, D]

        shift_r = T["shift_r"][...]
        shift_l = T["shift_l"][...]
        w1 = cab["w1"][...]
        b1 = cab["b1"][...]
        w2 = cab["w2"][...]
        b2 = cab["b2"][...]

        def conv3(zz, wk, bias):
            # conv1d(kernel=3, padding=1) along the length (lane) axis via precomputed
            # shift matrices; channel mix via block-diag (over batch) weights.
            zr = jnp.dot(zz, shift_r, preferred_element_type=jnp.float32)
            zl = jnp.dot(zz, shift_l, preferred_element_type=jnp.float32)
            return (jnp.dot(wk[0], zr, preferred_element_type=jnp.float32)
                    + jnp.dot(wk[1], zz, preferred_element_type=jnp.float32)
                    + jnp.dot(wk[2], zl, preferred_element_type=jnp.float32)
                    + bias)

        # TODO(synk): TextResBlock1d source not provided; approximated as
        # Conv1d(s,s,3,pad=1) -> GELU -> Conv1d(s,s,3,pad=1) with a residual connection;
        # the same (shared-weight) block runs before and after the identity pool,
        # matching the reference PyTorch forward.
        for _ in range(2):
            hz = conv3(z, w1, b1)
            hz = jax.nn.gelu(hz, approximate=True)
            hz = conv3(hz, w2, b2)
            z = z + hz
        z = _ln(z, cab["ln_g"][...], cab["ln_b"][...])

        x = z + T["x_txt"][...]

        # --- DecoderLLM (use_feedforward=True) ----------------------------------------
        for lp in T["layers"]:
            a = _mha(x, lp["wqkv"][...], lp["wo"][...], lp["bo"][...],
                     T["dec_mask"][...], heads=HEADS, dh=DIM_HEAD,
                     qk_norm=True, scale=10.0)
            attn = a + x
            h = jnp.dot(attn, lp["w1"][...],
                        preferred_element_type=jnp.float32) + lp["b1"][...]
            h = h * jax.nn.sigmoid(h)                     # SiLU / swish
            h = _ln(h, lp["ln_g"][...], lp["ln_b"][...])  # post_act_ln
            ff = jnp.dot(h, lp["w2"][...],
                         preferred_element_type=jnp.float32) + lp["b2"][...]
            x = attn + ff

        # --- OutputHead: LN + Linear(dim, vocab_pad) + softmax (lane-dense output) ----
        head = T["head"]
        h = _ln(x, head["ln_g"][...], head["ln_b"][...])
        logits = jnp.dot(h, head["w"][...],
                         preferred_element_type=jnp.float32) + head["b"][...]
        m = jnp.max(logits, axis=-1, keepdims=True)
        e = jnp.exp(logits - m)
        denom = jnp.sum(e, axis=-1, keepdims=True)
        inv = pl.reciprocal(denom, approx=True)
        inv = inv * (2.0 - denom * inv)                   # one Newton step -> f32 exact
        o_ref[...] = (e * inv).astype(o_ref.dtype)

    return kernel


# ----------------------------- host-side (init-time) constant builders ---------------
def adaptive_pool_matrix(L, out):
    """PyTorch AdaptiveAvgPool1d semantics as an [L, out] pooling matrix (numpy)."""
    P = np.zeros((L, out), np.float32)
    for o in range(out):
        start = (o * L) // out
        end = -((-(o + 1) * L) // out)
        P[start:end, o] = 1.0 / (end - start)
    return P


def _block_diag_np(B, m):
    return np.kron(np.eye(B, dtype=np.float32), np.asarray(m, np.float32))


def _attn_mask_bias(B, S, causal):
    """Additive attention mask bias [B*S, B*S]: 0 same-batch (and causal), else -1e30."""
    R = B * S
    row = np.arange(R)[:, None]
    col = np.arange(R)[None, :]
    ok = (row // S) == (col // S)
    if causal:
        ok = ok & ((col % S) <= (row % S))
    return np.where(ok, 0.0, NEG_INF).astype(np.float32)


def _shift_mats(D):
    ii = np.arange(D)[:, None]
    jj = np.arange(D)[None, :]
    sr = (jj == ii + 1).astype(np.float32)   # z @ sr -> z[:, l-1] (zero padded)
    sl = (jj == ii - 1).astype(np.float32)   # z @ sl -> z[:, l+1] (zero padded)
    return sr, sl


# ----------------------------- forward pass ------------------------------------------
def mm1_forward(params, text, image):
    B, S = text.shape
    # TODO(synk): embedding gather is a tiny data-dependent lookup; left to XLA.
    x_txt = params["emb"][text].reshape(B * S, DIM)

    # ViT patch extraction (pure layout): b c (h p1)(w p2) -> (b h w) (p1 p2 c)
    ps = PATCH
    Bc, C, H, W = image.shape
    patches = image.reshape(Bc, C, H // ps, ps, W // ps, ps)
    patches = patches.transpose(0, 2, 4, 3, 5, 1)
    n = (H // ps) * (W // ps)
    patches = patches.reshape(Bc * n, ps * ps * C)

    # Assemble kernel inputs: everything (weights + precomputed constants) is a
    # whole-array VMEM block; the embedding table stays out of the kernel.
    kernel_inputs = dict(params)
    kernel_inputs.pop("emb")
    kernel_inputs["patches"] = patches
    kernel_inputs["x_txt"] = x_txt

    leaves, treedef = jax.tree_util.tree_flatten(kernel_inputs)
    kernel = _make_fused_kernel(treedef, len(leaves))

    probs_pad = pl.pallas_call(
        kernel,
        out_shape=jax.ShapeDtypeStruct((B * S, VOCAB_PAD), jnp.float32),
        in_specs=[pl.BlockSpec(memory_space=pltpu.MemorySpace.VMEM)] * len(leaves),
        out_specs=pl.BlockSpec(memory_space=pltpu.MemorySpace.VMEM),
    )(*leaves)

    return probs_pad[:, :NUM_TOKENS].reshape(B, S, NUM_TOKENS)


# ----------------------------- deterministic parameter init --------------------------
def init_params(key):
    keys = iter(jax.random.split(key, 128))

    def w(shape, std=0.02):
        return jax.random.normal(next(keys), shape, jnp.float32) * std

    zeros = lambda s: jnp.zeros(s, jnp.float32)
    ones = lambda s: jnp.ones(s, jnp.float32)

    patch_dim = PATCH * PATCH * IMG_C
    n = (IMAGE_SIZE // PATCH) ** 2
    B, S = BATCH, SEQ

    vit_layers = []
    for _ in range(ENC_DEPTH):
        vit_layers.append(dict(
            ln1_g=ones((1, ENC_DIM)), ln1_b=zeros((1, ENC_DIM)),
            # single stacked QKV: [D, 3*H*dh] = [q_h0..q_hH | k_.. | v_..]
            wqkv=w((ENC_DIM, 3 * ENC_HEADS * ENC_DIM_HEAD)),
            wo=w((ENC_HEADS * ENC_DIM_HEAD, ENC_DIM)), bo=zeros((1, ENC_DIM)),
            ln2_g=ones((1, ENC_DIM)), ln2_b=zeros((1, ENC_DIM)),
            ff_w1=w((ENC_DIM, 4 * ENC_DIM)), ff_b1=zeros((1, 4 * ENC_DIM)),
            ff_w2=w((4 * ENC_DIM, ENC_DIM)), ff_b2=zeros((1, ENC_DIM)),
        ))

    dec_layers = []
    for _ in range(DEPTH):
        dec_layers.append(dict(
            wqkv=w((DIM, 3 * HEADS * DIM_HEAD)),
            wo=w((HEADS * DIM_HEAD, DIM)), bo=zeros((1, DIM)),
            w1=w((DIM, 4 * DIM)), b1=zeros((1, 4 * DIM)),
            ln_g=ones((1, 4 * DIM)), ln_b=zeros((1, 4 * DIM)),
            w2=w((4 * DIM, DIM)), b2=zeros((1, DIM)),
        ))

    pos_emb = w((n, ENC_DIM))

    # CAbstractor conv weights, expanded to batch-block-diagonal ONCE at init time.
    w1_small = np.asarray(w((3, S, S)))
    w2_small = np.asarray(w((3, S, S)))
    w1_bd = jnp.asarray(np.stack([_block_diag_np(B, w1_small[k]) for k in range(3)]))
    w2_bd = jnp.asarray(np.stack([_block_diag_np(B, w2_small[k]) for k in range(3)]))

    pool_small = adaptive_pool_matrix(n, S)                        # [n, S]
    pool_bd = jnp.asarray(_block_diag_np(B, pool_small.T))         # [B*S, B*n]

    shift_r, shift_l = _shift_mats(DIM)

    # Output head padded to a lane-dense 128-wide vocab (pad logits forced to -1e30).
    head_w = jnp.zeros((DIM, VOCAB_PAD), jnp.float32)
    head_w = head_w.at[:, :NUM_TOKENS].set(w((DIM, NUM_TOKENS)))
    head_b = jnp.full((1, VOCAB_PAD), NEG_INF, jnp.float32)
    head_b = head_b.at[:, :NUM_TOKENS].set(0.0)

    return dict(
        emb=w((NUM_TOKENS, DIM), std=1.0),
        vit=dict(
            patch_ln1_g=ones((1, patch_dim)), patch_ln1_b=zeros((1, patch_dim)),
            patch_w=w((patch_dim, ENC_DIM)), patch_b=zeros((1, ENC_DIM)),
            patch_ln2_g=ones((1, ENC_DIM)), patch_ln2_b=zeros((1, ENC_DIM)),
            pos=jnp.tile(pos_emb, (B, 1)),                         # pre-tiled [B*n, E]
            post_ln_g=ones((1, ENC_DIM)), post_ln_b=zeros((1, ENC_DIM)),
            layers=vit_layers,
            final_ln_g=ones((1, ENC_DIM)), final_ln_b=zeros((1, ENC_DIM)),
        ),
        t2t_w=w((ENC_DIM, DIM)), t2t_b=zeros((1, DIM)),
        cab=dict(
            w1=w1_bd, b1=zeros((B * S, 1)),
            w2=w2_bd, b2=zeros((B * S, 1)),
            ln_g=ones((1, DIM)), ln_b=zeros((1, DIM)),
        ),
        pool=pool_bd,
        shift_r=jnp.asarray(shift_r), shift_l=jnp.asarray(shift_l),
        vit_mask=jnp.asarray(_attn_mask_bias(B, n, causal=False)),
        dec_mask=jnp.asarray(_attn_mask_bias(B, S, causal=True)),
        layers=dec_layers,
        head=dict(ln_g=ones((1, DIM)), ln_b=zeros((1, DIM)), w=head_w, b=head_b),
    )


# ----------------------------- main ---------------------------------------------------
if __name__ == "__main__":
    key = jax.random.PRNGKey(0)
    kp, kt, ki = jax.random.split(key, 3)
    params = init_params(kp)
    text = jax.random.randint(kt, (BATCH, SEQ), 0, NUM_TOKENS, dtype=jnp.int32)
    image = jax.random.normal(ki, (BATCH, IMG_C, IMAGE_SIZE, IMAGE_SIZE), jnp.float32)

    out = jax.jit(mm1_forward)(params, text, image)
    out = jax.block_until_ready(out)

    assert out.shape == (BATCH, SEQ, NUM_TOKENS), out.shape
    assert bool(jnp.all(jnp.isfinite(out)))
    # output is a softmax distribution over the vocab per token
    assert bool(jnp.allclose(jnp.sum(out, axis=-1), 1.0, atol=1e-4))
    print("KERNEL_OK")
</pallas_src>

<mosaic_0001>
module attributes {stable_mosaic.version = 11 : i64} {
  func.func @kernel(%arg0: memref<16x1xf32, #tpu.memory_space<vmem>>, %arg1: memref<16x1xf32, #tpu.memory_space<vmem>>, %arg2: memref<1x32xf32, #tpu.memory_space<vmem>>, %arg3: memref<1x32xf32, #tpu.memory_space<vmem>>, %arg4: memref<3x16x16xf32, #tpu.memory_space<vmem>>, %arg5: memref<3x16x16xf32, #tpu.memory_space<vmem>>, %arg6: memref<16x16xf32, #tpu.memory_space<vmem>>, %arg7: memref<1x128xf32, #tpu.memory_space<vmem>>, %arg8: memref<1x32xf32, #tpu.memory_space<vmem>>, %arg9: memref<1x32xf32, #tpu.memory_space<vmem>>, %arg10: memref<32x128xf32, #tpu.memory_space<vmem>>, %arg11: memref<1x128xf32, #tpu.memory_space<vmem>>, %arg12: memref<1x32xf32, #tpu.memory_space<vmem>>, %arg13: memref<1x32xf32, #tpu.memory_space<vmem>>, %arg14: memref<1x128xf32, #tpu.memory_space<vmem>>, %arg15: memref<1x128xf32, #tpu.memory_space<vmem>>, %arg16: memref<32x128xf32, #tpu.memory_space<vmem>>, %arg17: memref<128x32xf32, #tpu.memory_space<vmem>>, %arg18: memref<32x32xf32, #tpu.memory_space<vmem>>, %arg19: memref<32x96xf32, #tpu.memory_space<vmem>>, %arg20: memref<1x128xf32, #tpu.memory_space<vmem>>, %arg21: memref<1x32xf32, #tpu.memory_space<vmem>>, %arg22: memref<1x32xf32, #tpu.memory_space<vmem>>, %arg23: memref<1x128xf32, #tpu.memory_space<vmem>>, %arg24: memref<1x128xf32, #tpu.memory_space<vmem>>, %arg25: memref<32x128xf32, #tpu.memory_space<vmem>>, %arg26: memref<128x32xf32, #tpu.memory_space<vmem>>, %arg27: memref<32x32xf32, #tpu.memory_space<vmem>>, %arg28: memref<32x96xf32, #tpu.memory_space<vmem>>, %arg29: memref<8x768xf32, #tpu.memory_space<vmem>>, %arg30: memref<16x8xf32, #tpu.memory_space<vmem>>, %arg31: memref<32x32xf32, #tpu.memory_space<vmem>>, %arg32: memref<32x32xf32, #tpu.memory_space<vmem>>, %arg33: memref<1x32xf32, #tpu.memory_space<vmem>>, %arg34: memref<32x32xf32, #tpu.memory_space<vmem>>, %arg35: memref<1x32xf32, #tpu.memory_space<vmem>>, %arg36: memref<1x32xf32, #tpu.memory_space<vmem>>, %arg37: memref<1x32xf32, #tpu.memory_space<vmem>>, %arg38: memref<1x128xf32, #tpu.memory_space<vmem>>, %arg39: memref<1x32xf32, #tpu.memory_space<vmem>>, %arg40: memref<32x128xf32, #tpu.memory_space<vmem>>, %arg41: memref<128x32xf32, #tpu.memory_space<vmem>>, %arg42: memref<1x32xf32, #tpu.memory_space<vmem>>, %arg43: memref<1x32xf32, #tpu.memory_space<vmem>>, %arg44: memref<1x32xf32, #tpu.memory_space<vmem>>, %arg45: memref<1x32xf32, #tpu.memory_space<vmem>>, %arg46: memref<32x32xf32, #tpu.memory_space<vmem>>, %arg47: memref<32x96xf32, #tpu.memory_space<vmem>>, %arg48: memref<1x32xf32, #tpu.memory_space<vmem>>, %arg49: memref<1x768xf32, #tpu.memory_space<vmem>>, %arg50: memref<1x768xf32, #tpu.memory_space<vmem>>, %arg51: memref<1x32xf32, #tpu.memory_space<vmem>>, %arg52: memref<1x32xf32, #tpu.memory_space<vmem>>, %arg53: memref<768x32xf32, #tpu.memory_space<vmem>>, %arg54: memref<8x32xf32, #tpu.memory_space<vmem>>, %arg55: memref<1x32xf32, #tpu.memory_space<vmem>>, %arg56: memref<1x32xf32, #tpu.memory_space<vmem>>, %arg57: memref<8x8xf32, #tpu.memory_space<vmem>>, %arg58: memref<16x32xf32, #tpu.memory_space<vmem>>, %arg59: memref<16x128xf32, #tpu.memory_space<vmem>>) attributes {dimension_semantics = [], scalar_prefetch = 0 : i64, scratch_operands = 0 : i64, tpu.core_type = #tpu.core_type<tc>} {
    %c0 = arith.constant 0 : index
    %c0_0 = arith.constant 0 : index
    %0 = vector.load %arg29[%c0, %c0_0] : memref<8x768xf32, #tpu.memory_space<vmem>>, vector<8x768xf32>
    %c0_1 = arith.constant 0 : index
    %c0_2 = arith.constant 0 : index
    %1 = vector.load %arg50[%c0_1, %c0_2] : memref<1x768xf32, #tpu.memory_space<vmem>>, vector<1x768xf32>
    %c0_3 = arith.constant 0 : index
    %c0_4 = arith.constant 0 : index
    %2 = vector.load %arg49[%c0_3, %c0_4] : memref<1x768xf32, #tpu.memory_space<vmem>>, vector<1x768xf32>
    %cst = arith.constant dense<0.000000e+00> : vector<8xf32>
    %3 = vector.multi_reduction <add>, %0, %cst [1] : vector<8x768xf32> to vector<8xf32>
    %4 = vector.shape_cast %3 : vector<8xf32> to vector<8x1xf32>
    %cst_5 = arith.constant 7.680000e+02 : f32
    %5 = vector.broadcast %cst_5 : f32 to vector<8x1xf32>
    %6 = arith.divf %4, %5 : vector<8x1xf32>
    %7 = vector.broadcast %6 : vector<8x1xf32> to vector<8x768xf32>
    %8 = arith.subf %0, %7 : vector<8x768xf32>
    %9 = arith.mulf %8, %8 : vector<8x768xf32>
    %cst_6 = arith.constant dense<0.000000e+00> : vector<8xf32>
    %10 = vector.multi_reduction <add>, %9, %cst_6 [1] : vector<8x768xf32> to vector<8xf32>
    %11 = vector.shape_cast %10 : vector<8xf32> to vector<8x1xf32>
    %cst_7 = arith.constant 7.680000e+02 : f32
    %12 = vector.broadcast %cst_7 : f32 to vector<8x1xf32>
    %13 = arith.divf %11, %12 : vector<8x1xf32>
    %14 = vector.broadcast %6 : vector<8x1xf32> to vector<8x768xf32>
    %15 = arith.subf %0, %14 : vector<8x768xf32>
    %cst_8 = arith.constant 9.99999974E-6 : f32
    %16 = vector.broadcast %cst_8 : f32 to vector<8x1xf32>
    %17 = arith.addf %13, %16 : vector<8x1xf32>
    %18 = math.rsqrt %17 : vector<8x1xf32>
    %19 = vector.broadcast %18 : vector<8x1xf32> to vector<8x768xf32>
    %20 = arith.mulf %15, %19 : vector<8x768xf32>
    %21 = vector.broadcast %1 : vector<1x768xf32> to vector<8x768xf32>
    %22 = arith.mulf %20, %21 : vector<8x768xf32>
    %23 = vector.broadcast %2 : vector<1x768xf32> to vector<8x768xf32>
    %24 = arith.addf %22, %23 : vector<8x768xf32>
    %c0_9 = arith.constant 0 : index
    %c0_10 = arith.constant 0 : index
    %25 = vector.load %arg53[%c0_9, %c0_10] : memref<768x32xf32, #tpu.memory_space<vmem>>, vector<768x32xf32>
    %cst_11 = arith.constant dense<0.000000e+00> : vector<8x32xf32>
    %26 = tpu.matmul %24, %25, %cst_11 {dimension_numbers = #tpu.dot_dimension_numbers<[1], [0], [0], [1], [0, 0, 1, 1], [], []>} : vector<8x768xf32>, vector<768x32xf32>, vector<8x32xf32> -> vector<8x32xf32>
    %c0_12 = arith.constant 0 : index
    %c0_13 = arith.constant 0 : index
    %27 = vector.load %arg48[%c0_12, %c0_13] : memref<1x32xf32, #tpu.memory_space<vmem>>, vector<1x32xf32>
    %28 = vector.broadcast %27 : vector<1x32xf32> to vector<8x32xf32>
    %29 = arith.addf %26, %28 : vector<8x32xf32>
    %c0_14 = arith.constant 0 : index
    %c0_15 = arith.constant 0 : index
    %30 = vector.load %arg52[%c0_14, %c0_15] : memref<1x32xf32, #tpu.memory_space<vmem>>, vector<1x32xf32>
    %c0_16 = arith.constant 0 : index
    %c0_17 = arith.constant 0 : index
    %31 = vector.load %arg51[%c0_16, %c0_17] : memref<1x32xf32, #tpu.memory_space<vmem>>, vector<1x32xf32>
    %cst_18 = arith.constant dense<0.000000e+00> : vector<8xf32>
    %32 = vector.multi_reduction <add>, %29, %cst_18 [1] : vector<8x32xf32> to vector<8xf32>
    %33 = vector.shape_cast %32 : vector<8xf32> to vector<8x1xf32>
    %cst_19 = arith.constant 3.200000e+01 : f32
    %34 = vector.broadcast %cst_19 : f32 to vector<8x1xf32>
    %35 = arith.divf %33, %34 : vector<8x1xf32>
    %36 = vector.broadcast %35 : vector<8x1xf32> to vector<8x32xf32>
    %37 = arith.subf %29, %36 : vector<8x32xf32>
    %38 = arith.mulf %37, %37 : vector<8x32xf32>
    %cst_20 = arith.constant dense<0.000000e+00> : vector<8xf32>
    %39 = vector.multi_reduction <add>, %38, %cst_20 [1] : vector<8x32xf32> to vector<8xf32>
    %40 = vector.shape_cast %39 : vector<8xf32> to vector<8x1xf32>
    %cst_21 = arith.constant 3.200000e+01 : f32
    %41 = vector.broadcast %cst_21 : f32 to vector<8x1xf32>
    %42 = arith.divf %40, %41 : vector<8x1xf32>
    %43 = vector.broadcast %35 : vector<8x1xf32> to vector<8x32xf32>
    %44 = arith.subf %29, %43 : vector<8x32xf32>
    %cst_22 = arith.constant 9.99999974E-6 : f32
    %45 = vector.broadcast %cst_22 : f32 to vector<8x1xf32>
    %46 = arith.addf %42, %45 : vector<8x1xf32>
    %47 = math.rsqrt %46 : vector<8x1xf32>
    %48 = vector.broadcast %47 : vector<8x1xf32> to vector<8x32xf32>
    %49 = arith.mulf %44, %48 : vector<8x32xf32>
    %50 = vector.broadcast %30 : vector<1x32xf32> to vector<8x32xf32>
    %51 = arith.mulf %49, %50 : vector<8x32xf32>
    %52 = vector.broadcast %31 : vector<1x32xf32> to vector<8x32xf32>
    %53 = arith.addf %51, %52 : vector<8x32xf32>
    %c0_23 = arith.constant 0 : index
    %c0_24 = arith.constant 0 : index
    %54 = vector.load %arg54[%c0_23, %c0_24] : memref<8x32xf32, #tpu.memory_space<vmem>>, vector<8x32xf32>
    %55 = arith.addf %53, %54 : vector<8x32xf32>
    %c0_25 = arith.constant 0 : index
    %c0_26 = arith.constant 0 : index
    %56 = vector.load %arg56[%c0_25, %c0_26] : memref<1x32xf32, #tpu.memory_space<vmem>>, vector<1x32xf32>
    %c0_27 = arith.constant 0 : index
    %c0_28 = arith.constant 0 : index
    %57 = vector.load %arg55[%c0_27, %c0_28] : memref<1x32xf32, #tpu.memory_space<vmem>>, vector<1x32xf32>
    %cst_29 = arith.constant dense<0.000000e+00> : vector<8xf32>
    %58 = vector.multi_reduction <add>, %55, %cst_29 [1] : vector<8x32xf32> to vector<8xf32>
    %59 = vector.shape_cast %58 : vector<8xf32> to vector<8x1xf32>
    %cst_30 = arith.constant 3.200000e+01 : f32
    %60 = vector.broadcast %cst_30 : f32 to vector<8x1xf32>
    %61 = arith.divf %59, %60 : vector<8x1xf32>
    %62 = vector.broadcast %61 : vector<8x1xf32> to vector<8x32xf32>
    %63 = arith.subf %55, %62 : vector<8x32xf32>
    %64 = arith.mulf %63, %63 : vector<8x32xf32>
    %cst_31 = arith.constant dense<0.000000e+00> : vector<8xf32>
    %65 = vector.multi_reduction <add>, %64, %cst_31 [1] : vector<8x32xf32> to vector<8xf32>
    %66 = vector.shape_cast %65 : vector<8xf32> to vector<8x1xf32>
    %cst_32 = arith.constant 3.200000e+01 : f32
    %67 = vector.broadcast %cst_32 : f32 to vector<8x1xf32>
    %68 = arith.divf %66, %67 : vector<8x1xf32>
    %69 = vector.broadcast %61 : vector<8x1xf32> to vector<8x32xf32>
    %70 = arith.subf %55, %69 : vector<8x32xf32>
    %cst_33 = arith.constant 9.99999974E-6 : f32
    %71 = vector.broadcast %cst_33 : f32 to vector<8x1xf32>
    %72 = arith.addf %68, %71 : vector<8x1xf32>
    %73 = math.rsqrt %72 : vector<8x1xf32>
    %74 = vector.broadcast %73 : vector<8x1xf32> to vector<8x32xf32>
    %75 = arith.mulf %70, %74 : vector<8x32xf32>
    %76 = vector.broadcast %56 : vector<1x32xf32> to vector<8x32xf32>
    %77 = arith.mulf %75, %76 : vector<8x32xf32>
    %78 = vector.broadcast %57 : vector<1x32xf32> to vector<8x32xf32>
    %79 = arith.addf %77, %78 : vector<8x32xf32>
    %c0_34 = arith.constant 0 : index
    %c0_35 = arith.constant 0 : index
    %80 = vector.load %arg43[%c0_34, %c0_35] : memref<1x32xf32, #tpu.memory_space<vmem>>, vector<1x32xf32>
    %c0_36 = arith.constant 0 : index
    %c0_37 = arith.constant 0 : index
    %81 = vector.load %arg42[%c0_36, %c0_37] : memref<1x32xf32, #tpu.memory_space<vmem>>, vector<1x32xf32>
    %cst_38 = arith.constant dense<0.000000e+00> : vector<8xf32>
    %82 = vector.multi_reduction <add>, %79, %cst_38 [1] : vector<8x32xf32> to vector<8xf32>
    %83 = vector.shape_cast %82 : vector<8xf32> to vector<8x1xf32>
    %cst_39 = arith.constant 3.200000e+01 : f32
    %84 = vector.broadcast %cst_39 : f32 to vector<8x1xf32>
    %85 = arith.divf %83, %84 : vector<8x1xf32>
    %86 = vector.broadcast %85 : vector<8x1xf32> to vector<8x32xf32>
    %87 = arith.subf %79, %86 : vector<8x32xf32>
    %88 = arith.mulf %87, %87 : vector<8x32xf32>
    %cst_40 = arith.constant dense<0.000000e+00> : vector<8xf32>
    %89 = vector.multi_reduction <add>, %88, %cst_40 [1] : vector<8x32xf32> to vector<8xf32>
    %90 = vector.shape_cast %89 : vector<8xf32> to vector<8x1xf32>
    %cst_41 = arith.constant 3.200000e+01 : f32
    %91 = vector.broadcast %cst_41 : f32 to vector<8x1xf32>
    %92 = arith.divf %90, %91 : vector<8x1xf32>
    %93 = vector.broadcast %85 : vector<8x1xf32> to vector<8x32xf32>
    %94 = arith.subf %79, %93 : vector<8x32xf32>
    %cst_42 = arith.constant 9.99999974E-6 : f32
    %95 = vector.broadcast %cst_42 : f32 to vector<8x1xf32>
    %96 = arith.addf %92, %95 : vector<8x1xf32>
    %97 = math.rsqrt %96 : vector<8x1xf32>
    %98 = vector.broadcast %97 : vector<8x1xf32> to vector<8x32xf32>
    %99 = arith.mulf %94, %98 : vector<8x32xf32>
    %100 = vector.broadcast %80 : vector<1x32xf32> to vector<8x32xf32>
    %101 = arith.mulf %99, %100 : vector<8x32xf32>
    %102 = vector.broadcast %81 : vector<1x32xf32> to vector<8x32xf32>
    %103 = arith.addf %101, %102 : vector<8x32xf32>
    %c0_43 = arith.constant 0 : index
    %c0_44 = arith.constant 0 : index
    %104 = vector.load %arg47[%c0_43, %c0_44] : memref<32x96xf32, #tpu.memory_space<vmem>>, vector<32x96xf32>
    %c0_45 = arith.constant 0 : index
    %c0_46 = arith.constant 0 : index
    %105 = vector.load %arg46[%c0_45, %c0_46] : memref<32x32xf32, #tpu.memory_space<vmem>>, vector<32x32xf32>
    %c0_47 = arith.constant 0 : index
    %c0_48 = arith.constant 0 : index
    %106 = vector.load %arg37[%c0_47, %c0_48] : memref<1x32xf32, #tpu.memory_space<vmem>>, vector<1x32xf32>
    %c0_49 = arith.constant 0 : index
    %c0_50 = arith.constant 0 : index
    %107 = vector.load %arg57[%c0_49, %c0_50] : memref<8x8xf32, #tpu.memory_space<vmem>>, vector<8x8xf32>
    %cst_51 = arith.constant dense<0.000000e+00> : vector<8x96xf32>
    %108 = tpu.matmul %103, %104, %cst_51 {dimension_numbers = #tpu.dot_dimension_numbers<[1], [0], [0], [1], [0, 0, 1, 1], [], []>} : vector<8x32xf32>, vector<32x96xf32>, vector<8x96xf32> -> vector<8x96xf32>
    %109 = vector.extract_strided_slice %108 {offsets = [0, 0], sizes = [8, 32], strides = [1, 1]} : vector<8x96xf32> to vector<8x32xf32>
    %110 = vector.extract_strided_slice %108 {offsets = [0, 32], sizes = [8, 32], strides = [1, 1]} : vector<8x96xf32> to vector<8x32xf32>
    %111 = vector.extract_strided_slice %108 {offsets = [0, 64], sizes = [8, 32], strides = [1, 1]} : vector<8x96xf32> to vector<8x32xf32>
    %112 = vector.extract_strided_slice %109 {offsets = [0, 0], sizes = [8, 16], strides = [1, 1]} : vector<8x32xf32> to vector<8x16xf32>
    %113 = vector.extract_strided_slice %110 {offsets = [0, 0], sizes = [8, 16], strides = [1, 1]} : vector<8x32xf32> to vector<8x16xf32>
    %114 = vector.extract_strided_slice %111 {offsets = [0, 0], sizes = [8, 16], strides = [1, 1]} : vector<8x32xf32> to vector<8x16xf32>
    %cst_52 = arith.constant dense<0.000000e+00> : vector<8x8xf32>
    %115 = tpu.matmul %112, %113, %cst_52 {dimension_numbers = #tpu.dot_dimension_numbers<[1], [1], [0], [0], [0, 0, 1, 0], [], []>} : vector<8x16xf32>, vector<8x16xf32>, vector<8x8xf32> -> vector<8x8xf32>
    %cst_53 = arith.constant 2.500000e-01 : f32
    %116 = vector.broadcast %cst_53 : f32 to vector<8x8xf32>
    %117 = arith.mulf %115, %116 : vector<8x8xf32>
    %118 = arith.addf %117, %107 : vector<8x8xf32>
    %cst_54 = arith.constant dense<0xFF800000> : vector<8xf32>
    %119 = vector.multi_reduction <maximumf>, %118, %cst_54 [1] : vector<8x8xf32> to vector<8xf32>
    %120 = vector.shape_cast %119 : vector<8xf32> to vector<8x1xf32>
    %121 = vector.broadcast %120 : vector<8x1xf32> to vector<8x8xf32>
    %122 = arith.subf %118, %121 : vector<8x8xf32>
    %123 = math.exp %122 : vector<8x8xf32>
    %cst_55 = arith.constant dense<0.000000e+00> : vector<8xf32>
    %124 = vector.multi_reduction <add>, %123, %cst_55 [1] : vector<8x8xf32> to vector<8xf32>
    %125 = vector.shape_cast %124 : vector<8xf32> to vector<8x1xf32>
    %126 = tpu.reciprocal %125 {approx = true} : vector<8x1xf32> -> vector<8x1xf32>
    %127 = vector.broadcast %126 : vector<8x1xf32> to vector<8x8xf32>
    %128 = arith.mulf %123, %127 : vector<8x8xf32>
    %cst_56 = arith.constant dense<0.000000e+00> : vector<8x16xf32>
    %129 = tpu.matmul %128, %114, %cst_56 {dimension_numbers = #tpu.dot_dimension_numbers<[1], [0], [0], [1], [0, 0, 1, 1], [], []>} : vector<8x8xf32>, vector<8x16xf32>, vector<8x16xf32> -> vector<8x16xf32>
    %130 = vector.extract_strided_slice %109 {offsets = [0, 16], sizes = [8, 16], strides = [1, 1]} : vector<8x32xf32> to vector<8x16xf32>
    %131 = vector.extract_strided_slice %110 {offsets = [0, 16], sizes = [8, 16], strides = [1, 1]} : vector<8x32xf32> to vector<8x16xf32>
    %132 = vector.extract_strided_slice %111 {offsets = [0, 16], sizes = [8, 16], strides = [1, 1]} : vector<8x32xf32> to vector<8x16xf32>
    %cst_57 = arith.constant dense<0.000000e+00> : vector<8x8xf32>
    %133 = tpu.matmul %130, %131, %cst_57 {dimension_numbers = #tpu.dot_dimension_numbers<[1], [1], [0], [0], [0, 0, 1, 0], [], []>} : vector<8x16xf32>, vector<8x16xf32>, vector<8x8xf32> -> vector<8x8xf32>
    %cst_58 = arith.constant 2.500000e-01 : f32
    %134 = vector.broadcast %cst_58 : f32 to vector<8x8xf32>
    %135 = arith.mulf %133, %134 : vector<8x8xf32>
    %136 = arith.addf %135, %107 : vector<8x8xf32>
    %cst_59 = arith.constant dense<0xFF800000> : vector<8xf32>
    %137 = vector.multi_reduction <maximumf>, %136, %cst_59 [1] : vector<8x8xf32> to vector<8xf32>
    %138 = vector.shape_cast %137 : vector<8xf32> to vector<8x1xf32>
    %139 = vector.broadcast %138 : vector<8x1xf32> to vector<8x8xf32>
    %140 = arith.subf %136, %139 : vector<8x8xf32>
    %141 = math.exp %140 : vector<8x8xf32>
    %cst_60 = arith.constant dense<0.000000e+00> : vector<8xf32>
    %142 = vector.multi_reduction <add>, %141, %cst_60 [1] : vector<8x8xf32> to vector<8xf32>
    %143 = vector.shape_cast %142 : vector<8xf32> to vector<8x1xf32>
    %144 = tpu.reciprocal %143 {approx = true} : vector<8x1xf32> -> vector<8x1xf32>
    %145 = vector.broadcast %144 : vector<8x1xf32> to vector<8x8xf32>
    %146 = arith.mulf %141, %145 : vector<8x8xf32>
    %cst_61 = arith.constant dense<0.000000e+00> : vector<8x16xf32>
    %147 = tpu.matmul %146, %132, %cst_61 {dimension_numbers = #tpu.dot_dimension_numbers<[1], [0], [0], [1], [0, 0, 1, 1], [], []>} : vector<8x8xf32>, vector<8x16xf32>, vector<8x16xf32> -> vector<8x16xf32>
    %148 = tpu.concatenate %129, %147 in 1 : vector<8x16xf32>, vector<8x16xf32> -> vector<8x32xf32>
    %cst_62 = arith.constant dense<0.000000e+00> : vector<8x32xf32>
    %149 = tpu.matmul %148, %105, %cst_62 {dimension_numbers = #tpu.dot_dimension_numbers<[1], [0], [0], [1], [0, 0, 1, 1], [], []>} : vector<8x32xf32>, vector<32x32xf32>, vector<8x32xf32> -> vector<8x32xf32>
    %150 = vector.broadcast %106 : vector<1x32xf32> to vector<8x32xf32>
    %151 = arith.addf %149, %150 : vector<8x32xf32>
    %152 = arith.addf %79, %151 : vector<8x32xf32>
    %c0_63 = arith.constant 0 : index
    %c0_64 = arith.constant 0 : index
    %153 = vector.load %arg45[%c0_63, %c0_64] : memref<1x32xf32, #tpu.memory_space<vmem>>, vector<1x32xf32>
    %c0_65 = arith.constant 0 : index
    %c0_66 = arith.constant 0 : index
    %154 = vector.load %arg44[%c0_65, %c0_66] : memref<1x32xf32, #tpu.memory_space<vmem>>, vector<1x32xf32>
    %cst_67 = arith.constant dense<0.000000e+00> : vector<8xf32>
    %155 = vector.multi_reduction <add>, %152, %cst_67 [1] : vector<8x32xf32> to vector<8xf32>
    %156 = vector.shape_cast %155 : vector<8xf32> to vector<8x1xf32>
    %cst_68 = arith.constant 3.200000e+01 : f32
    %157 = vector.broadcast %cst_68 : f32 to vector<8x1xf32>
    %158 = arith.divf %156, %157 : vector<8x1xf32>
    %159 = vector.broadcast %158 : vector<8x1xf32> to vector<8x32xf32>
    %160 = arith.subf %152, %159 : vector<8x32xf32>
    %161 = arith.mulf %160, %160 : vector<8x32xf32>
    %cst_69 = arith.constant dense<0.000000e+00> : vector<8xf32>
    %162 = vector.multi_reduction <add>, %161, %cst_69 [1] : vector<8x32xf32> to vector<8xf32>
    %163 = vector.shape_cast %162 : vector<8xf32> to vector<8x1xf32>
    %cst_70 = arith.constant 3.200000e+01 : f32
    %164 = vector.broadcast %cst_70 : f32 to vector<8x1xf32>
    %165 = arith.divf %163, %164 : vector<8x1xf32>
    %166 = vector.broadcast %158 : vector<8x1xf32> to vector<8x32xf32>
    %167 = arith.subf %152, %166 : vector<8x32xf32>
    %cst_71 = arith.constant 9.99999974E-6 : f32
    %168 = vector.broadcast %cst_71 : f32 to vector<8x1xf32>
    %169 = arith.addf %165, %168 : vector<8x1xf32>
    %170 = math.rsqrt %169 : vector<8x1xf32>
    %171 = vector.broadcast %170 : vector<8x1xf32> to vector<8x32xf32>
    %172 = arith.mulf %167, %171 : vector<8x32xf32>
    %173 = vector.broadcast %153 : vector<1x32xf32> to vector<8x32xf32>
    %174 = arith.mulf %172, %173 : vector<8x32xf32>
    %175 = vector.broadcast %154 : vector<1x32xf32> to vector<8x32xf32>
    %176 = arith.addf %174, %175 : vector<8x32xf32>
    %c0_72 = arith.constant 0 : index
    %c0_73 = arith.constant 0 : index
    %177 = vector.load %arg40[%c0_72, %c0_73] : memref<32x128xf32, #tpu.memory_space<vmem>>, vector<32x128xf32>
    %cst_74 = arith.constant dense<0.000000e+00> : vector<8x128xf32>
    %178 = tpu.matmul %176, %177, %cst_74 {dimension_numbers = #tpu.dot_dimension_numbers<[1], [0], [0], [1], [0, 0, 1, 1], [], []>} : vector<8x32xf32>, vector<32x128xf32>, vector<8x128xf32> -> vector<8x128xf32>
    %c0_75 = arith.constant 0 : index
    %c0_76 = arith.constant 0 : index
    %179 = vector.load %arg38[%c0_75, %c0_76] : memref<1x128xf32, #tpu.memory_space<vmem>>, vector<1x128xf32>
    %180 = vector.broadcast %179 : vector<1x128xf32> to vector<8x128xf32>
    %181 = arith.addf %178, %180 : vector<8x128xf32>
    %182 = arith.mulf %181, %181 : vector<8x128xf32>
    %183 = arith.mulf %181, %182 : vector<8x128xf32>
    %cst_77 = arith.constant 4.471500e-02 : f32
    %184 = vector.broadcast %cst_77 : f32 to vector<8x128xf32>
    %185 = arith.mulf %184, %183 : vector<8x128xf32>
    %186 = arith.addf %181, %185 : vector<8x128xf32>
    %cst_78 = arith.constant 0.797884583 : f32
    %187 = vector.broadcast %cst_78 : f32 to vector<8x128xf32>
    %188 = arith.mulf %187, %186 : vector<8x128xf32>
    %189 = math.tanh %188 : vector<8x128xf32>
    %cst_79 = arith.constant 1.000000e+00 : f32
    %190 = vector.broadcast %cst_79 : f32 to vector<8x128xf32>
    %191 = arith.addf %190, %189 : vector<8x128xf32>
    %cst_80 = arith.constant 5.000000e-01 : f32
    %192 = vector.broadcast %cst_80 : f32 to vector<8x128xf32>
    %193 = arith.mulf %192, %191 : vector<8x128xf32>
    %194 = arith.mulf %181, %193 : vector<8x128xf32>
    %c0_81 = arith.constant 0 : index
    %c0_82 = arith.constant 0 : index
    %195 = vector.load %arg41[%c0_81, %c0_82] : memref<128x32xf32, #tpu.memory_space<vmem>>, vector<128x32xf32>
    %cst_83 = arith.constant dense<0.000000e+00> : vector<8x32xf32>
    %196 = tpu.matmul %194, %195, %cst_83 {dimension_numbers = #tpu.dot_dimension_numbers<[1], [0], [0], [1], [0, 0, 1, 1], [], []>} : vector<8x128xf32>, vector<128x32xf32>, vector<8x32xf32> -> vector<8x32xf32>
    %c0_84 = arith.constant 0 : index
    %c0_85 = arith.constant 0 : index
    %197 = vector.load %arg39[%c0_84, %c0_85] : memref<1x32xf32, #tpu.memory_space<vmem>>, vector<1x32xf32>
    %198 = vector.broadcast %197 : vector<1x32xf32> to vector<8x32xf32>
    %199 = arith.addf %196, %198 : vector<8x32xf32>
    %200 = arith.addf %152, %199 : vector<8x32xf32>
    %c0_86 = arith.constant 0 : index
    %c0_87 = arith.constant 0 : index
    %201 = vector.load %arg36[%c0_86, %c0_87] : memref<1x32xf32, #tpu.memory_space<vmem>>, vector<1x32xf32>
    %c0_88 = arith.constant 0 : index
    %c0_89 = arith.constant 0 : index
    %202 = vector.load %arg35[%c0_88, %c0_89] : memref<1x32xf32, #tpu.memory_space<vmem>>, vector<1x32xf32>
    %cst_90 = arith.constant dense<0.000000e+00> : vector<8xf32>
    %203 = vector.multi_reduction <add>, %200, %cst_90 [1] : vector<8x32xf32> to vector<8xf32>
    %204 = vector.shape_cast %203 : vector<8xf32> to vector<8x1xf32>
    %cst_91 = arith.constant 3.200000e+01 : f32
    %205 = vector.broadcast %cst_91 : f32 to vector<8x1xf32>
    %206 = arith.divf %204, %205 : vector<8x1xf32>
    %207 = vector.broadcast %206 : vector<8x1xf32> to vector<8x32xf32>
    %208 = arith.subf %200, %207 : vector<8x32xf32>
    %209 = arith.mulf %208, %208 : vector<8x32xf32>
    %cst_92 = arith.constant dense<0.000000e+00> : vector<8xf32>
    %210 = vector.multi_reduction <add>, %209, %cst_92 [1] : vector<8x32xf32> to vector<8xf32>
    %211 = vector.shape_cast %210 : vector<8xf32> to vector<8x1xf32>
    %cst_93 = arith.constant 3.200000e+01 : f32
    %212 = vector.broadcast %cst_93 : f32 to vector<8x1xf32>
    %213 = arith.divf %211, %212 : vector<8x1xf32>
    %214 = vector.broadcast %206 : vector<8x1xf32> to vector<8x32xf32>
    %215 = arith.subf %200, %214 : vector<8x32xf32>
    %cst_94 = arith.constant 9.99999974E-6 : f32
    %216 = vector.broadcast %cst_94 : f32 to vector<8x1xf32>
    %217 = arith.addf %213, %216 : vector<8x1xf32>
    %218 = math.rsqrt %217 : vector<8x1xf32>
    %219 = vector.broadcast %218 : vector<8x1xf32> to vector<8x32xf32>
    %220 = arith.mulf %215, %219 : vector<8x32xf32>
    %221 = vector.broadcast %201 : vector<1x32xf32> to vector<8x32xf32>
    %222 = arith.mulf %220, %221 : vector<8x32xf32>
    %223 = vector.broadcast %202 : vector<1x32xf32> to vector<8x32xf32>
    %224 = arith.addf %222, %223 : vector<8x32xf32>
    %c0_95 = arith.constant 0 : index
    %c0_96 = arith.constant 0 : index
    %225 = vector.load %arg34[%c0_95, %c0_96] : memref<32x32xf32, #tpu.memory_space<vmem>>, vector<32x32xf32>
    %cst_97 = arith.constant dense<0.000000e+00> : vector<8x32xf32>
    %226 = tpu.matmul %224, %225, %cst_97 {dimension_numbers = #tpu.dot_dimension_numbers<[1], [0], [0], [1], [0, 0, 1, 1], [], []>} : vector<8x32xf32>, vector<32x32xf32>, vector<8x32xf32> -> vector<8x32xf32>
    %c0_98 = arith.constant 0 : index
    %c0_99 = arith.constant 0 : index
    %227 = vector.load %arg33[%c0_98, %c0_99] : memref<1x32xf32, #tpu.memory_space<vmem>>, vector<1x32xf32>
    %228 = vector.broadcast %227 : vector<1x32xf32> to vector<8x32xf32>
    %229 = arith.addf %226, %228 : vector<8x32xf32>
    %c0_100 = arith.constant 0 : index
    %c0_101 = arith.constant 0 : index
    %230 = vector.load %arg30[%c0_100, %c0_101] : memref<16x8xf32, #tpu.memory_space<vmem>>, vector<16x8xf32>
    %cst_102 = arith.constant dense<0.000000e+00> : vector<16x32xf32>
    %231 = tpu.matmul %230, %229, %cst_102 {dimension_numbers = #tpu.dot_dimension_numbers<[1], [0], [0], [1], [0, 0, 1, 1], [], []>} : vector<16x8xf32>, vector<8x32xf32>, vector<16x32xf32> -> vector<16x32xf32>
    %c0_103 = arith.constant 0 : index
    %c0_104 = arith.constant 0 : index
    %232 = vector.load %arg32[%c0_103, %c0_104] : memref<32x32xf32, #tpu.memory_space<vmem>>, vector<32x32xf32>
    %c0_105 = arith.constant 0 : index
    %c0_106 = arith.constant 0 : index
    %233 = vector.load %arg31[%c0_105, %c0_106] : memref<32x32xf32, #tpu.memory_space<vmem>>, vector<32x32xf32>
    %c0_107 = arith.constant 0 : index
    %c0_108 = arith.constant 0 : index
    %c0_109 = arith.constant 0 : index
    %234 = vector.load %arg4[%c0_107, %c0_108, %c0_109] : memref<3x16x16xf32, #tpu.memory_space<vmem>>, vector<3x16x16xf32>
    %c0_110 = arith.constant 0 : index
    %c0_111 = arith.constant 0 : index
    %235 = vector.load %arg0[%c0_110, %c0_111] : memref<16x1xf32, #tpu.memory_space<vmem>>, vector<16x1xf32>
    %c0_112 = arith.constant 0 : index
    %c0_113 = arith.constant 0 : index
    %c0_114 = arith.constant 0 : index
    %236 = vector.load %arg5[%c0_112, %c0_113, %c0_114] : memref<3x16x16xf32, #tpu.memory_space<vmem>>, vector<3x16x16xf32>
    %c0_115 = arith.constant 0 : index
    %c0_116 = arith.constant 0 : index
    %237 = vector.load %arg1[%c0_115, %c0_116] : memref<16x1xf32, #tpu.memory_space<vmem>>, vector<16x1xf32>
    %cst_117 = arith.constant dense<0.000000e+00> : vector<16x32xf32>
    %238 = tpu.matmul %231, %232, %cst_117 {dimension_numbers = #tpu.dot_dimension_numbers<[1], [0], [0], [1], [0, 0, 1, 1], [], []>} : vector<16x32xf32>, vector<32x32xf32>, vector<16x32xf32> -> vector<16x32xf32>
    %cst_118 = arith.constant dense<0.000000e+00> : vector<16x32xf32>
    %239 = tpu.matmul %231, %233, %cst_118 {dimension_numbers = #tpu.dot_dimension_numbers<[1], [0], [0], [1], [0, 0, 1, 1], [], []>} : vector<16x32xf32>, vector<32x32xf32>, vector<16x32xf32> -> vector<16x32xf32>
    %240 = vector.extract_strided_slice %234 {offsets = [0, 0, 0], sizes = [1, 16, 16], strides = [1, 1, 1]} : vector<3x16x16xf32> to vector<1x16x16xf32>
    %241 = vector.shape_cast %240 : vector<1x16x16xf32> to vector<16x16xf32>
    %cst_119 = arith.constant dense<0.000000e+00> : vector<16x32xf32>
    %242 = tpu.matmul %241, %238, %cst_119 {dimension_numbers = #tpu.dot_dimension_numbers<[1], [0], [0], [1], [0, 0, 1, 1], [], []>} : vector<16x16xf32>, vector<16x32xf32>, vector<16x32xf32> -> vector<16x32xf32>
    %243 = vector.extract_strided_slice %234 {offsets = [1, 0, 0], sizes = [1, 16, 16], strides = [1, 1, 1]} : vector<3x16x16xf32> to vector<1x16x16xf32>
    %244 = vector.shape_cast %243 : vector<1x16x16xf32> to vector<16x16xf32>
    %cst_120 = arith.constant dense<0.000000e+00> : vector<16x32xf32>
    %245 = tpu.matmul %244, %231, %cst_120 {dimension_numbers = #tpu.dot_dimension_numbers<[1], [0], [0], [1], [0, 0, 1, 1], [], []>} : vector<16x16xf32>, vector<16x32xf32>, vector<16x32xf32> -> vector<16x32xf32>
    %246 = arith.addf %242, %245 : vector<16x32xf32>
    %247 = vector.extract_strided_slice %234 {offsets = [2, 0, 0], sizes = [1, 16, 16], strides = [1, 1, 1]} : vector<3x16x16xf32> to vector<1x16x16xf32>
    %248 = vector.shape_cast %247 : vector<1x16x16xf32> to vector<16x16xf32>
    %cst_121 = arith.constant dense<0.000000e+00> : vector<16x32xf32>
    %249 = tpu.matmul %248, %239, %cst_121 {dimension_numbers = #tpu.dot_dimension_numbers<[1], [0], [0], [1], [0, 0, 1, 1], [], []>} : vector<16x16xf32>, vector<16x32xf32>, vector<16x32xf32> -> vector<16x32xf32>
    %250 = arith.addf %246, %249 : vector<16x32xf32>
    %251 = vector.broadcast %235 : vector<16x1xf32> to vector<16x32xf32>
    %252 = arith.addf %250, %251 : vector<16x32xf32>
    %253 = arith.mulf %252, %252 : vector<16x32xf32>
    %254 = arith.mulf %252, %253 : vector<16x32xf32>
    %cst_122 = arith.constant 4.471500e-02 : f32
    %255 = vector.broadcast %cst_122 : f32 to vector<16x32xf32>
    %256 = arith.mulf %255, %254 : vector<16x32xf32>
    %257 = arith.addf %252, %256 : vector<16x32xf32>
    %cst_123 = arith.constant 0.797884583 : f32
    %258 = vector.broadcast %cst_123 : f32 to vector<16x32xf32>
    %259 = arith.mulf %258, %257 : vector<16x32xf32>
    %260 = math.tanh %259 : vector<16x32xf32>
    %cst_124 = arith.constant 1.000000e+00 : f32
    %261 = vector.broadcast %cst_124 : f32 to vector<16x32xf32>
    %262 = arith.addf %261, %260 : vector<16x32xf32>
    %cst_125 = arith.constant 5.000000e-01 : f32
    %263 = vector.broadcast %cst_125 : f32 to vector<16x32xf32>
    %264 = arith.mulf %263, %262 : vector<16x32xf32>
    %265 = arith.mulf %252, %264 : vector<16x32xf32>
    %cst_126 = arith.constant dense<0.000000e+00> : vector<16x32xf32>
    %266 = tpu.matmul %265, %232, %cst_126 {dimension_numbers = #tpu.dot_dimension_numbers<[1], [0], [0], [1], [0, 0, 1, 1], [], []>} : vector<16x32xf32>, vector<32x32xf32>, vector<16x32xf32> -> vector<16x32xf32>
    %cst_127 = arith.constant dense<0.000000e+00> : vector<16x32xf32>
    %267 = tpu.matmul %265, %233, %cst_127 {dimension_numbers = #tpu.dot_dimension_numbers<[1], [0], [0], [1], [0, 0, 1, 1], [], []>} : vector<16x32xf32>, vector<32x32xf32>, vector<16x32xf32> -> vector<16x32xf32>
    %268 = vector.extract_strided_slice %236 {offsets = [0, 0, 0], sizes = [1, 16, 16], strides = [1, 1, 1]} : vector<3x16x16xf32> to vector<1x16x16xf32>
    %269 = vector.shape_cast %268 : vector<1x16x16xf32> to vector<16x16xf32>
    %cst_128 = arith.constant dense<0.000000e+00> : vector<16x32xf32>
    %270 = tpu.matmul %269, %266, %cst_128 {dimension_numbers = #tpu.dot_dimension_numbers<[1], [0], [0], [1], [0, 0, 1, 1], [], []>} : vector<16x16xf32>, vector<16x32xf32>, vector<16x32xf32> -> vector<16x32xf32>
    %271 = vector.extract_strided_slice %236 {offsets = [1, 0, 0], sizes = [1, 16, 16], strides = [1, 1, 1]} : vector<3x16x16xf32> to vector<1x16x16xf32>
    %272 = vector.shape_cast %271 : vector<1x16x16xf32> to vector<16x16xf32>
    %cst_129 = arith.constant dense<0.000000e+00> : vector<16x32xf32>
    %273 = tpu.matmul %272, %265, %cst_129 {dimension_numbers = #tpu.dot_dimension_numbers<[1], [0], [0], [1], [0, 0, 1, 1], [], []>} : vector<16x16xf32>, vector<16x32xf32>, vector<16x32xf32> -> vector<16x32xf32>
    %274 = arith.addf %270, %273 : vector<16x32xf32>
    %275 = vector.extract_strided_slice %236 {offsets = [2, 0, 0], sizes = [1, 16, 16], strides = [1, 1, 1]} : vector<3x16x16xf32> to vector<1x16x16xf32>
    %276 = vector.shape_cast %275 : vector<1x16x16xf32> to vector<16x16xf32>
    %cst_130 = arith.constant dense<0.000000e+00> : vector<16x32xf32>
    %277 = tpu.matmul %276, %267, %cst_130 {dimension_numbers = #tpu.dot_dimension_numbers<[1], [0], [0], [1], [0, 0, 1, 1], [], []>} : vector<16x16xf32>, vector<16x32xf32>, vector<16x32xf32> -> vector<16x32xf32>
    %278 = arith.addf %274, %277 : vector<16x32xf32>
    %279 = vector.broadcast %237 : vector<16x1xf32> to vector<16x32xf32>
    %280 = arith.addf %278, %279 : vector<16x32xf32>
    %281 = arith.addf %231, %280 : vector<16x32xf32>
    %cst_131 = arith.constant dense<0.000000e+00> : vector<16x32xf32>
    %282 = tpu.matmul %281, %232, %cst_131 {dimension_numbers = #tpu.dot_dimension_numbers<[1], [0], [0], [1], [0, 0, 1, 1], [], []>} : vector<16x32xf32>, vector<32x32xf32>, vector<16x32xf32> -> vector<16x32xf32>
    %cst_132 = arith.constant dense<0.000000e+00> : vector<16x32xf32>
    %283 = tpu.matmul %281, %233, %cst_132 {dimension_numbers = #tpu.dot_dimension_numbers<[1], [0], [0], [1], [0, 0, 1, 1], [], []>} : vector<16x32xf32>, vector<32x32xf32>, vector<16x32xf32> -> vector<16x32xf32>
    %284 = vector.extract_strided_slice %234 {offsets = [0, 0, 0], sizes = [1, 16, 16], strides = [1, 1, 1]} : vector<3x16x16xf32> to vector<1x16x16xf32>
    %285 = vector.shape_cast %284 : vector<1x16x16xf32> to vector<16x16xf32>
    %cst_133 = arith.constant dense<0.000000e+00> : vector<16x32xf32>
    %286 = tpu.matmul %285, %282, %cst_133 {dimension_numbers = #tpu.dot_dimension_numbers<[1], [0], [0], [1], [0, 0, 1, 1], [], []>} : vector<16x16xf32>, vector<16x32xf32>, vector<16x32xf32> -> vector<16x32xf32>
    %287 = vector.extract_strided_slice %234 {offsets = [1, 0, 0], sizes = [1, 16, 16], strides = [1, 1, 1]} : vector<3x16x16xf32> to vector<1x16x16xf32>
    %288 = vector.shape_cast %287 : vector<1x16x16xf32> to vector<16x16xf32>
    %cst_134 = arith.constant dense<0.000000e+00> : vector<16x32xf32>
    %289 = tpu.matmul %288, %281, %cst_134 {dimension_numbers = #tpu.dot_dimension_numbers<[1], [0], [0], [1], [0, 0, 1, 1], [], []>} : vector<16x16xf32>, vector<16x32xf32>, vector<16x32xf32> -> vector<16x32xf32>
    %290 = arith.addf %286, %289 : vector<16x32xf32>
    %291 = vector.extract_strided_slice %234 {offsets = [2, 0, 0], sizes = [1, 16, 16], strides = [1, 1, 1]} : vector<3x16x16xf32> to vector<1x16x16xf32>
    %292 = vector.shape_cast %291 : vector<1x16x16xf32> to vector<16x16xf32>
    %cst_135 = arith.constant dense<0.000000e+00> : vector<16x32xf32>
    %293 = tpu.matmul %292, %283, %cst_135 {dimension_numbers = #tpu.dot_dimension_numbers<[1], [0], [0], [1], [0, 0, 1, 1], [], []>} : vector<16x16xf32>, vector<16x32xf32>, vector<16x32xf32> -> vector<16x32xf32>
    %294 = arith.addf %290, %293 : vector<16x32xf32>
    %295 = vector.broadcast %235 : vector<16x1xf32> to vector<16x32xf32>
    %296 = arith.addf %294, %295 : vector<16x32xf32>
    %297 = arith.mulf %296, %296 : vector<16x32xf32>
    %298 = arith.mulf %296, %297 : vector<16x32xf32>
    %cst_136 = arith.constant 4.471500e-02 : f32
    %299 = vector.broadcast %cst_136 : f32 to vector<16x32xf32>
    %300 = arith.mulf %299, %298 : vector<16x32xf32>
    %301 = arith.addf %296, %300 : vector<16x32xf32>
    %cst_137 = arith.constant 0.797884583 : f32
    %302 = vector.broadcast %cst_137 : f32 to vector<16x32xf32>
    %303 = arith.mulf %302, %301 : vector<16x32xf32>
    %304 = math.tanh %303 : vector<16x32xf32>
    %cst_138 = arith.constant 1.000000e+00 : f32
    %305 = vector.broadcast %cst_138 : f32 to vector<16x32xf32>
    %306 = arith.addf %305, %304 : vector<16x32xf32>
    %cst_139 = arith.constant 5.000000e-01 : f32
    %307 = vector.broadcast %cst_139 : f32 to vector<16x32xf32>
    %308 = arith.mulf %307, %306 : vector<16x32xf32>
    %309 = arith.mulf %296, %308 : vector<16x32xf32>
    %cst_140 = arith.constant dense<0.000000e+00> : vector<16x32xf32>
    %310 = tpu.matmul %309, %232, %cst_140 {dimension_numbers = #tpu.dot_dimension_numbers<[1], [0], [0], [1], [0, 0, 1, 1], [], []>} : vector<16x32xf32>, vector<32x32xf32>, vector<16x32xf32> -> vector<16x32xf32>
    %cst_141 = arith.constant dense<0.000000e+00> : vector<16x32xf32>
    %311 = tpu.matmul %309, %233, %cst_141 {dimension_numbers = #tpu.dot_dimension_numbers<[1], [0], [0], [1], [0, 0, 1, 1], [], []>} : vector<16x32xf32>, vector<32x32xf32>, vector<16x32xf32> -> vector<16x32xf32>
    %312 = vector.extract_strided_slice %236 {offsets = [0, 0, 0], sizes = [1, 16, 16], strides = [1, 1, 1]} : vector<3x16x16xf32> to vector<1x16x16xf32>
    %313 = vector.shape_cast %312 : vector<1x16x16xf32> to vector<16x16xf32>
    %cst_142 = arith.constant dense<0.000000e+00> : vector<16x32xf32>
    %314 = tpu.matmul %313, %310, %cst_142 {dimension_numbers = #tpu.dot_dimension_numbers<[1], [0], [0], [1], [0, 0, 1, 1], [], []>} : vector<16x16xf32>, vector<16x32xf32>, vector<16x32xf32> -> vector<16x32xf32>
    %315 = vector.extract_strided_slice %236 {offsets = [1, 0, 0], sizes = [1, 16, 16], strides = [1, 1, 1]} : vector<3x16x16xf32> to vector<1x16x16xf32>
    %316 = vector.shape_cast %315 : vector<1x16x16xf32> to vector<16x16xf32>
    %cst_143 = arith.constant dense<0.000000e+00> : vector<16x32xf32>
    %317 = tpu.matmul %316, %309, %cst_143 {dimension_numbers = #tpu.dot_dimension_numbers<[1], [0], [0], [1], [0, 0, 1, 1], [], []>} : vector<16x16xf32>, vector<16x32xf32>, vector<16x32xf32> -> vector<16x32xf32>
    %318 = arith.addf %314, %317 : vector<16x32xf32>
    %319 = vector.extract_strided_slice %236 {offsets = [2, 0, 0], sizes = [1, 16, 16], strides = [1, 1, 1]} : vector<3x16x16xf32> to vector<1x16x16xf32>
    %320 = vector.shape_cast %319 : vector<1x16x16xf32> to vector<16x16xf32>
    %cst_144 = arith.constant dense<0.000000e+00> : vector<16x32xf32>
    %321 = tpu.matmul %320, %311, %cst_144 {dimension_numbers = #tpu.dot_dimension_numbers<[1], [0], [0], [1], [0, 0, 1, 1], [], []>} : vector<16x16xf32>, vector<16x32xf32>, vector<16x32xf32> -> vector<16x32xf32>
    %322 = arith.addf %318, %321 : vector<16x32xf32>
    %323 = vector.broadcast %237 : vector<16x1xf32> to vector<16x32xf32>
    %324 = arith.addf %322, %323 : vector<16x32xf32>
    %325 = arith.addf %281, %324 : vector<16x32xf32>
    %c0_145 = arith.constant 0 : index
    %c0_146 = arith.constant 0 : index
    %326 = vector.load %arg3[%c0_145, %c0_146] : memref<1x32xf32, #tpu.memory_space<vmem>>, vector<1x32xf32>
    %c0_147 = arith.constant 0 : index
    %c0_148 = arith.constant 0 : index
    %327 = vector.load %arg2[%c0_147, %c0_148] : memref<1x32xf32, #tpu.memory_space<vmem>>, vector<1x32xf32>
    %cst_149 = arith.constant dense<0.000000e+00> : vector<16xf32>
    %328 = vector.multi_reduction <add>, %325, %cst_149 [1] : vector<16x32xf32> to vector<16xf32>
    %329 = vector.shape_cast %328 : vector<16xf32> to vector<16x1xf32>
    %cst_150 = arith.constant 3.200000e+01 : f32
    %330 = vector.broadcast %cst_150 : f32 to vector<16x1xf32>
    %331 = arith.divf %329, %330 : vector<16x1xf32>
    %332 = vector.broadcast %331 : vector<16x1xf32> to vector<16x32xf32>
    %333 = arith.subf %325, %332 : vector<16x32xf32>
    %334 = arith.mulf %333, %333 : vector<16x32xf32>
    %cst_151 = arith.constant dense<0.000000e+00> : vector<16xf32>
    %335 = vector.multi_reduction <add>, %334, %cst_151 [1] : vector<16x32xf32> to vector<16xf32>
    %336 = vector.shape_cast %335 : vector<16xf32> to vector<16x1xf32>
    %cst_152 = arith.constant 3.200000e+01 : f32
    %337 = vector.broadcast %cst_152 : f32 to vector<16x1xf32>
    %338 = arith.divf %336, %337 : vector<16x1xf32>
    %339 = vector.broadcast %331 : vector<16x1xf32> to vector<16x32xf32>
    %340 = arith.subf %325, %339 : vector<16x32xf32>
    %cst_153 = arith.constant 9.99999974E-6 : f32
    %341 = vector.broadcast %cst_153 : f32 to vector<16x1xf32>
    %342 = arith.addf %338, %341 : vector<16x1xf32>
    %343 = math.rsqrt %342 : vector<16x1xf32>
    %344 = vector.broadcast %343 : vector<16x1xf32> to vector<16x32xf32>
    %345 = arith.mulf %340, %344 : vector<16x32xf32>
    %346 = vector.broadcast %326 : vector<1x32xf32> to vector<16x32xf32>
    %347 = arith.mulf %345, %346 : vector<16x32xf32>
    %348 = vector.broadcast %327 : vector<1x32xf32> to vector<16x32xf32>
    %349 = arith.addf %347, %348 : vector<16x32xf32>
    %c0_154 = arith.constant 0 : index
    %c0_155 = arith.constant 0 : index
    %350 = vector.load %arg58[%c0_154, %c0_155] : memref<16x32xf32, #tpu.memory_space<vmem>>, vector<16x32xf32>
    %351 = arith.addf %349, %350 : vector<16x32xf32>
    %c0_156 = arith.constant 0 : index
    %c0_157 = arith.constant 0 : index
    %352 = vector.load %arg19[%c0_156, %c0_157] : memref<32x96xf32, #tpu.memory_space<vmem>>, vector<32x96xf32>
    %c0_158 = arith.constant 0 : index
    %c0_159 = arith.constant 0 : index
    %353 = vector.load %arg18[%c0_158, %c0_159] : memref<32x32xf32, #tpu.memory_space<vmem>>, vector<32x32xf32>
    %c0_160 = arith.constant 0 : index
    %c0_161 = arith.constant 0 : index
    %354 = vector.load %arg13[%c0_160, %c0_161] : memref<1x32xf32, #tpu.memory_space<vmem>>, vector<1x32xf32>
    %c0_162 = arith.constant 0 : index
    %c0_163 = arith.constant 0 : index
    %355 = vector.load %arg6[%c0_162, %c0_163] : memref<16x16xf32, #tpu.memory_space<vmem>>, vector<16x16xf32>
    %cst_164 = arith.constant dense<0.000000e+00> : vector<16x96xf32>
    %356 = tpu.matmul %351, %352, %cst_164 {dimension_numbers = #tpu.dot_dimension_numbers<[1], [0], [0], [1], [0, 0, 1, 1], [], []>} : vector<16x32xf32>, vector<32x96xf32>, vector<16x96xf32> -> vector<16x96xf32>
    %357 = vector.extract_strided_slice %356 {offsets = [0, 0], sizes = [16, 32], strides = [1, 1]} : vector<16x96xf32> to vector<16x32xf32>
    %358 = vector.extract_strided_slice %356 {offsets = [0, 32], sizes = [16, 32], strides = [1, 1]} : vector<16x96xf32> to vector<16x32xf32>
    %359 = vector.extract_strided_slice %356 {offsets = [0, 64], sizes = [16, 32], strides = [1, 1]} : vector<16x96xf32> to vector<16x32xf32>
    %360 = vector.extract_strided_slice %357 {offsets = [0, 0], sizes = [16, 16], strides = [1, 1]} : vector<16x32xf32> to vector<16x16xf32>
    %361 = vector.extract_strided_slice %358 {offsets = [0, 0], sizes = [16, 16], strides = [1, 1]} : vector<16x32xf32> to vector<16x16xf32>
    %362 = vector.extract_strided_slice %359 {offsets = [0, 0], sizes = [16, 16], strides = [1, 1]} : vector<16x32xf32> to vector<16x16xf32>
    %363 = arith.mulf %360, %360 : vector<16x16xf32>
    %cst_165 = arith.constant dense<0.000000e+00> : vector<16xf32>
    %364 = vector.multi_reduction <add>, %363, %cst_165 [1] : vector<16x16xf32> to vector<16xf32>
    %365 = vector.shape_cast %364 : vector<16xf32> to vector<16x1xf32>
    %cst_166 = arith.constant 9.99999993E-9 : f32
    %366 = vector.broadcast %cst_166 : f32 to vector<16x1xf32>
    %367 = arith.addf %365, %366 : vector<16x1xf32>
    %368 = math.rsqrt %367 : vector<16x1xf32>
    %369 = vector.broadcast %368 : vector<16x1xf32> to vector<16x16xf32>
    %370 = arith.mulf %360, %369 : vector<16x16xf32>
    %371 = arith.mulf %361, %361 : vector<16x16xf32>
    %cst_167 = arith.constant dense<0.000000e+00> : vector<16xf32>
    %372 = vector.multi_reduction <add>, %371, %cst_167 [1] : vector<16x16xf32> to vector<16xf32>
    %373 = vector.shape_cast %372 : vector<16xf32> to vector<16x1xf32>
    %cst_168 = arith.constant 9.99999993E-9 : f32
    %374 = vector.broadcast %cst_168 : f32 to vector<16x1xf32>
    %375 = arith.addf %373, %374 : vector<16x1xf32>
    %376 = math.rsqrt %375 : vector<16x1xf32>
    %377 = vector.broadcast %376 : vector<16x1xf32> to vector<16x16xf32>
    %378 = arith.mulf %361, %377 : vector<16x16xf32>
    %cst_169 = arith.constant dense<0.000000e+00> : vector<16x16xf32>
    %379 = tpu.matmul %370, %378, %cst_169 {dimension_numbers = #tpu.dot_dimension_numbers<[1], [1], [0], [0], [0, 0, 1, 0], [], []>} : vector<16x16xf32>, vector<16x16xf32>, vector<16x16xf32> -> vector<16x16xf32>
    %cst_170 = arith.constant 1.000000e+01 : f32
    %380 = vector.broadcast %cst_170 : f32 to vector<16x16xf32>
    %381 = arith.mulf %379, %380 : vector<16x16xf32>
    %382 = arith.addf %381, %355 : vector<16x16xf32>
    %cst_171 = arith.constant dense<0xFF800000> : vector<16xf32>
    %383 = vector.multi_reduction <maximumf>, %382, %cst_171 [1] : vector<16x16xf32> to vector<16xf32>
    %384 = vector.shape_cast %383 : vector<16xf32> to vector<16x1xf32>
    %385 = vector.broadcast %384 : vector<16x1xf32> to vector<16x16xf32>
    %386 = arith.subf %382, %385 : vector<16x16xf32>
    %387 = math.exp %386 : vector<16x16xf32>
    %cst_172 = arith.constant dense<0.000000e+00> : vector<16xf32>
    %388 = vector.multi_reduction <add>, %387, %cst_172 [1] : vector<16x16xf32> to vector<16xf32>
    %389 = vector.shape_cast %388 : vector<16xf32> to vector<16x1xf32>
    %390 = tpu.reciprocal %389 {approx = true} : vector<16x1xf32> -> vector<16x1xf32>
    %391 = vector.broadcast %390 : vector<16x1xf32> to vector<16x16xf32>
    %392 = arith.mulf %387, %391 : vector<16x16xf32>
    %cst_173 = arith.constant dense<0.000000e+00> : vector<16x16xf32>
    %393 = tpu.matmul %392, %362, %cst_173 {dimension_numbers = #tpu.dot_dimension_numbers<[1], [0], [0], [1], [0, 0, 1, 1], [], []>} : vector<16x16xf32>, vector<16x16xf32>, vector<16x16xf32> -> vector<16x16xf32>
    %394 = vector.extract_strided_slice %357 {offsets = [0, 16], sizes = [16, 16], strides = [1, 1]} : vector<16x32xf32> to vector<16x16xf32>
    %395 = vector.extract_strided_slice %358 {offsets = [0, 16], sizes = [16, 16], strides = [1, 1]} : vector<16x32xf32> to vector<16x16xf32>
    %396 = vector.extract_strided_slice %359 {offsets = [0, 16], sizes = [16, 16], strides = [1, 1]} : vector<16x32xf32> to vector<16x16xf32>
    %397 = arith.mulf %394, %394 : vector<16x16xf32>
    %cst_174 = arith.constant dense<0.000000e+00> : vector<16xf32>
    %398 = vector.multi_reduction <add>, %397, %cst_174 [1] : vector<16x16xf32> to vector<16xf32>
    %399 = vector.shape_cast %398 : vector<16xf32> to vector<16x1xf32>
    %cst_175 = arith.constant 9.99999993E-9 : f32
    %400 = vector.broadcast %cst_175 : f32 to vector<16x1xf32>
    %401 = arith.addf %399, %400 : vector<16x1xf32>
    %402 = math.rsqrt %401 : vector<16x1xf32>
    %403 = vector.broadcast %402 : vector<16x1xf32> to vector<16x16xf32>
    %404 = arith.mulf %394, %403 : vector<16x16xf32>
    %405 = arith.mulf %395, %395 : vector<16x16xf32>
    %cst_176 = arith.constant dense<0.000000e+00> : vector<16xf32>
    %406 = vector.multi_reduction <add>, %405, %cst_176 [1] : vector<16x16xf32> to vector<16xf32>
    %407 = vector.shape_cast %406 : vector<16xf32> to vector<16x1xf32>
    %cst_177 = arith.constant 9.99999993E-9 : f32
    %408 = vector.broadcast %cst_177 : f32 to vector<16x1xf32>
    %409 = arith.addf %407, %408 : vector<16x1xf32>
    %410 = math.rsqrt %409 : vector<16x1xf32>
    %411 = vector.broadcast %410 : vector<16x1xf32> to vector<16x16xf32>
    %412 = arith.mulf %395, %411 : vector<16x16xf32>
    %cst_178 = arith.constant dense<0.000000e+00> : vector<16x16xf32>
    %413 = tpu.matmul %404, %412, %cst_178 {dimension_numbers = #tpu.dot_dimension_numbers<[1], [1], [0], [0], [0, 0, 1, 0], [], []>} : vector<16x16xf32>, vector<16x16xf32>, vector<16x16xf32> -> vector<16x16xf32>
    %cst_179 = arith.constant 1.000000e+01 : f32
    %414 = vector.broadcast %cst_179 : f32 to vector<16x16xf32>
    %415 = arith.mulf %413, %414 : vector<16x16xf32>
    %416 = arith.addf %415, %355 : vector<16x16xf32>
    %cst_180 = arith.constant dense<0xFF800000> : vector<16xf32>
    %417 = vector.multi_reduction <maximumf>, %416, %cst_180 [1] : vector<16x16xf32> to vector<16xf32>
    %418 = vector.shape_cast %417 : vector<16xf32> to vector<16x1xf32>
    %419 = vector.broadcast %418 : vector<16x1xf32> to vector<16x16xf32>
    %420 = arith.subf %416, %419 : vector<16x16xf32>
    %421 = math.exp %420 : vector<16x16xf32>
    %cst_181 = arith.constant dense<0.000000e+00> : vector<16xf32>
    %422 = vector.multi_reduction <add>, %421, %cst_181 [1] : vector<16x16xf32> to vector<16xf32>
    %423 = vector.shape_cast %422 : vector<16xf32> to vector<16x1xf32>
    %424 = tpu.reciprocal %423 {approx = true} : vector<16x1xf32> -> vector<16x1xf32>
    %425 = vector.broadcast %424 : vector<16x1xf32> to vector<16x16xf32>
    %426 = arith.mulf %421, %425 : vector<16x16xf32>
    %cst_182 = arith.constant dense<0.000000e+00> : vector<16x16xf32>
    %427 = tpu.matmul %426, %396, %cst_182 {dimension_numbers = #tpu.dot_dimension_numbers<[1], [0], [0], [1], [0, 0, 1, 1], [], []>} : vector<16x16xf32>, vector<16x16xf32>, vector<16x16xf32> -> vector<16x16xf32>
    %428 = tpu.concatenate %393, %427 in 1 : vector<16x16xf32>, vector<16x16xf32> -> vector<16x32xf32>
    %cst_183 = arith.constant dense<0.000000e+00> : vector<16x32xf32>
    %429 = tpu.matmul %428, %353, %cst_183 {dimension_numbers = #tpu.dot_dimension_numbers<[1], [0], [0], [1], [0, 0, 1, 1], [], []>} : vector<16x32xf32>, vector<32x32xf32>, vector<16x32xf32> -> vector<16x32xf32>
    %430 = vector.broadcast %354 : vector<1x32xf32> to vector<16x32xf32>
    %431 = arith.addf %429, %430 : vector<16x32xf32>
    %432 = arith.addf %431, %351 : vector<16x32xf32>
    %c0_184 = arith.constant 0 : index
    %c0_185 = arith.constant 0 : index
    %433 = vector.load %arg16[%c0_184, %c0_185] : memref<32x128xf32, #tpu.memory_space<vmem>>, vector<32x128xf32>
    %cst_186 = arith.constant dense<0.000000e+00> : vector<16x128xf32>
    %434 = tpu.matmul %432, %433, %cst_186 {dimension_numbers = #tpu.dot_dimension_numbers<[1], [0], [0], [1], [0, 0, 1, 1], [], []>} : vector<16x32xf32>, vector<32x128xf32>, vector<16x128xf32> -> vector<16x128xf32>
    %c0_187 = arith.constant 0 : index
    %c0_188 = arith.constant 0 : index
    %435 = vector.load %arg11[%c0_187, %c0_188] : memref<1x128xf32, #tpu.memory_space<vmem>>, vector<1x128xf32>
    %436 = vector.broadcast %435 : vector<1x128xf32> to vector<16x128xf32>
    %437 = arith.addf %434, %436 : vector<16x128xf32>
    %438 = arith.negf %437 : vector<16x128xf32>
    %439 = math.exp %438 : vector<16x128xf32>
    %cst_189 = arith.constant 1.000000e+00 : f32
    %440 = vector.broadcast %cst_189 : f32 to vector<16x128xf32>
    %441 = arith.addf %440, %439 : vector<16x128xf32>
    %442 = arith.divf %440, %441 : vector<16x128xf32>
    %443 = arith.mulf %437, %442 : vector<16x128xf32>
    %c0_190 = arith.constant 0 : index
    %c0_191 = arith.constant 0 : index
    %444 = vector.load %arg15[%c0_190, %c0_191] : memref<1x128xf32, #tpu.memory_space<vmem>>, vector<1x128xf32>
    %c0_192 = arith.constant 0 : index
    %c0_193 = arith.constant 0 : index
    %445 = vector.load %arg14[%c0_192, %c0_193] : memref<1x128xf32, #tpu.memory_space<vmem>>, vector<1x128xf32>
    %cst_194 = arith.constant dense<0.000000e+00> : vector<16xf32>
    %446 = vector.multi_reduction <add>, %443, %cst_194 [1] : vector<16x128xf32> to vector<16xf32>
    %447 = vector.shape_cast %446 : vector<16xf32> to vector<16x1xf32>
    %cst_195 = arith.constant 1.280000e+02 : f32
    %448 = vector.broadcast %cst_195 : f32 to vector<16x1xf32>
    %449 = arith.divf %447, %448 : vector<16x1xf32>
    %450 = vector.broadcast %449 : vector<16x1xf32> to vector<16x128xf32>
    %451 = arith.subf %443, %450 : vector<16x128xf32>
    %452 = arith.mulf %451, %451 : vector<16x128xf32>
    %cst_196 = arith.constant dense<0.000000e+00> : vector<16xf32>
    %453 = vector.multi_reduction <add>, %452, %cst_196 [1] : vector<16x128xf32> to vector<16xf32>
    %454 = vector.shape_cast %453 : vector<16xf32> to vector<16x1xf32>
    %cst_197 = arith.constant 1.280000e+02 : f32
    %455 = vector.broadcast %cst_197 : f32 to vector<16x1xf32>
    %456 = arith.divf %454, %455 : vector<16x1xf32>
    %457 = vector.broadcast %449 : vector<16x1xf32> to vector<16x128xf32>
    %458 = arith.subf %443, %457 : vector<16x128xf32>
    %cst_198 = arith.constant 9.99999974E-6 : f32
    %459 = vector.broadcast %cst_198 : f32 to vector<16x1xf32>
    %460 = arith.addf %456, %459 : vector<16x1xf32>
    %461 = math.rsqrt %460 : vector<16x1xf32>
    %462 = vector.broadcast %461 : vector<16x1xf32> to vector<16x128xf32>
    %463 = arith.mulf %458, %462 : vector<16x128xf32>
    %464 = vector.broadcast %444 : vector<1x128xf32> to vector<16x128xf32>
    %465 = arith.mulf %463, %464 : vector<16x128xf32>
    %466 = vector.broadcast %445 : vector<1x128xf32> to vector<16x128xf32>
    %467 = arith.addf %465, %466 : vector<16x128xf32>
    %c0_199 = arith.constant 0 : index
    %c0_200 = arith.constant 0 : index
    %468 = vector.load %arg17[%c0_199, %c0_200] : memref<128x32xf32, #tpu.memory_space<vmem>>, vector<128x32xf32>
    %cst_201 = arith.constant dense<0.000000e+00> : vector<16x32xf32>
    %469 = tpu.matmul %467, %468, %cst_201 {dimension_numbers = #tpu.dot_dimension_numbers<[1], [0], [0], [1], [0, 0, 1, 1], [], []>} : vector<16x128xf32>, vector<128x32xf32>, vector<16x32xf32> -> vector<16x32xf32>
    %c0_202 = arith.constant 0 : index
    %c0_203 = arith.constant 0 : index
    %470 = vector.load %arg12[%c0_202, %c0_203] : memref<1x32xf32, #tpu.memory_space<vmem>>, vector<1x32xf32>
    %471 = vector.broadcast %470 : vector<1x32xf32> to vector<16x32xf32>
    %472 = arith.addf %469, %471 : vector<16x32xf32>
    %473 = arith.addf %432, %472 : vector<16x32xf32>
    %c0_204 = arith.constant 0 : index
    %c0_205 = arith.constant 0 : index
    %474 = vector.load %arg28[%c0_204, %c0_205] : memref<32x96xf32, #tpu.memory_space<vmem>>, vector<32x96xf32>
    %c0_206 = arith.constant 0 : index
    %c0_207 = arith.constant 0 : index
    %475 = vector.load %arg27[%c0_206, %c0_207] : memref<32x32xf32, #tpu.memory_space<vmem>>, vector<32x32xf32>
    %c0_208 = arith.constant 0 : index
    %c0_209 = arith.constant 0 : index
    %476 = vector.load %arg22[%c0_208, %c0_209] : memref<1x32xf32, #tpu.memory_space<vmem>>, vector<1x32xf32>
    %c0_210 = arith.constant 0 : index
    %c0_211 = arith.constant 0 : index
    %477 = vector.load %arg6[%c0_210, %c0_211] : memref<16x16xf32, #tpu.memory_space<vmem>>, vector<16x16xf32>
    %cst_212 = arith.constant dense<0.000000e+00> : vector<16x96xf32>
    %478 = tpu.matmul %473, %474, %cst_212 {dimension_numbers = #tpu.dot_dimension_numbers<[1], [0], [0], [1], [0, 0, 1, 1], [], []>} : vector<16x32xf32>, vector<32x96xf32>, vector<16x96xf32> -> vector<16x96xf32>
    %479 = vector.extract_strided_slice %478 {offsets = [0, 0], sizes = [16, 32], strides = [1, 1]} : vector<16x96xf32> to vector<16x32xf32>
    %480 = vector.extract_strided_slice %478 {offsets = [0, 32], sizes = [16, 32], strides = [1, 1]} : vector<16x96xf32> to vector<16x32xf32>
    %481 = vector.extract_strided_slice %478 {offsets = [0, 64], sizes = [16, 32], strides = [1, 1]} : vector<16x96xf32> to vector<16x32xf32>
    %482 = vector.extract_strided_slice %479 {offsets = [0, 0], sizes = [16, 16], strides = [1, 1]} : vector<16x32xf32> to vector<16x16xf32>
    %483 = vector.extract_strided_slice %480 {offsets = [0, 0], sizes = [16, 16], strides = [1, 1]} : vector<16x32xf32> to vector<16x16xf32>
    %484 = vector.extract_strided_slice %481 {offsets = [0, 0], sizes = [16, 16], strides = [1, 1]} : vector<16x32xf32> to vector<16x16xf32>
    %485 = arith.mulf %482, %482 : vector<16x16xf32>
    %cst_213 = arith.constant dense<0.000000e+00> : vector<16xf32>
    %486 = vector.multi_reduction <add>, %485, %cst_213 [1] : vector<16x16xf32> to vector<16xf32>
    %487 = vector.shape_cast %486 : vector<16xf32> to vector<16x1xf32>
    %cst_214 = arith.constant 9.99999993E-9 : f32
    %488 = vector.broadcast %cst_214 : f32 to vector<16x1xf32>
    %489 = arith.addf %487, %488 : vector<16x1xf32>
    %490 = math.rsqrt %489 : vector<16x1xf32>
    %491 = vector.broadcast %490 : vector<16x1xf32> to vector<16x16xf32>
    %492 = arith.mulf %482, %491 : vector<16x16xf32>
    %493 = arith.mulf %483, %483 : vector<16x16xf32>
    %cst_215 = arith.constant dense<0.000000e+00> : vector<16xf32>
    %494 = vector.multi_reduction <add>, %493, %cst_215 [1] : vector<16x16xf32> to vector<16xf32>
    %495 = vector.shape_cast %494 : vector<16xf32> to vector<16x1xf32>
    %cst_216 = arith.constant 9.99999993E-9 : f32
    %496 = vector.broadcast %cst_216 : f32 to vector<16x1xf32>
    %497 = arith.addf %495, %496 : vector<16x1xf32>
    %498 = math.rsqrt %497 : vector<16x1xf32>
    %499 = vector.broadcast %498 : vector<16x1xf32> to vector<16x16xf32>
    %500 = arith.mulf %483, %499 : vector<16x16xf32>
    %cst_217 = arith.constant dense<0.000000e+00> : vector<16x16xf32>
    %501 = tpu.matmul %492, %500, %cst_217 {dimension_numbers = #tpu.dot_dimension_numbers<[1], [1], [0], [0], [0, 0, 1, 0], [], []>} : vector<16x16xf32>, vector<16x16xf32>, vector<16x16xf32> -> vector<16x16xf32>
    %cst_218 = arith.constant 1.000000e+01 : f32
    %502 = vector.broadcast %cst_218 : f32 to vector<16x16xf32>
    %503 = arith.mulf %501, %502 : vector<16x16xf32>
    %504 = arith.addf %503, %477 : vector<16x16xf32>
    %cst_219 = arith.constant dense<0xFF800000> : vector<16xf32>
    %505 = vector.multi_reduction <maximumf>, %504, %cst_219 [1] : vector<16x16xf32> to vector<16xf32>
    %506 = vector.shape_cast %505 : vector<16xf32> to vector<16x1xf32>
    %507 = vector.broadcast %506 : vector<16x1xf32> to vector<16x16xf32>
    %508 = arith.subf %504, %507 : vector<16x16xf32>
    %509 = math.exp %508 : vector<16x16xf32>
    %cst_220 = arith.constant dense<0.000000e+00> : vector<16xf32>
    %510 = vector.multi_reduction <add>, %509, %cst_220 [1] : vector<16x16xf32> to vector<16xf32>
    %511 = vector.shape_cast %510 : vector<16xf32> to vector<16x1xf32>
    %512 = tpu.reciprocal %511 {approx = true} : vector<16x1xf32> -> vector<16x1xf32>
    %513 = vector.broadcast %512 : vector<16x1xf32> to vector<16x16xf32>
    %514 = arith.mulf %509, %513 : vector<16x16xf32>
    %cst_221 = arith.constant dense<0.000000e+00> : vector<16x16xf32>
    %515 = tpu.matmul %514, %484, %cst_221 {dimension_numbers = #tpu.dot_dimension_numbers<[1], [0], [0], [1], [0, 0, 1, 1], [], []>} : vector<16x16xf32>, vector<16x16xf32>, vector<16x16xf32> -> vector<16x16xf32>
    %516 = vector.extract_strided_slice %479 {offsets = [0, 16], sizes = [16, 16], strides = [1, 1]} : vector<16x32xf32> to vector<16x16xf32>
    %517 = vector.extract_strided_slice %480 {offsets = [0, 16], sizes = [16, 16], strides = [1, 1]} : vector<16x32xf32> to vector<16x16xf32>
    %518 = vector.extract_strided_slice %481 {offsets = [0, 16], sizes = [16, 16], strides = [1, 1]} : vector<16x32xf32> to vector<16x16xf32>
    %519 = arith.mulf %516, %516 : vector<16x16xf32>
    %cst_222 = arith.constant dense<0.000000e+00> : vector<16xf32>
    %520 = vector.multi_reduction <add>, %519, %cst_222 [1] : vector<16x16xf32> to vector<16xf32>
    %521 = vector.shape_cast %520 : vector<16xf32> to vector<16x1xf32>
    %cst_223 = arith.constant 9.99999993E-9 : f32
    %522 = vector.broadcast %cst_223 : f32 to vector<16x1xf32>
    %523 = arith.addf %521, %522 : vector<16x1xf32>
    %524 = math.rsqrt %523 : vector<16x1xf32>
    %525 = vector.broadcast %524 : vector<16x1xf32> to vector<16x16xf32>
    %526 = arith.mulf %516, %525 : vector<16x16xf32>
    %527 = arith.mulf %517, %517 : vector<16x16xf32>
    %cst_224 = arith.constant dense<0.000000e+00> : vector<16xf32>
    %528 = vector.multi_reduction <add>, %527, %cst_224 [1] : vector<16x16xf32> to vector<16xf32>
    %529 = vector.shape_cast %528 : vector<16xf32> to vector<16x1xf32>
    %cst_225 = arith.constant 9.99999993E-9 : f32
    %530 = vector.broadcast %cst_225 : f32 to vector<16x1xf32>
    %531 = arith.addf %529, %530 : vector<16x1xf32>
    %532 = math.rsqrt %531 : vector<16x1xf32>
    %533 = vector.broadcast %532 : vector<16x1xf32> to vector<16x16xf32>
    %534 = arith.mulf %517, %533 : vector<16x16xf32>
    %cst_226 = arith.constant dense<0.000000e+00> : vector<16x16xf32>
    %535 = tpu.matmul %526, %534, %cst_226 {dimension_numbers = #tpu.dot_dimension_numbers<[1], [1], [0], [0], [0, 0, 1, 0], [], []>} : vector<16x16xf32>, vector<16x16xf32>, vector<16x16xf32> -> vector<16x16xf32>
    %cst_227 = arith.constant 1.000000e+01 : f32
    %536 = vector.broadcast %cst_227 : f32 to vector<16x16xf32>
    %537 = arith.mulf %535, %536 : vector<16x16xf32>
    %538 = arith.addf %537, %477 : vector<16x16xf32>
    %cst_228 = arith.constant dense<0xFF800000> : vector<16xf32>
    %539 = vector.multi_reduction <maximumf>, %538, %cst_228 [1] : vector<16x16xf32> to vector<16xf32>
    %540 = vector.shape_cast %539 : vector<16xf32> to vector<16x1xf32>
    %541 = vector.broadcast %540 : vector<16x1xf32> to vector<16x16xf32>
    %542 = arith.subf %538, %541 : vector<16x16xf32>
    %543 = math.exp %542 : vector<16x16xf32>
    %cst_229 = arith.constant dense<0.000000e+00> : vector<16xf32>
    %544 = vector.multi_reduction <add>, %543, %cst_229 [1] : vector<16x16xf32> to vector<16xf32>
    %545 = vector.shape_cast %544 : vector<16xf32> to vector<16x1xf32>
    %546 = tpu.reciprocal %545 {approx = true} : vector<16x1xf32> -> vector<16x1xf32>
    %547 = vector.broadcast %546 : vector<16x1xf32> to vector<16x16xf32>
    %548 = arith.mulf %543, %547 : vector<16x16xf32>
    %cst_230 = arith.constant dense<0.000000e+00> : vector<16x16xf32>
    %549 = tpu.matmul %548, %518, %cst_230 {dimension_numbers = #tpu.dot_dimension_numbers<[1], [0], [0], [1], [0, 0, 1, 1], [], []>} : vector<16x16xf32>, vector<16x16xf32>, vector<16x16xf32> -> vector<16x16xf32>
    %550 = tpu.concatenate %515, %549 in 1 : vector<16x16xf32>, vector<16x16xf32> -> vector<16x32xf32>
    %cst_231 = arith.constant dense<0.000000e+00> : vector<16x32xf32>
    %551 = tpu.matmul %550, %475, %cst_231 {dimension_numbers = #tpu.dot_dimension_numbers<[1], [0], [0], [1], [0, 0, 1, 1], [], []>} : vector<16x32xf32>, vector<32x32xf32>, vector<16x32xf32> -> vector<16x32xf32>
    %552 = vector.broadcast %476 : vector<1x32xf32> to vector<16x32xf32>
    %553 = arith.addf %551, %552 : vector<16x32xf32>
    %554 = arith.addf %553, %473 : vector<16x32xf32>
    %c0_232 = arith.constant 0 : index
    %c0_233 = arith.constant 0 : index
    %555 = vector.load %arg25[%c0_232, %c0_233] : memref<32x128xf32, #tpu.memory_space<vmem>>, vector<32x128xf32>
    %cst_234 = arith.constant dense<0.000000e+00> : vector<16x128xf32>
    %556 = tpu.matmul %554, %555, %cst_234 {dimension_numbers = #tpu.dot_dimension_numbers<[1], [0], [0], [1], [0, 0, 1, 1], [], []>} : vector<16x32xf32>, vector<32x128xf32>, vector<16x128xf32> -> vector<16x128xf32>
    %c0_235 = arith.constant 0 : index
    %c0_236 = arith.constant 0 : index
    %557 = vector.load %arg20[%c0_235, %c0_236] : memref<1x128xf32, #tpu.memory_space<vmem>>, vector<1x128xf32>
    %558 = vector.broadcast %557 : vector<1x128xf32> to vector<16x128xf32>
    %559 = arith.addf %556, %558 : vector<16x128xf32>
    %560 = arith.negf %559 : vector<16x128xf32>
    %561 = math.exp %560 : vector<16x128xf32>
    %cst_237 = arith.constant 1.000000e+00 : f32
    %562 = vector.broadcast %cst_237 : f32 to vector<16x128xf32>
    %563 = arith.addf %562, %561 : vector<16x128xf32>
    %564 = arith.divf %562, %563 : vector<16x128xf32>
    %565 = arith.mulf %559, %564 : vector<16x128xf32>
    %c0_238 = arith.constant 0 : index
    %c0_239 = arith.constant 0 : index
    %566 = vector.load %arg24[%c0_238, %c0_239] : memref<1x128xf32, #tpu.memory_space<vmem>>, vector<1x128xf32>
    %c0_240 = arith.constant 0 : index
    %c0_241 = arith.constant 0 : index
    %567 = vector.load %arg23[%c0_240, %c0_241] : memref<1x128xf32, #tpu.memory_space<vmem>>, vector<1x128xf32>
    %cst_242 = arith.constant dense<0.000000e+00> : vector<16xf32>
    %568 = vector.multi_reduction <add>, %565, %cst_242 [1] : vector<16x128xf32> to vector<16xf32>
    %569 = vector.shape_cast %568 : vector<16xf32> to vector<16x1xf32>
    %cst_243 = arith.constant 1.280000e+02 : f32
    %570 = vector.broadcast %cst_243 : f32 to vector<16x1xf32>
    %571 = arith.divf %569, %570 : vector<16x1xf32>
    %572 = vector.broadcast %571 : vector<16x1xf32> to vector<16x128xf32>
    %573 = arith.subf %565, %572 : vector<16x128xf32>
    %574 = arith.mulf %573, %573 : vector<16x128xf32>
    %cst_244 = arith.constant dense<0.000000e+00> : vector<16xf32>
    %575 = vector.multi_reduction <add>, %574, %cst_244 [1] : vector<16x128xf32> to vector<16xf32>
    %576 = vector.shape_cast %575 : vector<16xf32> to vector<16x1xf32>
    %cst_245 = arith.constant 1.280000e+02 : f32
    %577 = vector.broadcast %cst_245 : f32 to vector<16x1xf32>
    %578 = arith.divf %576, %577 : vector<16x1xf32>
    %579 = vector.broadcast %571 : vector<16x1xf32> to vector<16x128xf32>
    %580 = arith.subf %565, %579 : vector<16x128xf32>
    %cst_246 = arith.constant 9.99999974E-6 : f32
    %581 = vector.broadcast %cst_246 : f32 to vector<16x1xf32>
    %582 = arith.addf %578, %581 : vector<16x1xf32>
    %583 = math.rsqrt %582 : vector<16x1xf32>
    %584 = vector.broadcast %583 : vector<16x1xf32> to vector<16x128xf32>
    %585 = arith.mulf %580, %584 : vector<16x128xf32>
    %586 = vector.broadcast %566 : vector<1x128xf32> to vector<16x128xf32>
    %587 = arith.mulf %585, %586 : vector<16x128xf32>
    %588 = vector.broadcast %567 : vector<1x128xf32> to vector<16x128xf32>
    %589 = arith.addf %587, %588 : vector<16x128xf32>
    %c0_247 = arith.constant 0 : index
    %c0_248 = arith.constant 0 : index
    %590 = vector.load %arg26[%c0_247, %c0_248] : memref<128x32xf32, #tpu.memory_space<vmem>>, vector<128x32xf32>
    %cst_249 = arith.constant dense<0.000000e+00> : vector<16x32xf32>
    %591 = tpu.matmul %589, %590, %cst_249 {dimension_numbers = #tpu.dot_dimension_numbers<[1], [0], [0], [1], [0, 0, 1, 1], [], []>} : vector<16x128xf32>, vector<128x32xf32>, vector<16x32xf32> -> vector<16x32xf32>
    %c0_250 = arith.constant 0 : index
    %c0_251 = arith.constant 0 : index
    %592 = vector.load %arg21[%c0_250, %c0_251] : memref<1x32xf32, #tpu.memory_space<vmem>>, vector<1x32xf32>
    %593 = vector.broadcast %592 : vector<1x32xf32> to vector<16x32xf32>
    %594 = arith.addf %591, %593 : vector<16x32xf32>
    %595 = arith.addf %554, %594 : vector<16x32xf32>
    %c0_252 = arith.constant 0 : index
    %c0_253 = arith.constant 0 : index
    %596 = vector.load %arg9[%c0_252, %c0_253] : memref<1x32xf32, #tpu.memory_space<vmem>>, vector<1x32xf32>
    %c0_254 = arith.constant 0 : index
    %c0_255 = arith.constant 0 : index
    %597 = vector.load %arg8[%c0_254, %c0_255] : memref<1x32xf32, #tpu.memory_space<vmem>>, vector<1x32xf32>
    %cst_256 = arith.constant dense<0.000000e+00> : vector<16xf32>
    %598 = vector.multi_reduction <add>, %595, %cst_256 [1] : vector<16x32xf32> to vector<16xf32>
    %599 = vector.shape_cast %598 : vector<16xf32> to vector<16x1xf32>
    %cst_257 = arith.constant 3.200000e+01 : f32
    %600 = vector.broadcast %cst_257 : f32 to vector<16x1xf32>
    %601 = arith.divf %599, %600 : vector<16x1xf32>
    %602 = vector.broadcast %601 : vector<16x1xf32> to vector<16x32xf32>
    %603 = arith.subf %595, %602 : vector<16x32xf32>
    %604 = arith.mulf %603, %603 : vector<16x32xf32>
    %cst_258 = arith.constant dense<0.000000e+00> : vector<16xf32>
    %605 = vector.multi_reduction <add>, %604, %cst_258 [1] : vector<16x32xf32> to vector<16xf32>
    %606 = vector.shape_cast %605 : vector<16xf32> to vector<16x1xf32>
    %cst_259 = arith.constant 3.200000e+01 : f32
    %607 = vector.broadcast %cst_259 : f32 to vector<16x1xf32>
    %608 = arith.divf %606, %607 : vector<16x1xf32>
    %609 = vector.broadcast %601 : vector<16x1xf32> to vector<16x32xf32>
    %610 = arith.subf %595, %609 : vector<16x32xf32>
    %cst_260 = arith.constant 9.99999974E-6 : f32
    %611 = vector.broadcast %cst_260 : f32 to vector<16x1xf32>
    %612 = arith.addf %608, %611 : vector<16x1xf32>
    %613 = math.rsqrt %612 : vector<16x1xf32>
    %614 = vector.broadcast %613 : vector<16x1xf32> to vector<16x32xf32>
    %615 = arith.mulf %610, %614 : vector<16x32xf32>
    %616 = vector.broadcast %596 : vector<1x32xf32> to vector<16x32xf32>
    %617 = arith.mulf %615, %616 : vector<16x32xf32>
    %618 = vector.broadcast %597 : vector<1x32xf32> to vector<16x32xf32>
    %619 = arith.addf %617, %618 : vector<16x32xf32>
    %c0_261 = arith.constant 0 : index
    %c0_262 = arith.constant 0 : index
    %620 = vector.load %arg10[%c0_261, %c0_262] : memref<32x128xf32, #tpu.memory_space<vmem>>, vector<32x128xf32>
    %cst_263 = arith.constant dense<0.000000e+00> : vector<16x128xf32>
    %621 = tpu.matmul %619, %620, %cst_263 {dimension_numbers = #tpu.dot_dimension_numbers<[1], [0], [0], [1], [0, 0, 1, 1], [], []>} : vector<16x32xf32>, vector<32x128xf32>, vector<16x128xf32> -> vector<16x128xf32>
    %c0_264 = arith.constant 0 : index
    %c0_265 = arith.constant 0 : index
    %622 = vector.load %arg7[%c0_264, %c0_265] : memref<1x128xf32, #tpu.memory_space<vmem>>, vector<1x128xf32>
    %623 = vector.broadcast %622 : vector<1x128xf32> to vector<16x128xf32>
    %624 = arith.addf %621, %623 : vector<16x128xf32>
    %cst_266 = arith.constant dense<0xFF800000> : vector<16xf32>
    %625 = vector.multi_reduction <maximumf>, %624, %cst_266 [1] : vector<16x128xf32> to vector<16xf32>
    %626 = vector.shape_cast %625 : vector<16xf32> to vector<16x1xf32>
    %627 = vector.broadcast %626 : vector<16x1xf32> to vector<16x128xf32>
    %628 = arith.subf %624, %627 : vector<16x128xf32>
    %629 = math.exp %628 : vector<16x128xf32>
    %cst_267 = arith.constant dense<0.000000e+00> : vector<16xf32>
    %630 = vector.multi_reduction <add>, %629, %cst_267 [1] : vector<16x128xf32> to vector<16xf32>
    %631 = vector.shape_cast %630 : vector<16xf32> to vector<16x1xf32>
    %632 = tpu.reciprocal %631 {approx = true} : vector<16x1xf32> -> vector<16x1xf32>
    %633 = arith.mulf %631, %632 : vector<16x1xf32>
    %cst_268 = arith.constant 2.000000e+00 : f32
    %634 = vector.broadcast %cst_268 : f32 to vector<16x1xf32>
    %635 = arith.subf %634, %633 : vector<16x1xf32>
    %636 = arith.mulf %632, %635 : vector<16x1xf32>
    %637 = vector.broadcast %636 : vector<16x1xf32> to vector<16x128xf32>
    %638 = arith.mulf %629, %637 : vector<16x128xf32>
    %c0_269 = arith.constant 0 : index
    %c0_270 = arith.constant 0 : index
    %639 = vector.load %arg59[%c0_269, %c0_270] : memref<16x128xf32, #tpu.memory_space<vmem>>, vector<16x128xf32>
    tpu.vector_store %arg59[%c0_269, %c0_270], %638 {strides = array<i32>} : memref<16x128xf32, #tpu.memory_space<vmem>>, vector<16x128xf32>,
    return
  }
}

</mosaic_0001>

<bundles_post_ra>
// kernel: mm1_forward.1
= control target key start
LH: loop header
LB: loop body
LE: loop exit
PB: predicated region body
PF: predicated region fallthrough
CT: control target
= control target key end

     0   :  { %s4274_s6 = smov 1   ;;  %s4275_s10 = smov 2   ;;  %s5509_s0 = inlined_call_operand.smem [shape: u32[60], index: -1, kind: input, shape index: {}] }
   0x1   :  { %s4370_s5 = sld [smem:[%s5509_s0]]   ;;  %s4276_s14 = smov 3  }
   0x2   :  { %s4375_s9 = sld [smem:[%s5509_s0 + %s4274_s6]]   ;;  %s4277_s18 = smov 4  }
   0x3   :  { %s4380_s13 = sld [smem:[%s5509_s0 + %s4275_s10]]   ;;  %s4278_s22 = smov 5  }
   0x4   :  { %s4385_s17 = sld [smem:[%s5509_s0 + %s4276_s14]]   ;;  %s4279_s26 = smov 6  }
   0x5   :  { %s4390_s21 = sld [smem:[%s5509_s0 + %s4277_s18]]   ;;  %s4280_s30 = smov 7  }
   0x6   :  { %s4395_s25 = sld [smem:[%s5509_s0 + %s4278_s22]]   ;;  %s4281_s4 = smov 8  }
   0x7   :  { %5538 = sst [smem:[#allocation41_spill]] %s4370_s5  ;;  %s4282_s10 = smov 9  }
   0x8   :  { %5539 = sst [smem:[#allocation42_spill]] %s4375_s9  ;;  %s4283_s15 = smov 10  }
   0x9   :  { %5540 = sst [smem:[#allocation43_spill]] %s4380_s13  ;;  %s4284_s20 = smov 11  }
   0xa   :  { %5541 = sst [smem:[#allocation44_spill]] %s4385_s17  ;;  %s4286_s1 = smov 13  }
   0xb   :  { %5542 = sst [smem:[#allocation45_spill]] %s4390_s21  ;;  %s4287_s7 = smov 14  }
   0xc   :  { %5543 = sst [smem:[#allocation46_spill]] %s4395_s25  ;;  %s4289_s22 = smov 16  }
   0xd   :  { %s4400_s29 = sld [smem:[%s5509_s0 + %s4279_s26]]   ;;  %s4285_s26 = smov 12  }
   0xe   :  { %s4405_s3 = sld [smem:[%s5509_s0 + %s4280_s30]]   ;;  %s4290_s28 = smov 17  }
   0xf   :  { %s4410_s8 = sld [smem:[%s5509_s0 + %s4281_s4]]  }
  0x10   :  { %s4415_s14 = sld [smem:[%s5509_s0 + %s4282_s10]]  }
  0x11   :  { %s4420_s19 = sld [smem:[%s5509_s0 + %s4283_s15]]   ;;  %s4288_s15 = smov 15  }
  0x12   :  { %s4425_s24 = sld [smem:[%s5509_s0 + %s4284_s20]]  }
  0x13   :  { %5544 = sst [smem:[#allocation47_spill]] %s4400_s29 }
  0x14   :  { %5545 = sst [smem:[#allocation48_spill]] %s4405_s3 }
  0x15   :  { %5546 = sst [smem:[#allocation49_spill]] %s4410_s8 }
  0x16   :  { %5547 = sst [smem:[#allocation50_spill]] %s4415_s14 }
  0x17   :  { %5548 = sst [smem:[#allocation51_spill]] %s4420_s19 }
  0x18   :  { %5549 = sst [smem:[#allocation52_spill]] %s4425_s24 }
  0x19   :  { %s4430_s30 = sld [smem:[%s5509_s0 + %s4285_s26]]  }
  0x1a   :  { %s4435_s6 = sld [smem:[%s5509_s0 + %s4286_s1]]  }
  0x1b   :  { %s4440_s12 = sld [smem:[%s5509_s0 + %s4287_s7]]   ;;  %s4291_s7 = smov 18  }
  0x1c   :  { %s4445_s20 = sld [smem:[%s5509_s0 + %s4288_s15]]   ;;  %s4292_s15 = smov 19  }
  0x1d   :  { %s4450_s27 = sld [smem:[%s5509_s0 + %s4289_s22]]   ;;  %s4293_s22 = smov 20  }
  0x1e   :  { %s4455_s4 = sld [smem:[%s5509_s0 + %s4290_s28]]   ;;  %s4294_s28 = smov 21  }
  0x1f   :  { %5550 = sst [smem:[#allocation53_spill]] %s4430_s30 }
  0x20   :  { %5551 = sst [smem:[#allocation54_spill]] %s4435_s6 }
  0x21   :  { %5552 = sst [smem:[#allocation55_spill]] %s4440_s12 }
  0x22   :  { %5553 = sst [smem:[#allocation56_spill]] %s4445_s20 }
  0x23   :  { %5554 = sst [smem:[#allocation57_spill]] %s4450_s27 }
  0x24   :  { %5555 = sst [smem:[#allocation58_spill]] %s4455_s4 }
  0x25   :  { %s4460_s3 = sld [smem:[%s5509_s0 + %s4291_s7]]   ;;  %s4295_s7 = smov 22  }
  0x26   :  { %s4465_s8 = sld [smem:[%s5509_s0 + %s4292_s15]]   ;;  %s4296_s15 = smov 23  }
  0x27   :  { %s4470_s14 = sld [smem:[%s5509_s0 + %s4293_s22]]   ;;  %s4297_s22 = smov 24  }
  0x28   :  { %s4475_s19 = sld [smem:[%s5509_s0 + %s4294_s28]]   ;;  %s4298_s28 = smov 25  }
  0x29   :  { %s4480_s30 = sld [smem:[%s5509_s0 + %s4295_s7]]   ;;  %s4299_s7 = smov 26  }
  0x2a   :  { %s4485_s12 = sld [smem:[%s5509_s0 + %s4296_s15]]   ;;  %s4300_s15 = smov 27  }
  0x2b   :  { %5556 = sst [smem:[#allocation59_spill]] %s4460_s3 }
  0x2c   :  { %5557 = sst [smem:[#allocation60_spill]] %s4465_s8 }
  0x2d   :  { %5558 = sst [smem:[#allocation61_spill]] %s4470_s14 }
  0x2e   :  { %s4490_s14 = sld [smem:[%s5509_s0 + %s4297_s22]]   ;;  %s4301_s22 = smov 28  }
  0x2f   :  { %s4495_s20 = sld [smem:[%s5509_s0 + %s4298_s28]]   ;;  %s4302_s28 = smov 29  }
  0x30   :  { %s4500_s4 = sld [smem:[%s5509_s0 + %s4299_s7]]   ;;  %s4303_s7 = smov 30  }
  0x31   :  { %s4505_s24 = sld [smem:[%s5509_s0 + %s4300_s15]]   ;;  %s4304_s15 = smov 31  }
  0x32   :  { %s4510_s6 = sld [smem:[%s5509_s0 + %s4301_s22]]   ;;  %s4305_s22 = smov 32  }
  0x35   :  { %5559 = sst [smem:[#allocation62_spill]] %s4495_s20 }
  0x36   :  { %5560 = sst [smem:[#allocation63_spill]] %s4500_s4 }
  0x37   :  { %5561 = sst [smem:[#allocation64_spill]] %s4505_s24 }
  0x38   :  { %5562 = sst [smem:[#allocation65_spill]] %s4510_s6 }
  0x39   :  { %s4515_s20 = sld [smem:[%s5509_s0 + %s4302_s28]]   ;;  %s4306_s28 = smov 33  }
  0x3a   :  { %s4520_s4 = sld [smem:[%s5509_s0 + %s4303_s7]]   ;;  %s4307_s7 = smov 34  }
  0x3b   :  { %s4525_s24 = sld [smem:[%s5509_s0 + %s4304_s15]]   ;;  %s4308_s15 = smov 35  }
  0x3c   :  { %s4530_s6 = sld [smem:[%s5509_s0 + %s4305_s22]]   ;;  %s4309_s22 = smov 36  }
  0x3d   :  { %s4535_s27 = sld [smem:[%s5509_s0 + %s4306_s28]]   ;;  %s4310_s28 = smov 37  }
  0x3e   :  { %s4540_s3 = sld [smem:[%s5509_s0 + %s4307_s7]]   ;;  %s4311_s7 = smov 38  }
  0x3f   :  { %5563 = sst [smem:[#allocation66_spill]] %s4515_s20 }
  0x40   :  { %5564 = sst [smem:[#allocation67_spill]] %s4520_s4 }
  0x41   :  { %5565 = sst [smem:[#allocation68_spill]] %s4525_s24 }
  0x42   :  { %5566 = sst [smem:[#allocation69_spill]] %s4530_s6 }
  0x43   :  { %s4545_s29 = sld [smem:[%s5509_s0 + %s4308_s15]]   ;;  %s4312_s15 = smov 39  }
  0x44   :  { %5567 = sst [smem:[#allocation70_spill]] %s4540_s3 }
  0x45   :  { %s4550_s13 = sld [smem:[%s5509_s0 + %s4309_s22]]   ;;  %s4313_s22 = smov 40  }
  0x46   :  { %s4555_s17 = sld [smem:[%s5509_s0 + %s4310_s28]]   ;;  %s4314_s28 = smov 41  }
  0x47   :  { %s4560_s8 = sld [smem:[%s5509_s0 + %s4311_s7]]   ;;  %s4315_s7 = smov 42  }
  0x48   :  { %s4565_s25 = sld [smem:[%s5509_s0 + %s4312_s15]]   ;;  %s4316_s15 = smov 43  }
  0x49   :  { %s4570_s9 = sld [smem:[%s5509_s0 + %s4313_s22]]   ;;  %s4317_s22 = smov 44  }
  0x4a   :  { %s4575_s5 = sld [smem:[%s5509_s0 + %s4314_s28]]   ;;  %s4318_s28 = smov 45  }
  0x4b   :  { %s4580_s21 = sld [smem:[%s5509_s0 + %s4315_s7]]   ;;  %s4319_s7 = smov 46  }
  0x4c   :  { %s4585_s4 = sld [smem:[%s5509_s0 + %s4316_s15]]   ;;  %s4320_s15 = smov 47  }
  0x4d   :  { %s4590_s24 = sld [smem:[%s5509_s0 + %s4317_s22]]   ;;  %s4321_s22 = smov 48  }
  0x4e   :  { %s4595_s6 = sld [smem:[%s5509_s0 + %s4318_s28]]   ;;  %s4322_s28 = smov 49  }
  0x4f   :  { %5568 = sst [smem:[#allocation71_spill]] %s4570_s9 }
  0x50   :  { %5569 = sst [smem:[#allocation72_spill]] %s4575_s5 }
  0x51   :  { %5570 = sst [smem:[#allocation73_spill]] %s4580_s21 }
  0x52   :  { %s4600_s3 = sld [smem:[%s5509_s0 + %s4319_s7]]   ;;  %s4323_s7 = smov 50  }
  0x53   :  { %5571 = sst [smem:[#allocation74_spill]] %s4590_s24 }
  0x54   :  { %s4605_s5 = sld [smem:[%s5509_s0 + %s4320_s15]]   ;;  %s4324_s15 = smov 51  }
  0x55   :  { %s4610_s9 = sld [smem:[%s5509_s0 + %s4321_s22]]   ;;  %s4325_s22 = smov 52  }
  0x56   :  { %s4615_s20 = sld [smem:[%s5509_s0 + %s4322_s28]]   ;;  %s4326_s28 = smov 53  }
  0x58   :  { %5572 = sst [smem:[#allocation75_spill]] %s4600_s3 }
  0x59   :  { %s4620_s3 = sld [smem:[%s5509_s0 + %s4323_s7]]   ;;  %s4327_s7 = smov 54  }
  0x5a   :  { %5573 = sst [smem:[#allocation76_spill]] %s4605_s5 }
  0x5b   :  { %5574 = sst [smem:[#allocation77_spill]] %s4610_s9 }
  0x5c   :  { %5575 = sst [smem:[#allocation78_spill]] %s4615_s20 }
  0x5d   :  { %s4625_s5 = sld [smem:[%s5509_s0 + %s4324_s15]]   ;;  %s4328_s15 = smov 55  }
  0x5e   :  { %s4630_s9 = sld [smem:[%s5509_s0 + %s4325_s22]]   ;;  %s4329_s22 = smov 56  }
  0x5f   :  { %5576 = sst [smem:[#allocation79_spill]] %s4620_s3 }
  0x60   :  { %s4635_s20 = sld [smem:[%s5509_s0 + %s4326_s28]]   ;;  %s4330_s28 = smov 57  }
  0x61   :  { %s4640_s3 = sld [smem:[%s5509_s0 + %s4327_s7]]   ;;  %s4331_s7 = smov 58  }
  0x62   :  { %s4645_s24 = sld [smem:[%s5509_s0 + %s4328_s15]]   ;;  %s4332_s15 = smov 59  }
  0x63   :  { %s4665_s21 = sld [smem:[%s5509_s0 + %s4332_s15]]  }
  0x64   :  { %5577 = sst [smem:[#allocation80_spill]] %s4630_s9 }
  0x65   :  { %s4650_s9 = sld [smem:[%s5509_s0 + %s4329_s22]]  }
  0x66   :  { %5578 = sst [smem:[#allocation81_spill]] %s4635_s20 }
  0x67   :  { %5579 = sst [smem:[#allocation82_spill]] %s4640_s3 }
  0x68   :  { %s4655_s20 = sld [smem:[%s5509_s0 + %s4330_s28]]  }
  0x69   :  { %s4660_s3 = sld [smem:[%s5509_s0 + %s4331_s7]]  }
  0x6a   :  { %124 = vsyncpa [#allocation3], 0 }
  0x6b   :  { %125 = vsyncpa [#allocation5], 0 }
  0x6c   :  { %126 = vsyncpa [#allocation8], 0 }
  0x6d   :  { %127 = vsyncpa [#allocation11], 0 }
  0x6e   :  { %128 = vsyncpa [#allocation14], 0 }
  0x6f   :  { %129 = vsyncpa [#allocation17], 0 }
  0x70   :  { %130 = vsyncpa [#allocation20], 0 }
  0x71   :  { %131 = vsyncpa [#allocation23], 0 }
  0x72   :  { %132 = vsyncpa [#allocation26], 0  ;;  %s192_s22 = sshll.u32 %s4480_s30, 4  ;;  %s193_s22 = int_to_ptr.hbm [resolvable:$true] %s192_s22 }
  0x73   :  { %133 = vsyncpa [#allocation29], 0  ;;  %s4333_s23 = smov [#allocation4]   ;;  %s214_s0 = sshll.u32 %s4490_s14, 4  ;;  %s215_s0 = int_to_ptr.hbm [resolvable:$true] %s214_s0 }
  0x74   :  { %s194_s26 = sshll.u32 %s4333_s23, 4  ;;  %s3798_s28 = sshra.s32 %s193_s22, 4  ;;  %s195_s26 = int_to_ptr.vmem [resolvable:$true] %s194_s26  ;;  %s3799_s28 = int_to_ptr.hbm [resolvable:$true] %s3798_s28 }
  0x75   :  { %s3800_s1 = scalar_lea.hbm %s3799_s28, 1  ;;  %s3802_s2 = scalar_lea.hbm %s4480_s30, 1 }
  0x76   :  { %p3801_p0 = scmp.ne.s32.totalorder %s3799_s28, %s3800_s1  ;;  %p3803_p1 = scmp.lt.s32.totalorder %s3799_s28, %s4480_s30 }
  0x77   :  { %p3804_p2 = scmp.lt.s32.totalorder %s3802_s2, %s3800_s1 }
  0x79   :  { %p3805_p3 = por %p3804_p2, %p3803_p1 }
  0x7b   :  { %p3806_p4 = pnand %p3805_p3, %p3801_p0 }
  0x7d   :  { %3809 = shalt.err (!%p3806_p4)
}
  0x7e   :  { %197 = dma.hbm_to_vmem [thread:$0]  %s193_s22, 16, %s195_s26, [#allocation5]  }
  0x7f   :  { %s4334_s7 = smov [#allocation7]   ;;  %s254_s11 = sshll.u32 %s4545_s29, 4  ;;  %s255_s11 = int_to_ptr.hbm [resolvable:$true] %s254_s11 }
  0x80   :  { %s216_s10 = sshll.u32 %s4334_s7, 4  ;;  %s3822_s15 = sshra.s32 %s215_s0, 4  ;;  %s217_s10 = int_to_ptr.vmem [resolvable:$true] %s216_s10  ;;  %s3823_s15 = int_to_ptr.hbm [resolvable:$true] %s3822_s15 }
  0x81   :  { %s3824_s16 = scalar_lea.hbm %s3823_s15, 1  ;;  %s3826_s18 = scalar_lea.hbm %s4490_s14, 1 }
  0x82   :  { %p3825_p5 = scmp.ne.s32.totalorder %s3823_s15, %s3824_s16  ;;  %p3827_p6 = scmp.lt.s32.totalorder %s3823_s15, %s4490_s14 }
  0x83   :  { %p3828_p7 = scmp.lt.s32.totalorder %s3826_s18, %s3824_s16 }
  0x85   :  { %p3829_p8 = por %p3828_p7, %p3827_p6 }
  0x87   :  { %p3830_p9 = pnand %p3829_p8, %p3825_p5 }
  0x89   :  { %3833 = shalt.err (!%p3830_p9)
}
  0x8a   :  { %219 = dma.hbm_to_vmem [thread:$0]  %s215_s0, 16, %s217_s10, [#allocation8]  }
  0x8b   :  { %s276_s30 = sshll.u32 %s4555_s17, 4  ;;  %s4335_s22 = smov [#allocation10]   ;;  %s277_s30 = int_to_ptr.hbm [resolvable:$true] %s276_s30 }
  0x8c   :  { %s256_s23 = sshll.u32 %s4335_s22, 4  ;;  %s3846_s26 = sshra.s32 %s255_s11, 4  ;;  %s257_s23 = int_to_ptr.vmem [resolvable:$true] %s256_s23  ;;  %s3847_s26 = int_to_ptr.hbm [resolvable:$true] %s3846_s26 }
  0x8d   :  { %s3848_s28 = scalar_lea.hbm %s3847_s26, 1  ;;  %s3850_s1 = scalar_lea.hbm %s4545_s29, 1 }
  0x8e   :  { %p3849_p10 = scmp.ne.s32.totalorder %s3847_s26, %s3848_s28  ;;  %p3851_p11 = scmp.lt.s32.totalorder %s3847_s26, %s4545_s29 }
  0x8f   :  { %p3852_p12 = scmp.lt.s32.totalorder %s3850_s1, %s3848_s28 }
  0x91   :  { %p3853_p13 = por %p3852_p12, %p3851_p11 }
  0x93   :  { %p3854_p0 = pnand %p3853_p13, %p3849_p10 }
  0x95   :  { %3857 = shalt.err (!%p3854_p0)
}
  0x96   :  { %259 = dma.hbm_to_vmem [thread:$0]  %s255_s11, 16, %s257_s23, [#allocation11]  }
  0x97   :  { %s4336_s14 = smov [#allocation13]   ;;  %s298_s2 = sshll.u32 %s4565_s25, 4  ;;  %s299_s2 = int_to_ptr.hbm [resolvable:$true] %s298_s2 }
  0x98   :  { %s278_s0 = sshll.u32 %s4336_s14, 4  ;;  %s3870_s7 = sshra.s32 %s277_s30, 4  ;;  %s279_s0 = int_to_ptr.vmem [resolvable:$true] %s278_s0  ;;  %s3871_s7 = int_to_ptr.hbm [resolvable:$true] %s3870_s7 }
  0x99   :  { %s3872_s10 = scalar_lea.hbm %s3871_s7, 1  ;;  %s3874_s15 = scalar_lea.hbm %s4555_s17, 1 }
  0x9a   :  { %p3873_p1 = scmp.ne.s32.totalorder %s3871_s7, %s3872_s10  ;;  %p3875_p2 = scmp.lt.s32.totalorder %s3871_s7, %s4555_s17 }
  0x9b   :  { %p3876_p3 = scmp.lt.s32.totalorder %s3874_s15, %s3872_s10 }
  0x9d   :  { %p3877_p4 = por %p3876_p3, %p3875_p2 }
  0x9f   :  { %p3878_p5 = pnand %p3877_p4, %p3873_p1 }
  0xa1   :  { %3881 = shalt.err (!%p3878_p5)
}
  0xa2   :  { %281 = dma.hbm_to_vmem [thread:$0]  %s277_s30, 16, %s279_s0, [#allocation14]  }
  0xa3   :  { %s324_s29 = sshll.u32 %s4585_s4, 4  ;;  %s4337_s11 = smov [#allocation16]   ;;  %s325_s29 = int_to_ptr.hbm [resolvable:$true] %s324_s29 }
  0xa4   :  { %s300_s16 = sshll.u32 %s4337_s11, 4  ;;  %s3894_s18 = sshra.s32 %s299_s2, 4  ;;  %s301_s16 = int_to_ptr.vmem [resolvable:$true] %s300_s16  ;;  %s3895_s18 = int_to_ptr.hbm [resolvable:$true] %s3894_s18 }
  0xa5   :  { %s3896_s22 = scalar_lea.hbm %s3895_s18, 1  ;;  %s3898_s23 = scalar_lea.hbm %s4565_s25, 1 }
  0xa6   :  { %p3897_p6 = scmp.ne.s32.totalorder %s3895_s18, %s3896_s22  ;;  %p3899_p7 = scmp.lt.s32.totalorder %s3895_s18, %s4565_s25 }
  0xa7   :  { %p3900_p8 = scmp.lt.s32.totalorder %s3898_s23, %s3896_s22 }
  0xa9   :  { %p3901_p9 = por %p3900_p8, %p3899_p7 }
  0xab   :  { %p3902_p10 = pnand %p3901_p9, %p3897_p6 }
  0xad   :  { %3905 = shalt.err (!%p3902_p10)
}
  0xae   :  { %303 = dma.hbm_to_vmem [thread:$0]  %s299_s2, 16, %s301_s16, [#allocation17]  }
  0xaf   :  { %s4338_s17 = smov [#allocation19]   ;;  %s346_s26 = sshll.u32 %s4595_s6, 4  ;;  %s347_s26 = int_to_ptr.hbm [resolvable:$true] %s346_s26 }
  0xb0   :  { %s326_s30 = sshll.u32 %s4338_s17, 4  ;;  %s3918_s28 = sshra.s32 %s325_s29, 4  ;;  %s327_s30 = int_to_ptr.vmem [resolvable:$true] %s326_s30  ;;  %s3919_s28 = int_to_ptr.hbm [resolvable:$true] %s3918_s28 }
  0xb1   :  { %s3920_s1 = scalar_lea.hbm %s3919_s28, 1  ;;  %s3922_s14 = scalar_lea.hbm %s4585_s4, 1 }
  0xb2   :  { %p3921_p11 = scmp.ne.s32.totalorder %s3919_s28, %s3920_s1  ;;  %p3923_p12 = scmp.lt.s32.totalorder %s3919_s28, %s4585_s4 }
  0xb3   :  { %p3924_p13 = scmp.lt.s32.totalorder %s3922_s14, %s3920_s1 }
  0xb5   :  { %p3925_p0 = por %p3924_p13, %p3923_p12 }
  0xb7   :  { %p3926_p1 = pnand %p3925_p0, %p3921_p11 }
  0xb9   :  { %3929 = shalt.err (!%p3926_p1)
}
  0xba   :  { %329 = dma.hbm_to_vmem [thread:$0]  %s325_s29, 16, %s327_s30, [#allocation20]  }
  0xbb   :  { %s376_s25 = sshll.u32 %s4625_s5, 4  ;;  %s4339_s0 = smov [#allocation22]   ;;  %s377_s25 = int_to_ptr.hbm [resolvable:$true] %s376_s25 }
  0xbc   :  { %s348_s2 = sshll.u32 %s4339_s0, 4  ;;  %s3942_s7 = sshra.s32 %s347_s26, 4  ;;  %s349_s2 = int_to_ptr.vmem [resolvable:$true] %s348_s2  ;;  %s3943_s7 = int_to_ptr.hbm [resolvable:$true] %s3942_s7 }
  0xbd   :  { %s3944_s10 = scalar_lea.hbm %s3943_s7, 1  ;;  %s3946_s15 = scalar_lea.hbm %s4595_s6, 1 }
  0xbe   :  { %p3945_p2 = scmp.ne.s32.totalorder %s3943_s7, %s3944_s10  ;;  %p3947_p3 = scmp.lt.s32.totalorder %s3943_s7, %s4595_s6 }
  0xbf   :  { %p3948_p4 = scmp.lt.s32.totalorder %s3946_s15, %s3944_s10 }
  0xc1   :  { %p3949_p5 = por %p3948_p4, %p3947_p3 }
  0xc3   :  { %p3950_p6 = pnand %p3949_p5, %p3945_p2 }
  0xc5   :  { %3953 = shalt.err (!%p3950_p6)
}
  0xc6   :  { %351 = dma.hbm_to_vmem [thread:$0]  %s347_s26, 16, %s349_s2, [#allocation23]  }
  0xc7   :  { %s4340_s4 = smov [#allocation25]   ;;  %s402_s11 = sshll.u32 %s4645_s24, 4  ;;  %s403_s11 = int_to_ptr.hbm [resolvable:$true] %s402_s11 }
  0xc8   :  { %s378_s29 = sshll.u32 %s4340_s4, 4  ;;  %s3966_s16 = sshra.s32 %s377_s25, 4  ;;  %s379_s29 = int_to_ptr.vmem [resolvable:$true] %s378_s29  ;;  %s3967_s16 = int_to_ptr.hbm [resolvable:$true] %s3966_s16 }
  0xc9   :  { %s3968_s18 = scalar_lea.hbm %s3967_s16, 1  ;;  %s3970_s22 = scalar_lea.hbm %s4625_s5, 1 }
  0xca   :  { %p3969_p7 = scmp.ne.s32.totalorder %s3967_s16, %s3968_s18  ;;  %p3971_p8 = scmp.lt.s32.totalorder %s3967_s16, %s4625_s5 }
  0xcb   :  { %p3972_p9 = scmp.lt.s32.totalorder %s3970_s22, %s3968_s18 }
  0xcd   :  { %p3973_p10 = por %p3972_p9, %p3971_p8 }
  0xcf   :  { %p3974_p11 = pnand %p3973_p10, %p3969_p7 }
  0xd1   :  { %3977 = shalt.err (!%p3974_p11)
}
  0xd2   :  { %381 = dma.hbm_to_vmem [thread:$0]  %s377_s25, 16, %s379_s29, [#allocation26]  }
  0xd3   :  { %s181_s6 = sshll.u32 %s4475_s19, 4  ;;  %s4341_s23 = smov [#allocation28]   ;;  %s182_s6 = int_to_ptr.hbm [resolvable:$true] %s181_s6 }
  0xd4   :  { %s404_s17 = sshll.u32 %s4341_s23, 4  ;;  %s3990_s30 = sshra.s32 %s403_s11, 4  ;;  %s405_s17 = int_to_ptr.vmem [resolvable:$true] %s404_s17  ;;  %s3991_s30 = int_to_ptr.hbm [resolvable:$true] %s3990_s30 }
  0xd5   :  { %s3992_s26 = scalar_lea.hbm %s3991_s30, 1  ;;  %s3994_s28 = scalar_lea.hbm %s4645_s24, 1 }
  0xd6   :  { %p3993_p12 = scmp.ne.s32.totalorder %s3991_s30, %s3992_s26  ;;  %p3995_p13 = scmp.lt.s32.totalorder %s3991_s30, %s4645_s24 }
  0xd7   :  { %p3996_p0 = scmp.lt.s32.totalorder %s3994_s28, %s3992_s26 }
  0xd9   :  { %p3997_p1 = por %p3996_p0, %p3995_p13 }
  0xdb   :  { %p3998_p2 = pnand %p3997_p1, %p3993_p12 }
  0xdd   :  { %4001 = shalt.err (!%p3998_p2)
}
  0xde   :  { %407 = dma.hbm_to_vmem [thread:$0]  %s403_s11, 16, %s405_s17, [#allocation29]  }
  0xdf   :  { %s4342_s5 = smov [#allocation2]   ;;  %s203_s14 = sshll.u32 %s4485_s12, 4  ;;  %s204_s14 = int_to_ptr.hbm [resolvable:$true] %s203_s14 }
  0xe0   :  { %s183_s1 = sshll.u32 %s4342_s5, 4  ;;  %s4014_s25 = sshra.s32 %s182_s6, 4  ;;  %s184_s1 = int_to_ptr.vmem [resolvable:$true] %s183_s1  ;;  %s4015_s25 = int_to_ptr.hbm [resolvable:$true] %s4014_s25 }
  0xe1   :  { %s4016_s0 = scalar_lea.hbm %s4015_s25, 1  ;;  %s4018_s2 = scalar_lea.hbm %s4475_s19, 1 }
  0xe2   :  { %p4017_p3 = scmp.ne.s32.totalorder %s4015_s25, %s4016_s0  ;;  %p4019_p4 = scmp.lt.s32.totalorder %s4015_s25, %s4475_s19 }
  0xe3   :  { %p4020_p5 = scmp.lt.s32.totalorder %s4018_s2, %s4016_s0 }
  0xe5   :  { %p4021_p6 = por %p4020_p5, %p4019_p4 }
  0xe7   :  { %p4022_p7 = pnand %p4021_p6, %p4017_p3 }
  0xe9   :  { %4025 = shalt.err (!%p4022_p7)
}
  0xea   :  { %186 = dma.hbm_to_vmem [thread:$0]  %s182_s6, 16, %s184_s1, [#allocation3]  }
  0xeb   :  { %s241_s24 = sshll.u32 %s4535_s27, 4  ;;  %s4343_s7 = smov [#allocation6]   ;;  %s242_s24 = int_to_ptr.hbm [resolvable:$true] %s241_s24 }
  0xec   :  { %s205_s10 = sshll.u32 %s4343_s7, 4  ;;  %s4038_s15 = sshra.s32 %s204_s14, 4  ;;  %s206_s10 = int_to_ptr.vmem [resolvable:$true] %s205_s10  ;;  %s4039_s15 = int_to_ptr.hbm [resolvable:$true] %s4038_s15 }
  0xed   :  { %s4040_s4 = scalar_lea.hbm %s4039_s15, 1  ;;  %s4042_s29 = scalar_lea.hbm %s4485_s12, 1 }
  0xee   :  { %p4041_p8 = scmp.ne.s32.totalorder %s4039_s15, %s4040_s4  ;;  %p4043_p9 = scmp.lt.s32.totalorder %s4039_s15, %s4485_s12 }
  0xef   :  { %p4044_p10 = scmp.lt.s32.totalorder %s4042_s29, %s4040_s4 }
  0xf1   :  { %p4045_p11 = por %p4044_p10, %p4043_p9 }
  0xf3   :  { %p4046_p12 = pnand %p4045_p11, %p4041_p8 }
  0xf5   :  { %4049 = shalt.err (!%p4046_p12)
}
  0xf6   :  { %208 = dma.hbm_to_vmem [thread:$0]  %s204_s14, 16, %s206_s10, [#allocation5]  }
  0xf7   :  { %s4344_s19 = smov [#allocation9]   ;;  %s265_s16 = sshll.u32 %s4550_s13, 4  ;;  %s266_s16 = int_to_ptr.hbm [resolvable:$true] %s265_s16 }
  0xf8   :  { %s243_s11 = sshll.u32 %s4344_s19, 4  ;;  %s4062_s18 = sshra.s32 %s242_s24, 4  ;;  %s244_s11 = int_to_ptr.vmem [resolvable:$true] %s243_s11  ;;  %s4063_s18 = int_to_ptr.hbm [resolvable:$true] %s4062_s18 }
  0xf9   :  { %s4064_s22 = scalar_lea.hbm %s4063_s18, 1  ;;  %s4066_s6 = scalar_lea.hbm %s4535_s27, 1 }
  0xfa   :  { %p4065_p13 = scmp.ne.s32.totalorder %s4063_s18, %s4064_s22  ;;  %p4067_p0 = scmp.lt.s32.totalorder %s4063_s18, %s4535_s27 }
  0xfb   :  { %p4068_p1 = scmp.lt.s32.totalorder %s4066_s6, %s4064_s22 }
  0xfd   :  { %p4069_p2 = por %p4068_p1, %p4067_p0 }
  0xff   :  { %p4070_p3 = pnand %p4069_p2, %p4065_p13 }
 0x101   :  { %4073 = shalt.err (!%p4070_p3)
}
 0x102   :  { %246 = dma.hbm_to_vmem [thread:$0]  %s242_s24, 16, %s244_s11, [#allocation8]  }
 0x103   :  { %s287_s12 = sshll.u32 %s4560_s8, 4  ;;  %s4345_s23 = smov [#allocation12]   ;;  %s288_s12 = int_to_ptr.hbm [resolvable:$true] %s287_s12 }
 0x104   :  { %s267_s17 = sshll.u32 %s4345_s23, 4  ;;  %s4086_s30 = sshra.s32 %s266_s16, 4  ;;  %s268_s17 = int_to_ptr.vmem [resolvable:$true] %s267_s17  ;;  %s4087_s30 = int_to_ptr.hbm [resolvable:$true] %s4086_s30 }
 0x105   :  { %s4088_s26 = scalar_lea.hbm %s4087_s30, 1  ;;  %s4090_s28 = scalar_lea.hbm %s4550_s13, 1 }
 0x106   :  { %p4089_p4 = scmp.ne.s32.totalorder %s4087_s30, %s4088_s26  ;;  %p4091_p5 = scmp.lt.s32.totalorder %s4087_s30, %s4550_s13 }
 0x107   :  { %p4092_p6 = scmp.lt.s32.totalorder %s4090_s28, %s4088_s26 }
 0x109   :  { %p4093_p7 = por %p4092_p6, %p4091_p5 }
 0x10b   :  { %p4094_p8 = pnand %p4093_p7, %p4089_p4 }
 0x10d   :  { %4097 = shalt.err (!%p4094_p8)
}
 0x10e   :  { %270 = dma.hbm_to_vmem [thread:$0]  %s266_s16, 16, %s268_s17, [#allocation11]  }
 0x10f   :  { %s5580_s27 = sld [smem:[#allocation73_spill]]  ;;  %s4346_s5 = smov [#allocation15]  }
 0x110   :  { %s289_s1 = sshll.u32 %s4346_s5, 4  ;;  %s4110_s25 = sshra.s32 %s288_s12, 4  ;;  %s290_s1 = int_to_ptr.vmem [resolvable:$true] %s289_s1  ;;  %s4111_s25 = int_to_ptr.hbm [resolvable:$true] %s4110_s25 }
 0x111   :  { %s4112_s0 = scalar_lea.hbm %s4111_s25, 1  ;;  %s4114_s2 = scalar_lea.hbm %s4560_s8, 1 }
 0x112   :  { %p4113_p9 = scmp.ne.s32.totalorder %s4111_s25, %s4112_s0  ;;  %p4115_p10 = scmp.lt.s32.totalorder %s4111_s25, %s4560_s8 }
 0x113   :  { %p4116_p11 = scmp.lt.s32.totalorder %s4114_s2, %s4112_s0 }
 0x115   :  { %s313_s14 = sshll.u32 %s5580_s27, 4  ;;  %p4117_p12 = por %p4116_p11, %p4115_p10  ;;  %s314_s14 = int_to_ptr.hbm [resolvable:$true] %s313_s14 }
 0x117   :  { %p4118_p13 = pnand %p4117_p12, %p4113_p9 }
 0x119   :  { %4121 = shalt.err (!%p4118_p13)
}
 0x11a   :  { %292 = dma.hbm_to_vmem [thread:$0]  %s288_s12, 16, %s290_s1, [#allocation14]  }
 0x11b   :  { %s5581_s13 = sld [smem:[#allocation74_spill]]  ;;  %s4347_s7 = smov [#allocation18]  }
 0x11c   :  { %s315_s10 = sshll.u32 %s4347_s7, 4  ;;  %s4134_s15 = sshra.s32 %s314_s14, 4  ;;  %s316_s10 = int_to_ptr.vmem [resolvable:$true] %s315_s10  ;;  %s4135_s15 = int_to_ptr.hbm [resolvable:$true] %s4134_s15 }
 0x11d   :  { %s4136_s4 = scalar_lea.hbm %s4135_s15, 1  ;;  %s4138_s29 = scalar_lea.hbm %s5580_s27, 1 }
 0x11e   :  { %p4137_p0 = scmp.ne.s32.totalorder %s4135_s15, %s4136_s4  ;;  %p4139_p1 = scmp.lt.s32.totalorder %s4135_s15, %s5580_s27 }
 0x11f   :  { %p4140_p2 = scmp.lt.s32.totalorder %s4138_s29, %s4136_s4 }
 0x121   :  { %s335_s24 = sshll.u32 %s5581_s13, 4  ;;  %p4141_p3 = por %p4140_p2, %p4139_p1  ;;  %s336_s24 = int_to_ptr.hbm [resolvable:$true] %s335_s24 }
 0x123   :  { %p4142_p4 = pnand %p4141_p3, %p4137_p0 }
 0x125   :  { %4145 = shalt.err (!%p4142_p4)
}
 0x126   :  { %318 = dma.hbm_to_vmem [thread:$0]  %s314_s14, 16, %s316_s10, [#allocation17]  }
 0x127   :  { %s5582_s8 = sld [smem:[#allocation77_spill]]  ;;  %s4348_s19 = smov [#allocation21]  }
 0x128   :  { %s337_s11 = sshll.u32 %s4348_s19, 4  ;;  %s4158_s18 = sshra.s32 %s336_s24, 4  ;;  %s338_s11 = int_to_ptr.vmem [resolvable:$true] %s337_s11  ;;  %s4159_s18 = int_to_ptr.hbm [resolvable:$true] %s4158_s18 }
 0x129   :  { %s4160_s22 = scalar_lea.hbm %s4159_s18, 1  ;;  %s4162_s6 = scalar_lea.hbm %s5581_s13, 1 }
 0x12a   :  { %p4161_p5 = scmp.ne.s32.totalorder %s4159_s18, %s4160_s22  ;;  %p4163_p6 = scmp.lt.s32.totalorder %s4159_s18, %s5581_s13 }
 0x12b   :  { %p4164_p7 = scmp.lt.s32.totalorder %s4162_s6, %s4160_s22 }
 0x12d   :  { %s361_s16 = sshll.u32 %s5582_s8, 4  ;;  %p4165_p8 = por %p4164_p7, %p4163_p6  ;;  %s362_s16 = int_to_ptr.hbm [resolvable:$true] %s361_s16 }
 0x12f   :  { %p4166_p9 = pnand %p4165_p8, %p4161_p5 }
 0x131   :  { %4169 = shalt.err (!%p4166_p9)
}
 0x132   :  { %340 = dma.hbm_to_vmem [thread:$0]  %s336_s24, 16, %s338_s11, [#allocation20]  }
 0x133   :  { %s5583_s12 = sld [smem:[#allocation80_spill]]  ;;  %s4349_s17 = smov [#allocation24]  }
 0x134   :  { %s363_s30 = sshll.u32 %s4349_s17, 4  ;;  %s4182_s26 = sshra.s32 %s362_s16, 4  ;;  %s364_s30 = int_to_ptr.vmem [resolvable:$true] %s363_s30  ;;  %s4183_s26 = int_to_ptr.hbm [resolvable:$true] %s4182_s26 }
 0x135   :  { %s4184_s28 = scalar_lea.hbm %s4183_s26, 1  ;;  %s4186_s27 = scalar_lea.hbm %s5582_s8, 1 }
 0x136   :  { %p4185_p10 = scmp.ne.s32.totalorder %s4183_s26, %s4184_s28  ;;  %p4187_p11 = scmp.lt.s32.totalorder %s4183_s26, %s5582_s8 }
 0x137   :  { %p4188_p12 = scmp.lt.s32.totalorder %s4186_s27, %s4184_s28 }
 0x139   :  { %s387_s23 = sshll.u32 %s5583_s12, 4  ;;  %p4189_p13 = por %p4188_p12, %p4187_p11  ;;  %s388_s23 = int_to_ptr.hbm [resolvable:$true] %s387_s23 }
 0x13b   :  { %p4190_p0 = pnand %p4189_p13, %p4185_p10 }
 0x13d   :  { %4193 = shalt.err (!%p4190_p0)
}
 0x13e   :  { %366 = dma.hbm_to_vmem [thread:$0]  %s362_s16, 16, %s364_s30, [#allocation23]  }
 0x13f   :  { %s4350_s5 = smov [#allocation27]   ;;  %s413_s14 = sshll.u32 %s4650_s9, 4  ;;  %s414_s14 = int_to_ptr.hbm [resolvable:$true] %s413_s14 }
 0x140   :  { %s389_s1 = sshll.u32 %s4350_s5, 4  ;;  %s4206_s25 = sshra.s32 %s388_s23, 4  ;;  %s390_s1 = int_to_ptr.vmem [resolvable:$true] %s389_s1  ;;  %s4207_s25 = int_to_ptr.hbm [resolvable:$true] %s4206_s25 }
 0x141   :  { %s4208_s0 = scalar_lea.hbm %s4207_s25, 1  ;;  %s4210_s2 = scalar_lea.hbm %s5583_s12, 1 }
 0x142   :  { %p4209_p1 = scmp.ne.s32.totalorder %s4207_s25, %s4208_s0  ;;  %p4211_p2 = scmp.lt.s32.totalorder %s4207_s25, %s5583_s12 }
 0x143   :  { %p4212_p3 = scmp.lt.s32.totalorder %s4210_s2, %s4208_s0 }
 0x145   :  { %p4213_p4 = por %p4212_p3, %p4211_p2 }
 0x147   :  { %p4214_p5 = pnand %p4213_p4, %p4209_p1 }
 0x149   :  { %4217 = shalt.err (!%p4214_p5)
}
 0x14a   :  { %392 = dma.hbm_to_vmem [thread:$0]  %s388_s23, 16, %s390_s1, [#allocation26]  }
 0x14b   :  { %s4351_s13 = smov [#allocation30]   ;;  %s4230_s7 = sshra.s32 %s414_s14, 4  ;;  %s4231_s7 = int_to_ptr.hbm [resolvable:$true] %s4230_s7 }
 0x14c   :  { %s415_s24 = sshll.u32 %s4351_s13, 4  ;;  %s4232_s10 = scalar_lea.hbm %s4231_s7, 1  ;;  %s416_s24 = int_to_ptr.vmem [resolvable:$true] %s415_s24 }
 0x14d   :  { %p4233_p6 = scmp.ne.s32.totalorder %s4231_s7, %s4232_s10  ;;  %s4234_s15 = scalar_lea.hbm %s4650_s9, 1 }
 0x14e   :  { %p4235_p7 = scmp.lt.s32.totalorder %s4231_s7, %s4650_s9  ;;  %p4236_p8 = scmp.lt.s32.totalorder %s4234_s15, %s4232_s10 }
 0x150   :  { %p4237_p9 = por %p4236_p8, %p4235_p7 }
 0x152   :  { %p4238_p10 = pnand %p4237_p9, %p4233_p6 }
 0x154   :  { %4241 = shalt.err (!%p4238_p10)
}
 0x155   :  { %418 = dma.hbm_to_vmem [thread:$0]  %s414_s14, 16, %s416_s24, [#allocation29]  }
 0x156   :  { %4254 = dma.done.wait [#allocation3], 16  }
 0x157   :  { %4255 = vsyncadd [#allocation3], 4294967280 }
 0x158   :  { %4256 = dma.done.wait [#allocation5], 32  }
 0x159   :  { %4257 = vsyncadd [#allocation5], 4294967264 }
 0x15a   :  { %4258 = dma.done.wait [#allocation8], 32  }
 0x15b   :  { %4259 = vsyncadd [#allocation8], 4294967264 }
 0x15c   :  { %4260 = dma.done.wait [#allocation11], 32  }
 0x15d   :  { %4261 = vsyncadd [#allocation11], 4294967264 }
 0x15e   :  { %4262 = dma.done.wait [#allocation14], 32  }
 0x15f   :  { %4263 = vsyncadd [#allocation14], 4294967264 }
 0x160   :  { %4264 = dma.done.wait [#allocation17], 32  }
 0x161   :  { %4265 = vsyncadd [#allocation17], 4294967264 }
 0x162   :  { %4266 = dma.done.wait [#allocation20], 32  }
 0x163   :  { %4267 = vsyncadd [#allocation20], 4294967264 }
 0x164   :  { %4268 = dma.done.wait [#allocation23], 32  }
 0x165   :  { %4269 = vsyncadd [#allocation23], 4294967264 }
 0x166   :  { %4270 = dma.done.wait [#allocation26], 32  }
 0x167   :  { %4271 = vsyncadd [#allocation26], 4294967264 }
 0x168   :  { %4272 = dma.done.wait [#allocation29], 32  }
 0x169   :  { %4273 = vsyncadd [#allocation29], 4294967264  ;;  %s5584_s9 = sld [smem:[#allocation66_spill]]  ;;  %v4352_v11 = vmov 768.0   ;;  %vm819_vm4 = vcmask 261120   ;;  %s4354_s16 = smov 112  }
 0x16a   :  { %s5585_s4 = sld [smem:[#allocation81_spill]]  ;;  %3658 = vrcp.f32 %v4352_v11  ;;  %s4355_s18 = smov 80   ;;  %vm959_vm15 = vcmask 130048  }
 0x16b   :  { %s5586_s29 = sld [smem:[#allocation79_spill]]  ;;  %s4356_s22 = smov 96  }
 0x16c   :  { %s5587_s8 = sld [smem:[#allocation78_spill]]  ;;  %s4357_s6 = smov 64  }
 0x16d   :  { %s5588_s19 = sld [smem:[#allocation82_spill]]  ;;  %s4358_s12 = smov 48  }
 0x16e   :  { %s5589_s11 = sld [smem:[#allocation76_spill]]  ;;  %s4359_s23 = smov 16  }
 0x16f   :  { %v4725_v0 = vld [vmem:[%s5584_s9] sm:$0xff]  ;;  %v4728_v1 = vld [vmem:[%s5584_s9 + $0x8] sm:$0xff]  ;;  %v4731_v2 = vld [vmem:[%s5584_s9 + $0x10] sm:$0xff]  ;;  %s5591_s17 = sld [smem:[#allocation71_spill]] }
 0x170   :  { %v4734_v3 = vld [vmem:[%s5584_s9 + $0x18] sm:$0xff]  ;;  %v507_v4 = vadd.f32 %v4728_v1, %v4725_v0  ;;  %v4739_v5 = vld [vmem:[%s5584_s9 + $0x20] sm:$0xff]  ;;  %v4743_v7 = vld [vmem:[%s5584_s9 + $0x28] sm:$0xff]  ;;  %v3659_v12 = vpop.eup %3658  ;;  %s5592_s30 = sld [smem:[#allocation72_spill]] }
 0x171   :  { %v515_v13 = vmul.f32 768.0, %v3659_v12  ;;  %v612_v14 = vld [vmem:[%s5585_s4 + $0x78] sm:$0xff]  ;;  %v611_v16 = vld [vmem:[%s5585_s4 + $0x70] sm:$0xff]  ;;  %v610_v19 = vld [vmem:[%s5585_s4 + $0x68] sm:$0xff]  ;;  %vm519_vm0 = vweird.f32 %v3659_v12  ;;  %s5593_s26 = sld [smem:[#allocation70_spill]] }
 0x172   :  { %v508_v6 = vadd.f32 %v507_v4, %v4731_v2  ;;  %v628_v15 = vld [vmem:[%s5585_s4 + $0xf8] sm:$0xff]  ;;  %697 = vmatpush.msra.mxu0 %v612_v14  ;;  %v627_v18 = vld [vmem:[%s5585_s4 + $0xf0] sm:$0xff]  ;;  %v626_v20 = vld [vmem:[%s5585_s4 + $0xe8] sm:$0xff]  ;;  %s5594_s28 = sld [smem:[#allocation69_spill]] }
 0x173   :  { %v516_v17 = vsub.f32 1.0, %v515_v13  ;;  %717 = vmatpush.msra.mxu1 %v628_v15  ;;  %v609_v21 = vld [vmem:[%s5585_s4 + $0x60] sm:$0xff]  ;;  %v608_v24 = vld [vmem:[%s5585_s4 + $0x58] sm:$0xff]  ;;  %v607_v26 = vld [vmem:[%s5585_s4 + $0x50] sm:$0xff]  ;;  %s5595_s27 = sld [smem:[#allocation68_spill]] }
 0x174   :  { %v509_v8 = vadd.f32 %v508_v6, %v4734_v3  ;;  %698 = vmatpush.msra.mxu0 %v611_v16  ;;  %v625_v22 = vld [vmem:[%s5585_s4 + $0xe0] sm:$0xff]  ;;  %v624_v25 = vld [vmem:[%s5585_s4 + $0xd8] sm:$0xff]  ;;  %v623_v27 = vld [vmem:[%s5585_s4 + $0xd0] sm:$0xff]  ;;  %s5596_s5 = sld [smem:[#allocation67_spill]] }
 0x175   :  { %718 = vmatpush.msra.mxu1 %v627_v18  ;;  %v517_v23 = vmul.f32 %v3659_v12, %v516_v17  ;;  %v644_v28 = vld [vmem:[%s5585_s4 + $0x178] sm:$0xff]  ;;  %v643_v31 = vld [vmem:[%s5585_s4 + $0x170] sm:$0xff]  ;;  %v606_v33 = vld [vmem:[%s5585_s4 + $0x48] sm:$0xff]  ;;  %s5597_s1 = sld [smem:[#allocation45_spill]] }
 0x176   :  { %v510_v9 = vadd.f32 %v509_v8, %v4739_v5  ;;  %699 = vmatpush.msra.mxu0 %v610_v19  ;;  %v660_v29 = vld [vmem:[%s5585_s4 + $0x1f8] sm:$0xff]  ;;  %v659_v32 = vld [vmem:[%s5585_s4 + $0x1f0] sm:$0xff]  ;;  %v622_v34 = vld [vmem:[%s5585_s4 + $0xc8] sm:$0xff]  ;;  %737 = vmatpush.msra.mxu2 %v644_v28  ;;  %s5598_s14 = sld [smem:[#allocation41_spill]] }
 0x177   :  { %719 = vmatpush.msra.mxu1 %v626_v20  ;;  %v518_v30 = vadd.f32 %v3659_v12, %v517_v23  ;;  %757 = vmatpush.msra.mxu3 %v660_v29  ;;  %v605_v35 = vld [vmem:[%s5585_s4 + $0x40] sm:$0xff]  ;;  %v604_v38 = vld [vmem:[%s5585_s4 + $0x38] sm:$0xff]  ;;  %v603_v42 = vld [vmem:[%s5585_s4 + $0x30] sm:$0xff]  ;;  %s5599_s25 = sld [smem:[#allocation42_spill]] }
 0x178   :  { %v511_v10 = vadd.f32 %v510_v9, %v4743_v7  ;;  %700 = vmatpush.msra.mxu0 %v609_v21  ;;  %v621_v36 = vld [vmem:[%s5585_s4 + $0xc0] sm:$0xff]  ;;  %738 = vmatpush.msra.mxu2 %v643_v31  ;;  %v620_v39 = vld [vmem:[%s5585_s4 + $0xb8] sm:$0xff]  ;;  %v619_v43 = vld [vmem:[%s5585_s4 + $0xb0] sm:$0xff]  ;;  %s5600_s0 = sld [smem:[#allocation46_spill]] }
 0x179   :  { %720 = vmatpush.msra.mxu1 %v625_v22  ;;  %758 = vmatpush.msra.mxu3 %v659_v32  ;;  %v4768_v37 = vsel %vm519_vm0, %v3659_v12, %v518_v30  ;;  %v602_v47 = vld [vmem:[%s5585_s4 + $0x28] sm:$0xff]  ;;  %v601_v52 = vld [vmem:[%s5585_s4 + $0x20] sm:$0xff]  ;;  %v600_v57 = vld [vmem:[%s5585_s4 + $0x18] sm:$0xff]  ;;  %vm986_vm0 = vcmask 64512   ;;  %s5601_s2 = sld [smem:[#allocation60_spill]] }
 0x17a   :  { %512 = vadd.xlane.f32.xlu0 %v511_v10  ;;  %701 = vmatpush.msra.mxu0 %v608_v24  ;;  %v618_v48 = vld [vmem:[%s5585_s4 + $0xa8] sm:$0xff]  ;;  %v617_v53 = vld [vmem:[%s5585_s4 + $0xa0] sm:$0xff]  ;;  %v616_v58 = vld [vmem:[%s5585_s4 + $0x98] sm:$0xff]  ;;  %s5602_s13 = sld [smem:[#allocation44_spill]] }
 0x17b   :  { %721 = vmatpush.msra.mxu1 %v624_v25  ;;  %v615_v4 = vld [vmem:[%s5585_s4 + $0x90] sm:$0xff]  ;;  %v658_v6 = vld [vmem:[%s5585_s4 + $0x1e8] sm:$0xff]  ;;  %v641_v9 = vld [vmem:[%s5585_s4 + $0x160] sm:$0xff]  ;;  %s5603_s24 = sld [smem:[#allocation43_spill]] }
 0x17c   :  { %702 = vmatpush.msra.mxu0 %v607_v26  ;;  %759 = vmatpush.msra.mxu3 %v658_v6  ;;  %v614_v8 = vld [vmem:[%s5585_s4 + $0x88] sm:$0xff]  ;;  %v657_v10 = vld [vmem:[%s5585_s4 + $0x1e0] sm:$0xff]  ;;  %v640_v13 = vld [vmem:[%s5585_s4 + $0x158] sm:$0xff]  ;;  %s5605_s7 = sld [smem:[#allocation59_spill]] }
 0x17d   :  { %722 = vmatpush.msra.mxu1 %v623_v27  ;;  %v597_v11 = vld [vmem:[%s5585_s4] sm:$0xff]  ;;  %v656_v14 = vld [vmem:[%s5585_s4 + $0x1d8] sm:$0xff]  ;;  %v639_v17 = vld [vmem:[%s5585_s4 + $0x150] sm:$0xff]  ;;  %s5606_s10 = sld [smem:[#allocation57_spill]] }
 0x17e   :  { %703 = vmatpush.msra.mxu0 %v606_v33  ;;  %760 = vmatpush.msra.mxu3 %v657_v10  ;;  %v613_v12 = vld [vmem:[%s5585_s4 + $0x80] sm:$0xff]  ;;  %v676_v15 = vld [vmem:[%s5585_s4 + $0x278] sm:$0xff]  ;;  %v655_v18 = vld [vmem:[%s5585_s4 + $0x1d0] sm:$0xff]  ;;  %s5607_s15 = sld [smem:[#allocation54_spill]] }
 0x17f   :  { %723 = vmatpush.msra.mxu1 %v622_v34  ;;  %v692_v16 = vld [vmem:[%s5585_s4 + $0x2f8] sm:$0xff]  ;;  %v675_v19 = vld [vmem:[%s5585_s4 + $0x270] sm:$0xff]  ;;  %v638_v21 = vld [vmem:[%s5585_s4 + $0x148] sm:$0xff]  ;;  %s5608_s9 = sld [smem:[#allocation52_spill]] }
 0x180   :  { %704 = vmatpush.msra.mxu0 %v605_v35  ;;  %761 = vmatpush.msra.mxu3 %v656_v14  ;;  %v691_v20 = vld [vmem:[%s5585_s4 + $0x2f0] sm:$0xff]  ;;  %v654_v22 = vld [vmem:[%s5585_s4 + $0x1c8] sm:$0xff]  ;;  %v637_v25 = vld [vmem:[%s5585_s4 + $0x140] sm:$0xff] }
 0x181   :  { %724 = vmatpush.msra.mxu1 %v621_v36  ;;  %v674_v23 = vld [vmem:[%s5585_s4 + $0x268] sm:$0xff]  ;;  %v653_v26 = vld [vmem:[%s5585_s4 + $0x1c0] sm:$0xff]  ;;  %v636_v29 = vld [vmem:[%s5585_s4 + $0x138] sm:$0xff] }
 0x182   :  { %705 = vmatpush.msra.mxu0 %v604_v38  ;;  %762 = vmatpush.msra.mxu3 %v655_v18  ;;  %v690_v24 = vld [vmem:[%s5585_s4 + $0x2e8] sm:$0xff]  ;;  %v673_v27 = vld [vmem:[%s5585_s4 + $0x260] sm:$0xff]  ;;  %v652_v30 = vld [vmem:[%s5585_s4 + $0x1b8] sm:$0xff] }
 0x183   :  { %725 = vmatpush.msra.mxu1 %v620_v39  ;;  %v689_v28 = vld [vmem:[%s5585_s4 + $0x2e0] sm:$0xff]  ;;  %v672_v31 = vld [vmem:[%s5585_s4 + $0x258] sm:$0xff]  ;;  %v635_v33 = vld [vmem:[%s5585_s4 + $0x130] sm:$0xff] }
 0x184   :  { %706 = vmatpush.msra.mxu0 %v603_v42  ;;  %763 = vmatpush.msra.mxu3 %v654_v22  ;;  %v688_v32 = vld [vmem:[%s5585_s4 + $0x2d8] sm:$0xff]  ;;  %v651_v34 = vld [vmem:[%s5585_s4 + $0x1b0] sm:$0xff]  ;;  %v634_v38 = vld [vmem:[%s5585_s4 + $0x128] sm:$0xff] }
 0x185   :  { %726 = vmatpush.msra.mxu1 %v619_v43  ;;  %v671_v35 = vld [vmem:[%s5585_s4 + $0x250] sm:$0xff]  ;;  %v650_v39 = vld [vmem:[%s5585_s4 + $0x1a8] sm:$0xff]  ;;  %v633_v42 = vld [vmem:[%s5585_s4 + $0x120] sm:$0xff] }
 0x186   :  { %707 = vmatpush.msra.mxu0 %v602_v47  ;;  %764 = vmatpush.msra.mxu3 %v653_v26  ;;  %v687_v36 = vld [vmem:[%s5585_s4 + $0x2d0] sm:$0xff]  ;;  %v649_v43 = vld [vmem:[%s5585_s4 + $0x1a0] sm:$0xff]  ;;  %v662_v10 = vld [vmem:[%s5585_s4 + $0x208] sm:$0xff] }
 0x187   :  { %727 = vmatpush.msra.mxu1 %v618_v48  ;;  %v669_v47 = vld [vmem:[%s5585_s4 + $0x240] sm:$0xff]  ;;  %v663_v6 = vld [vmem:[%s5585_s4 + $0x210] sm:$0xff] }
 0x188   :  { %708 = vmatpush.msra.mxu0 %v601_v52  ;;  %765 = vmatpush.msra.mxu3 %v652_v30  ;;  %v685_v48 = vld [vmem:[%s5585_s4 + $0x2c0] sm:$0xff]  ;;  %v668_v52 = vld [vmem:[%s5585_s4 + $0x238] sm:$0xff] }
 0x189   :  { %728 = vmatpush.msra.mxu1 %v617_v53  ;;  %v684_v53 = vld [vmem:[%s5585_s4 + $0x2b8] sm:$0xff]  ;;  %v677_v14 = vld [vmem:[%s5585_s4 + $0x280] sm:$0xff] }
 0x18a   :  { %709 = vmatpush.msra.mxu0 %v600_v57  ;;  %766 = vmatpush.msra.mxu3 %v651_v34  ;;  %v667_v57 = vld [vmem:[%s5585_s4 + $0x230] sm:$0xff] }
 0x18b   :  { %729 = vmatpush.msra.mxu1 %v616_v58  ;;  %v683_v58 = vld [vmem:[%s5585_s4 + $0x2b0] sm:$0xff] }
 0x18c   :  { %767 = vmatpush.msra.mxu3 %v650_v39 }
 0x18d   :  { %730 = vmatpush.msra.mxu1 %v615_v4  ;;  %v664_v4 = vld [vmem:[%s5585_s4 + $0x218] sm:$0xff] }
 0x18e   :  { %768 = vmatpush.msra.mxu3 %v649_v43 }
 0x18f   :  { %731 = vmatpush.msra.mxu1 %v614_v8 }
 0x191   :  { %732 = vmatpush.msra.mxu1 %v613_v12 }
 0x193   :  { %797 = vmatpush.msrb.mxu1 %v692_v16 }
 0x195   :  { %798 = vmatpush.msrb.mxu1 %v691_v20  ;;  %v506_v20 = vld [vmem:[%s5587_s8] sm:$0x3f]  ;;  %s5611_s8 = sld [smem:[#allocation56_spill]] }
 0x196   :  { %v582_v30 = vperm.slane %v506_v20, 3 }
 0x197   :  { %799 = vmatpush.msrb.mxu1 %v690_v24 }
 0x199   :  { %800 = vmatpush.msrb.mxu1 %v689_v28  ;;  %v580_v28 = vperm.slane %v506_v20, 1 }
 0x19b   :  { %801 = vmatpush.msrb.mxu1 %v688_v32 }
 0x19d   :  { %802 = vmatpush.msrb.mxu1 %v687_v36 }
 0x1ed   :  { %v513_v40 = vpop.xlane.xlu0 %512 }
 0x1ee   :  { %v521_v41 = vmul.f32 %v4768_v37, %v513_v40  ;;  %v670_v40 = vld [vmem:[%s5585_s4 + $0x248] sm:$0xff] }
 0x1f0   :  { %v4776_v44 = vsub.f32 %v4725_v0, %v521_v41  ;;  %v4779_v45 = vsub.f32 %v4728_v1, %v521_v41  ;;  %v4782_v46 = vsub.f32 %v4731_v2, %v521_v41  ;;  %v4787_v49 = vsub.f32 %v4734_v3, %v521_v41  ;;  %v599_v3 = vld [vmem:[%s5585_s4 + $0x10] sm:$0xff] }
 0x1f1   :  { %v4796_v54 = vsub.f32 %v4739_v5, %v521_v41  ;;  %v4803_v59 = vsub.f32 %v4743_v7, %v521_v41  ;;  %710 = vmatpush.msra.mxu0 %v599_v3  ;;  %v642_v5 = vld [vmem:[%s5585_s4 + $0x168] sm:$0xff]  ;;  %v681_v3 = vld [vmem:[%s5585_s4 + $0x2a0] sm:$0xff] }
 0x1f2   :  { %v528_v50 = vmul.f32 %v4776_v44, %v4776_v44  ;;  %v529_v51 = vmul.f32 %v4779_v45, %v4779_v45  ;;  %v530_v55 = vmul.f32 %v4782_v46, %v4782_v46  ;;  %v531_v60 = vmul.f32 %v4787_v49, %v4787_v49  ;;  %739 = vmatpush.msra.mxu2 %v642_v5  ;;  %v598_v7 = vld [vmem:[%s5585_s4 + $0x8] sm:$0xff]  ;;  %v680_v5 = vld [vmem:[%s5585_s4 + $0x298] sm:$0xff] }
 0x1f3   :  { %v532_v62 = vmul.f32 %v4796_v54, %v4796_v54  ;;  %v533_v0 = vmul.f32 %v4803_v59, %v4803_v59  ;;  %711 = vmatpush.msra.mxu0 %v598_v7  ;;  %v686_v41 = vld [vmem:[%s5585_s4 + $0x2c8] sm:$0xff]  ;;  %v679_v7 = vld [vmem:[%s5585_s4 + $0x290] sm:$0xff] }
 0x1f4   :  { %v534_v56 = vadd.f32 %v529_v51, %v528_v50  ;;  %740 = vmatpush.msra.mxu2 %v641_v9  ;;  %803 = vmatpush.msrb.mxu1 %v686_v41  ;;  %v632_v50 = vld [vmem:[%s5585_s4 + $0x118] sm:$0xff] }
 0x1f5   :  { %712 = vmatpush.msra.mxu0 %v597_v11  ;;  %v648_v51 = vld [vmem:[%s5585_s4 + $0x198] sm:$0xff]  ;;  %v678_v11 = vld [vmem:[%s5585_s4 + $0x288] sm:$0xff] }
 0x1f6   :  { %v535_v61 = vadd.f32 %v534_v56, %v530_v55  ;;  %741 = vmatpush.msra.mxu2 %v640_v13  ;;  %804 = vmatpush.msrb.mxu1 %v685_v48  ;;  %v631_v55 = vld [vmem:[%s5585_s4 + $0x110] sm:$0xff]  ;;  %v661_v13 = vld [vmem:[%s5585_s4 + $0x200] sm:$0xff] }
 0x1f7   :  { %777 = vmatpush.msrb.mxu0 %v676_v15  ;;  %769 = vmatpush.msra.mxu3 %v648_v51  ;;  %v647_v56 = vld [vmem:[%s5585_s4 + $0x190] sm:$0xff]  ;;  %v584_v51 = vperm.slane %v506_v20, 5 }
 0x1f8   :  { %v536_v63 = vadd.f32 %v535_v61, %v531_v60  ;;  %742 = vmatpush.msra.mxu2 %v639_v17  ;;  %805 = vmatpush.msrb.mxu1 %v684_v53  ;;  %v630_v60 = vld [vmem:[%s5585_s4 + $0x108] sm:$0xff] }
 0x1f9   :  { %778 = vmatpush.msrb.mxu0 %v675_v19  ;;  %770 = vmatpush.msra.mxu3 %v647_v56  ;;  %v646_v61 = vld [vmem:[%s5585_s4 + $0x188] sm:$0xff]  ;;  %v505_v19 = vld [vmem:[%s5586_s29] sm:$0x3f]  ;;  %s5610_s29 = sld [smem:[#allocation65_spill]] }
 0x1fa   :  { %v537_v1 = vadd.f32 %v536_v63, %v532_v62  ;;  %743 = vmatpush.msra.mxu2 %v638_v21  ;;  %v666_v62 = vld [vmem:[%s5585_s4 + $0x228] sm:$0xff]  ;;  %806 = vmatpush.msrb.mxu1 %v683_v58  ;;  %v560_v22 = vperm.slane %v505_v19, 0  ;;  %v561_v24 = vperm.slane %v505_v19, 1  ;;  %v563_v26 = vperm.slane %v505_v19, 3 }
 0x1fb   :  { %779 = vmatpush.msrb.mxu0 %v674_v23  ;;  %v682_v63 = vld [vmem:[%s5585_s4 + $0x2a8] sm:$0xff]  ;;  %771 = vmatpush.msra.mxu3 %v646_v61  ;;  %v579_v23 = vperm.slane %v506_v20, 0  ;;  %v564_v41 = vperm.slane %v505_v19, 4  ;;  %v565_v43 = vperm.slane %v505_v19, 5 }
 0x1fc   :  { %v538_v2 = vadd.f32 %v537_v1, %v533_v0  ;;  %744 = vmatpush.msra.mxu2 %v637_v25  ;;  %v629_v0 = vld [vmem:[%s5585_s4 + $0x100] sm:$0xff]  ;;  %807 = vmatpush.msrb.mxu1 %v682_v63  ;;  %v562_v25 = vperm.slane %v505_v19, 2 }
 0x1fd   :  { %780 = vmatpush.msrb.mxu0 %v673_v27  ;;  %v645_v1 = vld [vmem:[%s5585_s4 + $0x180] sm:$0xff] }
 0x1fe   :  { %539 = vadd.xlane.f32.xlu0 %v538_v2  ;;  %745 = vmatpush.msra.mxu2 %v636_v29  ;;  %v665_v2 = vld [vmem:[%s5585_s4 + $0x220] sm:$0xff]  ;;  %v581_v29 = vperm.slane %v506_v20, 2  ;;  %s5609_s4 = sld [smem:[#allocation58_spill]] }
 0x1ff   :  { %781 = vmatpush.msrb.mxu0 %v672_v31  ;;  %772 = vmatpush.msra.mxu3 %v645_v1 }
 0x200   :  { %746 = vmatpush.msra.mxu2 %v635_v33  ;;  %808 = vmatpush.msrb.mxu1 %v681_v3 }
 0x201   :  { %782 = vmatpush.msrb.mxu0 %v671_v35 }
 0x202   :  { %747 = vmatpush.msra.mxu2 %v634_v38  ;;  %809 = vmatpush.msrb.mxu1 %v680_v5 }
 0x203   :  { %783 = vmatpush.msrb.mxu0 %v670_v40 }
 0x204   :  { %748 = vmatpush.msra.mxu2 %v633_v42  ;;  %810 = vmatpush.msrb.mxu1 %v679_v7 }
 0x205   :  { %784 = vmatpush.msrb.mxu0 %v669_v47 }
 0x206   :  { %749 = vmatpush.msra.mxu2 %v632_v50  ;;  %811 = vmatpush.msrb.mxu1 %v678_v11 }
 0x207   :  { %785 = vmatpush.msrb.mxu0 %v668_v52 }
 0x208   :  { %750 = vmatpush.msra.mxu2 %v631_v55  ;;  %812 = vmatpush.msrb.mxu1 %v677_v14 }
 0x209   :  { %786 = vmatpush.msrb.mxu0 %v667_v57 }
 0x20a   :  { %751 = vmatpush.msra.mxu2 %v630_v60 }
 0x20b   :  { %787 = vmatpush.msrb.mxu0 %v666_v62 }
 0x20c   :  { %752 = vmatpush.msra.mxu2 %v629_v0 }
 0x20d   :  { %788 = vmatpush.msrb.mxu0 %v665_v2 }
 0x20f   :  { %789 = vmatpush.msrb.mxu0 %v664_v4  ;;  %v4353_v4 = vmov 32.0  }
 0x211   :  { %790 = vmatpush.msrb.mxu0 %v663_v6 }
 0x213   :  { %791 = vmatpush.msrb.mxu0 %v662_v10 }
 0x215   :  { %792 = vmatpush.msrb.mxu0 %v661_v13 }
 0x271   :  { %v540_v8 = vpop.xlane.xlu0 %539 }
 0x272   :  { %v541_v9 = vmul.f32 %v540_v8, %v4768_v37 }
 0x274   :  { %v542_v12 = vadd.f32 1e-05, %v541_v9 }
 0x276   :  { %3660 = vrsqrt.f32 %v542_v12  ;;  %vm549_vm2 = vweird.f32 %v542_v12 }
 0x277   :  { %3662 = vrcp.f32 %v4353_v4 }
 0x27c   :  { %v3661_v15 = vpop.eup %3660 }
 0x27d   :  { %v544_v16 = vmul.f32 %v3661_v15, %v542_v12  ;;  %vm550_vm1 = vweird.f32 %v3661_v15  ;;  %v3663_v5 = vpop.eup %3662 }
 0x27e   :  { %vm551_vm3 = vmor %vm549_vm2, %vm550_vm1  ;;  %v824_v6 = vmul.f32 32.0, %v3663_v5  ;;  %vm828_vm5 = vweird.f32 %v3663_v5 }
 0x27f   :  { %v545_v17 = vmul.f32 %v3661_v15, %v544_v16 }
 0x280   :  { %v825_v7 = vsub.f32 1.0, %v824_v6 }
 0x281   :  { %v546_v18 = vmul.f32 0.5, %v545_v17 }
 0x282   :  { %v826_v8 = vmul.f32 %v3663_v5, %v825_v7 }
 0x283   :  { %v547_v37 = vsub.f32 1.5, %v546_v18 }
 0x284   :  { %v827_v9 = vadd.f32 %v3663_v5, %v826_v8 }
 0x285   :  { %v548_v21 = vmul.f32 %v3661_v15, %v547_v37 }
 0x286   :  { %v4887_v10 = vsel %vm828_vm5, %v3663_v5, %v827_v9  ;;  %v3633_v9 = vld [vmem:[#allocation19] ss:$0 sm:$0xff] }
 0x287   :  { %v552_v27 = vsel %vm551_vm3, %v3661_v15, %v548_v21 }
 0x288   :  { %v553_v31 = vmul.f32 %v552_v27, %v4776_v44  ;;  %v554_v32 = vmul.f32 %v552_v27, %v4779_v45  ;;  %v555_v33 = vmul.f32 %v552_v27, %v4782_v46  ;;  %v556_v34 = vmul.f32 %v552_v27, %v4787_v49 }
 0x289   :  { %v557_v40 = vmul.f32 %v552_v27, %v4796_v54  ;;  %v558_v42 = vmul.f32 %v552_v27, %v4803_v59  ;;  %v583_v46 = vperm.slane %v506_v20, 4  ;;  %v3628_v54 = vld [vmem:[#allocation24] ss:$0 sm:$0xff]  ;;  %v3630_v27 = vld [vmem:[#allocation25] ss:$0 sm:$0xff] }
 0x28a   :  { %v572_v35 = vmul.f32 %v560_v22, %v553_v31  ;;  %v573_v36 = vmul.f32 %v561_v24, %v554_v32  ;;  %v574_v38 = vmul.f32 %v562_v25, %v555_v33  ;;  %v575_v39 = vmul.f32 %v563_v26, %v556_v34  ;;  %v3629_v24 = vld [vmem:[#allocation27] ss:$0 sm:$0xff] }
 0x28b   :  { %v576_v45 = vmul.f32 %v564_v41, %v557_v40  ;;  %v577_v49 = vmul.f32 %v565_v43, %v558_v42 }
 0x28c   :  { %v591_v47 = vadd.f32 %v579_v23, %v572_v35  ;;  %v592_v48 = vadd.f32 %v580_v28, %v573_v36  ;;  %v593_v50 = vadd.f32 %v581_v29, %v574_v38  ;;  %v594_v44 = vadd.f32 %v582_v30, %v575_v39  ;;  %v857_v29 = vld [vmem:[%s5588_s19] sm:$0xff]  ;;  %s5612_s19 = sld [smem:[#allocation55_spill]] }
 0x28d   :  { %v595_v52 = vadd.f32 %v583_v46, %v576_v45  ;;  %v596_v53 = vadd.f32 %v584_v51, %v577_v49  ;;  %v3631_v45 = vld [vmem:[#allocation30] ss:$0 sm:$0xff]  ;;  %v3632_v51 = vld [vmem:[#allocation28] ss:$0 sm:$0xff] }
 0x28e   :  { %713 = vmatmul.f32.vlgmr.msra.gmra.mxu0 %v591_v47  ;;  %733 = vmatmul.f32.vlgmr.msra.gmra.mxu1 %v592_v48 }
 0x28f   :  { %753 = vmatmul.f32.vlgmr.msra.gmra.mxu2 %v593_v50  ;;  %773 = vmatmul.f32.vlgmr.msra.gmra.mxu3 %v594_v44 }
 0x296   :  { %793 = vmatmul.f32.vlgmr.msrb.gmra.mxu0 %v595_v52  ;;  %813 = vmatmul.f32.vlgmr.msrb.gmra.mxu1 %v596_v53 }
 0x30b   :  { %v714_v55 = vpop.f32.mrf.mxu0  ;;  %v734_v56 = vpop.f32.mrf.mxu1 }
 0x30c   :  { %v715_v59 = vadd.f32 %v3628_v54, %v714_v55 }
 0x30e   :  { %v735_v57 = vadd.f32 %v734_v56, %v715_v59 }
 0x312   :  { %v754_v58 = vpop.f32.mrf.mxu2  ;;  %v774_v61 = vpop.f32.mrf.mxu3 }
 0x313   :  { %v755_v60 = vadd.f32 %v754_v58, %v735_v57  ;;  %v794_v63 = vpop.f32.mrf.mxu0  ;;  %v814_v1 = vpop.f32.mrf.mxu1 }
 0x315   :  { %v775_v62 = vadd.f32 %v774_v61, %v755_v60  ;;  %v926_v60 = vld [vmem:[%s5589_s11 + $0x18] sm:$0xff]  ;;  %v925_v61 = vld [vmem:[%s5589_s11 + $0x10] sm:$0xff] }
 0x316   :  { %948 = vmatpush.msrb.mxu2 %v926_v60 }
 0x317   :  { %v795_v0 = vadd.f32 %v794_v63, %v775_v62  ;;  %v924_v62 = vld [vmem:[%s5589_s11 + $0x8] sm:$0xff]  ;;  %v923_v63 = vld [vmem:[%s5589_s11] sm:$0xff]  ;;  %s5613_s11 = sld [smem:[#allocation53_spill]] }
 0x318   :  { %949 = vmatpush.msrb.mxu2 %v925_v61 }
 0x319   :  { %v815_v2 = vadd.f32 %v814_v1, %v795_v0 }
 0x31a   :  { %950 = vmatpush.msrb.mxu2 %v924_v62 }
 0x31b   :  { %v820_v3 = vsel %vm819_vm4, %v815_v2, 0.0 }
 0x31c   :  { %821 = vadd.xlane.f32.xlu1 %v820_v3  ;;  %951 = vmatpush.msrb.mxu2 %v923_v63 }
 0x38f   :  { %v822_v11 = vpop.xlane.xlu1 %821 }
 0x390   :  { %v830_v12 = vmul.f32 %v4887_v10, %v822_v11 }
 0x392   :  { %v831_v13 = vsub.f32 %v815_v2, %v830_v12 }
 0x394   :  { %v832_v14 = vmul.f32 %v831_v13, %v831_v13 }
 0x396   :  { %v833_v15 = vsel %vm819_vm4, %v832_v14, 0.0 }
 0x397   :  { %834 = vadd.xlane.f32.xlu1 %v833_v15 }
 0x40a   :  { %v835_v16 = vpop.xlane.xlu1 %834 }
 0x40b   :  { %v836_v17 = vmul.f32 %v835_v16, %v4887_v10 }
 0x40d   :  { %v837_v18 = vadd.f32 1e-05, %v836_v17 }
 0x40f   :  { %3664 = vrsqrt.f32 %v837_v18  ;;  %vm844_vm7 = vweird.f32 %v837_v18 }
 0x415   :  { %v3665_v19 = vpop.eup %3664 }
 0x416   :  { %v839_v37 = vmul.f32 %v3665_v19, %v837_v18  ;;  %vm845_vm6 = vweird.f32 %v3665_v19 }
 0x417   :  { %vm846_vm8 = vmor %vm844_vm7, %vm845_vm6 }
 0x418   :  { %v840_v20 = vmul.f32 %v3665_v19, %v839_v37 }
 0x41a   :  { %v841_v21 = vmul.f32 0.5, %v840_v20  ;;  %v932_v20 = vld [vmem:[%s4655_s20] sm:$0xff]  ;;  %s5590_s20 = sld [smem:[#allocation75_spill]] }
 0x41c   :  { %v842_v22 = vsub.f32 1.5, %v841_v21 }
 0x41e   :  { %v843_v23 = vmul.f32 %v3665_v19, %v842_v22 }
 0x420   :  { %v847_v25 = vsel %vm846_vm8, %v3665_v19, %v843_v23 }
 0x421   :  { %v848_v26 = vmul.f32 %v847_v25, %v831_v13  ;;  %v3634_v13 = vld [vmem:[#allocation18] ss:$0 sm:$0xff] }
 0x423   :  { %v852_v28 = vmul.f32 %v3629_v24, %v848_v26 }
 0x425   :  { %v856_v30 = vadd.f32 %v3630_v27, %v852_v28 }
 0x427   :  { %v858_v31 = vadd.f32 %v857_v29, %v856_v30 }
 0x429   :  { %v861_v32 = vsel %vm819_vm4, %v858_v31, 0.0 }
 0x42a   :  { %862 = vadd.xlane.f32.xlu2 %v861_v32 }
 0x49d   :  { %v863_v33 = vpop.xlane.xlu2 %862 }
 0x49e   :  { %v864_v34 = vmul.f32 %v863_v33, %v4887_v10 }
 0x4a0   :  { %v865_v35 = vsub.f32 %v858_v31, %v864_v34 }
 0x4a2   :  { %v866_v36 = vmul.f32 %v865_v35, %v865_v35 }
 0x4a4   :  { %v867_v38 = vsel %vm819_vm4, %v866_v36, 0.0 }
 0x4a5   :  { %868 = vadd.xlane.f32.xlu2 %v867_v38 }
 0x518   :  { %v869_v39 = vpop.xlane.xlu2 %868 }
 0x519   :  { %v870_v40 = vmul.f32 %v869_v39, %v4887_v10 }
 0x51b   :  { %v871_v41 = vadd.f32 1e-05, %v870_v40 }
 0x51d   :  { %3666 = vrsqrt.f32 %v871_v41  ;;  %vm878_vm10 = vweird.f32 %v871_v41 }
 0x523   :  { %v3667_v42 = vpop.eup %3666 }
 0x524   :  { %v873_v43 = vmul.f32 %v3667_v42, %v871_v41  ;;  %vm879_vm9 = vweird.f32 %v3667_v42 }
 0x525   :  { %vm880_vm11 = vmor %vm878_vm10, %vm879_vm9 }
 0x526   :  { %v874_v47 = vmul.f32 %v3667_v42, %v873_v43 }
 0x528   :  { %v875_v48 = vmul.f32 0.5, %v874_v47 }
 0x52a   :  { %v876_v50 = vsub.f32 1.5, %v875_v48 }
 0x52c   :  { %v877_v44 = vmul.f32 %v3667_v42, %v876_v50 }
 0x52e   :  { %v881_v46 = vsel %vm880_vm11, %v3667_v42, %v877_v44  ;;  %v930_v44 = vld [vmem:[%s5590_s20 + $0x18] sm:$0xff] }
 0x52f   :  { %v882_v49 = vmul.f32 %v881_v46, %v865_v35  ;;  %v928_v46 = vld [vmem:[%s5590_s20 + $0x8] sm:$0xff] }
 0x531   :  { %v886_v52 = vmul.f32 %v3631_v45, %v882_v49  ;;  %v929_v45 = vld [vmem:[%s5590_s20 + $0x10] sm:$0xff] }
 0x533   :  { %v4897_v53 = vadd.f32 %v3632_v51, %v886_v52  ;;  %v927_v52 = vld [vmem:[%s5590_s20] sm:$0xff]  ;;  %s5618_s20 = sld [smem:[#allocation51_spill]] }
 0x535   :  { %v893_v54 = vsel %vm819_vm4, %v4897_v53, 0.0 }
 0x536   :  { %894 = vadd.xlane.f32.xlu0 %v893_v54 }
 0x5a9   :  { %v895_v55 = vpop.xlane.xlu0 %894 }
 0x5aa   :  { %v896_v59 = vmul.f32 %v895_v55, %v4887_v10 }
 0x5ac   :  { %v897_v56 = vsub.f32 %v4897_v53, %v896_v59  ;;  %v3635_v59 = vld [vmem:[#allocation13] ss:$0 sm:$0xff] }
 0x5ae   :  { %v898_v57 = vmul.f32 %v897_v56, %v897_v56 }
 0x5b0   :  { %v899_v58 = vsel %vm819_vm4, %v898_v57, 0.0 }
 0x5b1   :  { %900 = vadd.xlane.f32.xlu1 %v899_v58 }
 0x624   :  { %v901_v0 = vpop.xlane.xlu1 %900 }
 0x625   :  { %v902_v1 = vmul.f32 %v901_v0, %v4887_v10 }
 0x627   :  { %v903_v2 = vadd.f32 1e-05, %v902_v1 }
 0x629   :  { %3668 = vrsqrt.f32 %v903_v2  ;;  %vm910_vm13 = vweird.f32 %v903_v2 }
 0x62f   :  { %v3669_v3 = vpop.eup %3668 }
 0x630   :  { %v905_v4 = vmul.f32 %v3669_v3, %v903_v2  ;;  %vm911_vm12 = vweird.f32 %v3669_v3  ;;  %v1158_v2 = vld [vmem:[%s5591_s17 + $0x18] sm:$0xff] }
 0x631   :  { %vm912_vm14 = vmor %vm910_vm13, %vm911_vm12 }
 0x632   :  { %v906_v5 = vmul.f32 %v3669_v3, %v905_v4  ;;  %v1155_v4 = vld [vmem:[%s5591_s17] sm:$0xff] }
 0x634   :  { %v907_v6 = vmul.f32 0.5, %v906_v5  ;;  %v1210_v5 = vld [vmem:[%s5592_s30 + $0x78] sm:$0xff] }
 0x636   :  { %v908_v7 = vsub.f32 1.5, %v907_v6  ;;  %v1209_v6 = vld [vmem:[%s5592_s30 + $0x70] sm:$0xff] }
 0x638   :  { %v909_v8 = vmul.f32 %v3669_v3, %v908_v7  ;;  %v1208_v7 = vld [vmem:[%s5592_s30 + $0x68] sm:$0xff] }
 0x63a   :  { %v913_v11 = vsel %vm912_vm14, %v3669_v3, %v909_v8  ;;  %v1156_v3 = vld [vmem:[%s5591_s17 + $0x8] sm:$0xff] }
 0x63b   :  { %v914_v12 = vmul.f32 %v913_v11, %v897_v56 }
 0x63d   :  { %v918_v14 = vmul.f32 %v3633_v9, %v914_v12 }
 0x63f   :  { %v922_v15 = vadd.f32 %v3634_v13, %v918_v14 }
 0x641   :  { %3419 = vmatmul.msk.f32.vlgmr.msrb.gmra.mxu2 %vm819_vm4, %v922_v15 }
 0x6c4   :  { %v953_v16 = vpop.f32.mrf.mxu2 }
 0x6c5   :  { %1024 = vrot.lane.b32.xlu1 %v953_v16, %s4354_s16  ;;  %1026 = vrot.lane.b32.xlu0 %v953_v16, %s4355_s18 }
 0x6c6   :  { %957 = vrot.lane.b32.xlu2 %v953_v16, %s4356_s22 }
 0x720   :  { %v958_v17 = vpop.permute.xlu2 %957 }
 0x721   :  { %3420 = vmatpush.xpose.msk.msrb.mxu3 %vm959_vm15, %v958_v17 }
 0x724   :  { %3421 = vmatmul.msk.f32.vlgmr.msrb.gmra.mxu3 %vm959_vm15, %v953_v16 }
 0x737   :  { %v1027_v18 = vpop.permute.xlu0 %1026  ;;  %v1025_v19 = vpop.permute.xlu1 %1024 }
 0x738   :  { %3423 = vmatpush.xpose.msk.msra.mxu3 %vm959_vm15, %v1027_v18  ;;  %v3636_v18 = vld [vmem:[#allocation22] ss:$0 sm:$0xff] }
 0x73b   :  { %3424 = vmatmul.msk.f32.vlgmr.msra.gmra.mxu3 %vm959_vm15, %v1025_v19 }
 0x73c   :  { %1114 = vmatpush.msrb.mxu3 %v930_v44 }
 0x73e   :  { %1115 = vmatpush.msrb.mxu3 %v929_v45 }
 0x740   :  { %1116 = vmatpush.msrb.mxu3 %v928_v46  ;;  %v3639_v46 = vld [vmem:[#allocation16] ss:$0 sm:$0xff] }
 0x742   :  { %1117 = vmatpush.msrb.mxu3 %v927_v52 }
 0x744   :  { %1215 = vmatpush.msra.mxu3 %v1210_v5 }
 0x746   :  { %1216 = vmatpush.msra.mxu3 %v1209_v6 }
 0x748   :  { %1217 = vmatpush.msra.mxu3 %v1208_v7 }
 0x7a7   :  { %v981_v37 = vpop.f32.mrf.mxu3 }
 0x7a8   :  { %v984_v21 = vmul.f32 0.25, %v981_v37 }
 0x7aa   :  { %v985_v22 = vadd.f32 %v984_v21, %v932_v20 }
 0x7ac   :  { %v987_v23 = vsel %vm986_vm0, %v985_v22, -inf }
 0x7ad   :  { %988 = vmax.xlane.f32.xlu2 %v987_v23  ;;  %v1207_v23 = vld [vmem:[%s5592_s30 + $0x60] sm:$0xff] }
 0x7ae   :  { %1218 = vmatpush.msra.mxu3 %v1207_v23  ;;  %v1299_v23 = vld [vmem:[%s5596_s5] sm:$0xff] }
 0x7be   :  { %v1049_v24 = vpop.f32.mrf.mxu3 }
 0x7bf   :  { %v1052_v25 = vmul.f32 0.25, %v1049_v24  ;;  %v1206_v24 = vld [vmem:[%s5592_s30 + $0x58] sm:$0xff] }
 0x7c0   :  { %1219 = vmatpush.msra.mxu3 %v1206_v24  ;;  %v1300_v24 = vld [vmem:[%s5596_s5 + $0x8] sm:$0xff] }
 0x7c1   :  { %v1053_v26 = vadd.f32 %v1052_v25, %v932_v20  ;;  %v3637_v20 = vld [vmem:[#allocation21] ss:$0 sm:$0xff]  ;;  %v1205_v25 = vld [vmem:[%s5592_s30 + $0x50] sm:$0xff] }
 0x7c2   :  { %1220 = vmatpush.msra.mxu3 %v1205_v25  ;;  %v5005_v25 = vld [vmem:[%s5594_s28] sm:$0xff] }
 0x7c3   :  { %v1054_v27 = vsel %vm986_vm0, %v1053_v26, -inf }
 0x7c4   :  { %1055 = vmax.xlane.f32.xlu0 %v1054_v27  ;;  %v1203_v27 = vld [vmem:[%s5592_s30 + $0x40] sm:$0xff] }
 0x7d8   :  { %998 = vrot.lane.b32.xlu0 %v953_v16, %s4357_s6 }
 0x820   :  { %v989_v28 = vpop.xlane.xlu2 %988 }
 0x821   :  { %v990_v29 = vsub.f32 %v985_v22, %v989_v28  ;;  %v1202_v28 = vld [vmem:[%s5592_s30 + $0x38] sm:$0xff] }
 0x823   :  { %v991_v30 = vmul.f32 1.442695, %v990_v29  ;;  %v1201_v29 = vld [vmem:[%s5592_s30 + $0x30] sm:$0xff] }
 0x825   :  { %3670 = vpow2.f32 %v991_v30  ;;  %v1200_v30 = vld [vmem:[%s5592_s30 + $0x28] sm:$0xff] }
 0x82b   :  { %v3671_v31 = vpop.eup %3670 }
 0x82c   :  { %v993_v32 = vsel %vm986_vm0, %v3671_v31, 0.0 }
 0x82d   :  { %994 = vadd.xlane.f32.xlu1 %v993_v32  ;;  %v1198_v32 = vld [vmem:[%s5592_s30 + $0x18] sm:$0xff] }
 0x837   :  { %v1056_v33 = vpop.xlane.xlu0 %1055 }
 0x838   :  { %v1057_v34 = vsub.f32 %v1053_v26, %v1056_v33  ;;  %v1204_v26 = vld [vmem:[%s5592_s30 + $0x48] sm:$0xff]  ;;  %v1197_v33 = vld [vmem:[%s5592_s30 + $0x10] sm:$0xff] }
 0x839   :  { %1221 = vmatpush.msra.mxu3 %v1204_v26  ;;  %v5008_v26 = vld [vmem:[%s5595_s27] sm:$0xff] }
 0x83a   :  { %v1058_v35 = vmul.f32 1.442695, %v1057_v34  ;;  %v1196_v34 = vld [vmem:[%s5592_s30 + $0x8] sm:$0xff] }
 0x83b   :  { %1222 = vmatpush.msra.mxu3 %v1203_v27 }
 0x83c   :  { %3672 = vpow2.f32 %v1058_v35  ;;  %v1195_v35 = vld [vmem:[%s5592_s30] sm:$0xff] }
 0x83d   :  { %1223 = vmatpush.msra.mxu3 %v1202_v28 }
 0x83f   :  { %1224 = vmatpush.msra.mxu3 %v1201_v29  ;;  %v5036_v29 = vld [vmem:[%s5597_s1 + $0x10] sm:$0xff] }
 0x841   :  { %1225 = vmatpush.msra.mxu3 %v1200_v30  ;;  %v5043_v30 = vld [vmem:[%s5597_s1 + $0x18] sm:$0xff] }
 0x842   :  { %v3673_v36 = vpop.eup %3672 }
 0x843   :  { %v1060_v38 = vsel %vm986_vm0, %v3673_v36, 0.0 }
 0x844   :  { %1061 = vadd.xlane.f32.xlu2 %v1060_v38 }
 0x84a   :  { %v999_v39 = vpop.permute.xlu0 %998 }
 0x84b   :  { %1019 = vmatpush.msra.mxu2 %v999_v39 }
 0x85c   :  { %1065 = vrot.lane.b32.xlu2 %v953_v16, %s4358_s12 }
 0x8a0   :  { %v995_v40 = vpop.xlane.xlu1 %994 }
 0x8a1   :  { %3674 = vrcp.f32 %v995_v40 }
 0x8a7   :  { %v3675_v41 = vpop.eup %3674 }
 0x8a8   :  { %v997_v42 = vmul.f32 %v3675_v41, %v3671_v31  ;;  %v1199_v31 = vld [vmem:[%s5592_s30 + $0x20] sm:$0xff] }
 0x8a9   :  { %1226 = vmatpush.msra.mxu3 %v1199_v31  ;;  %v1345_v31 = vld [vmem:[%s5598_s14 + $0x8] sm:$0xff] }
 0x8aa   :  { %3422 = vmatmul.msk.f32.vlgmr.msra.gmra.mxu2 %vm986_vm0, %v997_v42 }
 0x8ab   :  { %1227 = vmatpush.msra.mxu3 %v1198_v32  ;;  %v1344_v32 = vld [vmem:[%s5598_s14] sm:$0xff] }
 0x8ad   :  { %1228 = vmatpush.msra.mxu3 %v1197_v33  ;;  %v4360_v33 = vmov 0  }
 0x8ae   :  { %3606 = vset.pattern.permute.xlu0 %v4360_v33  ;;  %3605 = vset.pattern.permute.xlu2 %v4360_v33 }
 0x8af   :  { %1229 = vmatpush.msra.mxu3 %v1196_v34  ;;  %3607 = vset.pattern.permute.xlu1 %v4360_v33 }
 0x8b1   :  { %1230 = vmatpush.msra.mxu3 %v1195_v35  ;;  %v1353_v35 = vld [vmem:[%s5599_s25 + $0x8] sm:$0xff] }
 0x8b7   :  { %v1062_v43 = vpop.xlane.xlu2 %1061 }
 0x8b8   :  { %3676 = vrcp.f32 %v1062_v43 }
 0x8be   :  { %v3677_v47 = vpop.eup %3676 }
 0x8bf   :  { %v1064_v48 = vmul.f32 %v3677_v47, %v3673_v36  ;;  %v1066_v50 = vpop.permute.xlu2 %1065  ;;  %v3638_v36 = vld [vmem:[#allocation15] ss:$0 sm:$0xff] }
 0x8c0   :  { %1086 = vmatpush.msrb.mxu2 %v1066_v50 }
 0x8c1   :  { %3425 = vmatmul.msk.f32.vlgmr.msrb.gmra.mxu2 %vm986_vm0, %v1064_v48 }
 0x8c2   :  { %1178 = vmatpush.msra.mxu2 %v1158_v2 }
 0x92d   :  { %v1021_v49 = vpop.f32.mrf.mxu2 }
 0x944   :  { %v1088_v51 = vpop.f32.mrf.mxu2 }
 0x945   :  { %1092 = vrot.lane.b32.xlu1 %v1088_v51, %s4359_s23 }
 0x9b7   :  { %v1093_v54 = vpop.permute.xlu1 %1092 }
 0x9b8   :  { %v1095_v55 = vsel %vm959_vm15, %v1021_v49, %v1093_v54 }
 0x9b9   :  { %3426 = vmatmul.msk.f32.vlgmr.msrb.gmra.mxu3 %vm819_vm4, %v1095_v55 }
 0xa3c   :  { %v1119_v56 = vpop.f32.mrf.mxu3 }
 0xa3d   :  { %v1120_v57 = vadd.f32 %v3635_v59, %v1119_v56 }
 0xa3f   :  { %v4934_v58 = vadd.f32 %v1120_v57, %v4897_v53  ;;  %v1157_v53 = vld [vmem:[%s5591_s17 + $0x10] sm:$0xff]  ;;  %s5621_s17 = sld [smem:[#allocation48_spill]] }
 0xa40   :  { %1179 = vmatpush.msra.mxu2 %v1157_v53 }
 0xa41   :  { %v1125_v60 = vsel %vm819_vm4, %v4934_v58, 0.0 }
 0xa42   :  { %1126 = vadd.xlane.f32.xlu0 %v1125_v60  ;;  %1180 = vmatpush.msra.mxu2 %v1156_v3 }
 0xa44   :  { %1181 = vmatpush.msra.mxu2 %v1155_v4 }
 0xab5   :  { %v1127_v61 = vpop.xlane.xlu0 %1126 }
 0xab6   :  { %v1128_v62 = vmul.f32 %v1127_v61, %v4887_v10  ;;  %v1271_v61 = vld [vmem:[%s5593_s26 + $0x18] sm:$0xff] }
 0xab7   :  { %1291 = vmatpush.msra.mxu1 %v1271_v61 }
 0xab8   :  { %v1129_v63 = vsub.f32 %v4934_v58, %v1128_v62  ;;  %v1270_v62 = vld [vmem:[%s5593_s26 + $0x10] sm:$0xff] }
 0xab9   :  { %1292 = vmatpush.msra.mxu1 %v1270_v62 }
 0xaba   :  { %v1130_v0 = vmul.f32 %v1129_v63, %v1129_v63 }
 0xabc   :  { %v1131_v1 = vsel %vm819_vm4, %v1130_v0, 0.0  ;;  %v1268_v0 = vld [vmem:[%s5593_s26] sm:$0xff] }
 0xabd   :  { %1132 = vadd.xlane.f32.xlu2 %v1131_v1 }
 0xad5   :  { %1497 = vperm.xlu2 %3605, %v1344_v32  }
 0xadd   :  { %1673 = vperm.xlu2 %3605, %v1353_v35  }
 0xb30   :  { %v1133_v8 = vpop.xlane.xlu2 %1132 }
 0xb31   :  { %v1134_v9 = vmul.f32 %v1133_v8, %v4887_v10  ;;  %v3640_v8 = vld [vmem:[#allocation12] ss:$0 sm:$0xff] }
 0xb33   :  { %v1135_v11 = vadd.f32 1e-05, %v1134_v9 }
 0xb35   :  { %3678 = vrsqrt.f32 %v1135_v11  ;;  %vm1142_vm2 = vweird.f32 %v1135_v11 }
 0xb3b   :  { %v3679_v12 = vpop.eup %3678 }
 0xb3c   :  { %v1137_v13 = vmul.f32 %v3679_v12, %v1135_v11  ;;  %vm1143_vm1 = vweird.f32 %v3679_v12 }
 0xb3d   :  { %vm1144_vm3 = vmor %vm1142_vm2, %vm1143_vm1 }
 0xb3e   :  { %v1138_v14 = vmul.f32 %v3679_v12, %v1137_v13 }
 0xb40   :  { %v1139_v15 = vmul.f32 0.5, %v1138_v14 }
 0xb42   :  { %v1140_v16 = vsub.f32 1.5, %v1139_v15  ;;  %v4974_v15 = vld [vmem:[%s5594_s28 + $0x18] sm:$0xff] }
 0xb43   :  { %1372 = vmatpush.msrb.mxu2 %v4974_v15  ;;  %1543 = vmatpush.msrb.mxu3 %v4974_v15 }
 0xb44   :  { %v1141_v17 = vmul.f32 %v3679_v12, %v1140_v16  ;;  %v4977_v16 = vld [vmem:[%s5595_s27 + $0x18] sm:$0xff] }
 0xb45   :  { %1395 = vmatpush.msra.mxu0 %v4977_v16 }
 0xb46   :  { %v1145_v19 = vsel %vm1144_vm3, %v3679_v12, %v1141_v17  ;;  %v3641_v12 = vld [vmem:[#allocation10] ss:$0 sm:$0xff]  ;;  %v4980_v17 = vld [vmem:[%s5594_s28 + $0x10] sm:$0xff] }
 0xb47   :  { %v1146_v37 = vmul.f32 %v1145_v19, %v1129_v63  ;;  %v1269_v63 = vld [vmem:[%s5593_s26 + $0x8] sm:$0xff]  ;;  %1373 = vmatpush.msrb.mxu2 %v4980_v17  ;;  %1544 = vmatpush.msrb.mxu3 %v4980_v17 }
 0xb48   :  { %1293 = vmatpush.msra.mxu1 %v1269_v63  ;;  %v4988_v19 = vld [vmem:[%s5594_s28 + $0x8] sm:$0xff] }
 0xb49   :  { %v1150_v21 = vmul.f32 %v3636_v18, %v1146_v37  ;;  %v4985_v18 = vld [vmem:[%s5595_s27 + $0x10] sm:$0xff]  ;;  %v4991_v37 = vld [vmem:[%s5595_s27 + $0x8] sm:$0xff]  ;;  %1374 = vmatpush.msrb.mxu2 %v4988_v19  ;;  %1545 = vmatpush.msrb.mxu3 %v4988_v19 }
 0xb4a   :  { %1294 = vmatpush.msra.mxu1 %v1268_v0  ;;  %1396 = vmatpush.msra.mxu0 %v4985_v18 }
 0xb4b   :  { %v1154_v22 = vadd.f32 %v3637_v20, %v1150_v21  ;;  %v3642_v20 = vld [vmem:[#allocation9] ss:$0 sm:$0xff]  ;;  %1375 = vmatpush.msrb.mxu2 %v5005_v25  ;;  %1546 = vmatpush.msrb.mxu3 %v5005_v25 }
 0xb4c   :  { %1397 = vmatpush.msra.mxu0 %v4991_v37 }
 0xb4d   :  { %3427 = vmatmul.msk.f32.vlgmr.msra.gmra.mxu2 %vm819_vm4, %v1154_v22 }
 0xb4e   :  { %1398 = vmatpush.msra.mxu0 %v5008_v26  ;;  %3513 = vmatpush.msra.mxu2 %v4977_v16 }
 0xb50   :  { %3514 = vmatpush.msra.mxu2 %v4985_v18 }
 0xb52   :  { %3515 = vmatpush.msra.mxu2 %v4991_v37 }
 0xb54   :  { %3516 = vmatpush.msra.mxu2 %v5008_v26 }
 0xbd0   :  { %v1183_v38 = vpop.f32.mrf.mxu2 }
 0xbd1   :  { %v1184_v39 = vadd.f32 %v3638_v36, %v1183_v38  ;;  %v5053_v38 = vld [vmem:[%s5597_s1] sm:$0xff] }
 0xbd3   :  { %v1186_v40 = vmul.f32 %v1184_v39, %v1184_v39 }
 0xbd5   :  { %v1187_v41 = vmul.f32 %v1186_v40, %v1184_v39  ;;  %v5058_v40 = vld [vmem:[%s5597_s1 + $0x8] sm:$0xff] }
 0xbd7   :  { %v1188_v42 = vmul.f32 0.044715, %v1187_v41  ;;  %v5061_v41 = vld [vmem:[%s5597_s1 + $0x20] sm:$0xff] }
 0xbd9   :  { %v1189_v43 = vadd.f32 %v1188_v42, %v1184_v39 }
 0xbdb   :  { %v1190_v47 = vmul.f32 0.7978846, %v1189_v43  ;;  %v5068_v43 = vld [vmem:[%s5597_s1 + $0x28] sm:$0xff] }
 0xbdd   :  { %3680 = vtanh.f32 %v1190_v47 }
 0xbe3   :  { %v3681_v48 = vpop.eup %3680 }
 0xbe4   :  { %v1192_v50 = vadd.f32 1.0, %v3681_v48 }
 0xbe6   :  { %v1193_v44 = vmul.f32 0.5, %v1192_v50 }
 0xbe8   :  { %v1194_v45 = vmul.f32 %v1193_v44, %v1184_v39 }
 0xbea   :  { %1231 = vmatmul.f32.vlgmr.msra.gmra.mxu3 %v1194_v45 }
 0xc6d   :  { %v1232_v49 = vpop.f32.mrf.mxu3 }
 0xc6e   :  { %v1233_v51 = vadd.f32 %v3639_v46, %v1232_v49  ;;  %v5072_v46 = vpop.permute.xlu2 %1497 }
 0xc70   :  { %v1235_v52 = vadd.f32 %v1233_v51, %v4934_v58 }
 0xc72   :  { %v1238_v54 = vsel %vm819_vm4, %v1235_v52, 0.0 }
 0xc73   :  { %1239 = vadd.xlane.f32.xlu1 %v1238_v54 }
 0xce6   :  { %v1240_v55 = vpop.xlane.xlu1 %1239 }
 0xce7   :  { %v1241_v59 = vmul.f32 %v1240_v55, %v4887_v10 }
 0xce9   :  { %v1242_v56 = vsub.f32 %v1235_v52, %v1241_v59 }
 0xceb   :  { %v1243_v57 = vmul.f32 %v1242_v56, %v1242_v56 }
 0xced   :  { %v1244_v60 = vsel %vm819_vm4, %v1243_v57, 0.0 }
 0xcee   :  { %1245 = vadd.xlane.f32.xlu0 %v1244_v60 }
 0xd02   :  { %1502 = vperm.xlu0 %3606, %v1345_v31  }
 0xd61   :  { %v1246_v58 = vpop.xlane.xlu0 %1245 }
 0xd62   :  { %v1247_v1 = vmul.f32 %v1246_v58, %v4887_v10 }
 0xd64   :  { %v1248_v2 = vadd.f32 1e-05, %v1247_v1 }
 0xd66   :  { %3682 = vrsqrt.f32 %v1248_v2  ;;  %vm1255_vm6 = vweird.f32 %v1248_v2 }
 0xd6c   :  { %v3683_v53 = vpop.eup %3682 }
 0xd6d   :  { %v1250_v3 = vmul.f32 %v3683_v53, %v1248_v2  ;;  %vm1256_vm5 = vweird.f32 %v3683_v53 }
 0xd6e   :  { %vm1257_vm7 = vmor %vm1255_vm6, %vm1256_vm5 }
 0xd6f   :  { %v1251_v4 = vmul.f32 %v3683_v53, %v1250_v3 }
 0xd71   :  { %v1252_v5 = vmul.f32 0.5, %v1251_v4 }
 0xd73   :  { %v1253_v6 = vsub.f32 1.5, %v1252_v5 }
 0xd74   :  { %v5075_v57 = vpop.permute.xlu0 %1502 }
 0xd75   :  { %v1254_v7 = vmul.f32 %v3683_v53, %v1253_v6 }
 0xd77   :  { %v1258_v9 = vsel %vm1257_vm7, %v3683_v53, %v1254_v7 }
 0xd78   :  { %v1259_v11 = vmul.f32 %v1258_v9, %v1242_v56 }
 0xd7a   :  { %v1263_v13 = vmul.f32 %v3640_v8, %v1259_v11 }
 0xd7c   :  { %v1267_v14 = vadd.f32 %v3641_v12, %v1263_v13  ;;  %v5087_v13 = vld [vmem:[%s5600_s0 + $0x10] sm:$0xff] }
 0xd7e   :  { %3428 = vmatmul.msk.f32.vlgmr.msra.gmra.mxu1 %vm819_vm4, %v1267_v14  ;;  %v5095_v14 = vld [vmem:[%s5600_s0 + $0x18] sm:$0xff] }
 0xdfb   :  { %v1296_v21 = vpop.f32.mrf.mxu1 }
 0xdfc   :  { %v1297_v22 = vadd.f32 %v3642_v20, %v1296_v21  ;;  %v1352_v20 = vld [vmem:[%s5599_s25] sm:$0xff] }
 0xdfd   :  { %1668 = vperm.xlu1 %3607, %v1352_v20  }
 0xdfe   :  { %1322 = vmatpush.msrb.mxu1 %v1297_v22 }
 0xdff   :  { %3429 = vmatmul.msk.f32.vlgmr.msrb.gmra.mxu1 %vm986_vm0, %v1299_v23 }
 0xe07   :  { %3430 = vmatmul.msk.f32.gmra.mxu1 %vm986_vm0, %v1300_v24  ;;  %v5110_v24 = vld [vmem:[%s5600_s0 + $0x28] sm:$0xff] }
 0xe6f   :  { %v5121_v35 = vpop.permute.xlu1 %1668 }
 0xe7c   :  { %v5017_v27 = vpop.f32.mrf.mxu1 }
 0xe7d   :  { %3431 = vmatmul.msk.f32.vlgmr.msrb.gmra.mxu2 %vm819_vm4, %v5017_v27  ;;  %3433 = vmatmul.msk.f32.vlgmr.msra.gmra.mxu0 %vm819_vm4, %v5017_v27 }
 0xe84   :  { %v5023_v28 = vpop.f32.mrf.mxu1 }
 0xe85   :  { %3432 = vmatmul.msk.f32.gmra.mxu2 %vm819_vm4, %v5023_v28  ;;  %1426 = vmatpush.msra.mxu1 %v5023_v28 }
 0xe87   :  { %1427 = vmatpush.msra.mxu1 %v5017_v27 }
 0xe88   :  { %3435 = vmatmul.msk.f32.vlgmr.msra.gmra.mxu1 %vm959_vm15, %v5036_v29 }
 0xe89   :  { %1566 = vmatpush.msrb.mxu1 %v4977_v16 }
 0xe8b   :  { %1567 = vmatpush.msrb.mxu1 %v4985_v18 }
 0xe8d   :  { %1568 = vmatpush.msrb.mxu1 %v4991_v37  ;;  %3434 = vmatmul.msk.f32.vlgmr.msra.gmra.mxu2 %vm819_vm4, %v5023_v28 }
 0xe8f   :  { %1569 = vmatpush.msrb.mxu1 %v5008_v26 }
 0xe90   :  { %3436 = vmatmul.msk.f32.gmra.mxu1 %vm959_vm15, %v5043_v30 }
 0xe91   :  { %1698 = vmatpush.msra.mxu1 %v4974_v15 }
 0xe93   :  { %1699 = vmatpush.msra.mxu1 %v4980_v17 }
 0xe95   :  { %1700 = vmatpush.msra.mxu1 %v4988_v19 }
 0xe97   :  { %1701 = vmatpush.msra.mxu1 %v5005_v25 }
 0xefa   :  { %v1400_v42 = vpop.f32.mrf.mxu0 }
 0xf00   :  { %v1377_v34 = vpop.f32.mrf.mxu2 }
 0xf05   :  { %v1429_v47 = vpop.f32.mrf.mxu1 }
 0xf08   :  { %v1380_v36 = vpop.f32.mrf.mxu2 }
 0xf09   :  { %1455 = vmatpush.msrb.mxu2 %v1380_v36 }
 0xf0b   :  { %1456 = vmatpush.msrb.mxu2 %v1377_v34 }
 0xf0c   :  { %3437 = vmatmul.msk.f32.vlgmr.msrb.gmra.mxu2 %vm959_vm15, %v5053_v38 }
 0xf0d   :  { %v1432_v51 = vpop.f32.mrf.mxu1 }
 0xf10   :  { %v1403_v39 = vpop.f32.mrf.mxu2 }
 0xf11   :  { %1484 = vmatpush.msrb.mxu0 %v1403_v39 }
 0xf13   :  { %1485 = vmatpush.msrb.mxu0 %v1400_v42 }
 0xf14   :  { %3438 = vmatmul.msk.f32.gmra.mxu2 %vm959_vm15, %v5058_v40  ;;  %3439 = vmatmul.msk.f32.vlgmr.msrb.gmra.mxu0 %vm959_vm15, %v5061_v41 }
 0xf1c   :  { %3440 = vmatmul.msk.f32.gmra.mxu0 %vm959_vm15, %v5068_v43 }
 0xf8f   :  { %v1458_v48 = vpop.f32.mrf.mxu2 }
 0xf90   :  { %v1459_v50 = vadd.f32 %v1458_v48, %v1429_v47 }
 0xf91   :  { %v1487_v44 = vpop.f32.mrf.mxu0 }
 0xf92   :  { %v1493_v45 = vadd.f32 %v1487_v44, %v1459_v50 }
 0xf94   :  { %v1505_v49 = vadd.f32 %v5072_v46, %v1493_v45 }
 0xf96   :  { %v1507_v52 = vmul.f32 %v1505_v49, %v1505_v49 }
 0xf97   :  { %v1461_v54 = vpop.f32.mrf.mxu2 }
 0xf98   :  { %v1509_v55 = vmul.f32 %v1507_v52, %v1505_v49  ;;  %v1462_v59 = vadd.f32 %v1461_v54, %v1432_v51 }
 0xf99   :  { %v1490_v56 = vpop.f32.mrf.mxu0 }
 0xf9a   :  { %v1511_v60 = vmul.f32 0.044715, %v1509_v55  ;;  %v1494_v61 = vadd.f32 %v1490_v56, %v1462_v59 }
 0xf9c   :  { %v1513_v62 = vadd.f32 %v1511_v60, %v1505_v49  ;;  %v1506_v63 = vadd.f32 %v5075_v57, %v1494_v61 }
 0xf9e   :  { %v1515_v0 = vmul.f32 0.7978846, %v1513_v62  ;;  %v1508_v58 = vmul.f32 %v1506_v63, %v1506_v63 }
 0xfa0   :  { %3684 = vtanh.f32 %v1515_v0  ;;  %v1510_v1 = vmul.f32 %v1508_v58, %v1506_v63 }
 0xfa2   :  { %v1512_v2 = vmul.f32 0.044715, %v1510_v1 }
 0xfa4   :  { %v1514_v53 = vadd.f32 %v1512_v2, %v1506_v63 }
 0xfa6   :  { %v3685_v3 = vpop.eup %3684  ;;  %v1516_v4 = vmul.f32 0.7978846, %v1514_v53 }
 0xfa7   :  { %v1519_v5 = vadd.f32 1.0, %v3685_v3 }
 0xfa8   :  { %3686 = vtanh.f32 %v1516_v4 }
 0xfa9   :  { %v1521_v6 = vmul.f32 0.5, %v1519_v5 }
 0xfab   :  { %v1523_v7 = vmul.f32 %v1521_v6, %v1505_v49  ;;  %v5131_v49 = vpop.permute.xlu2 %1673 }
 0xfad   :  { %3441 = vmatmul.msk.f32.vlgmr.msrb.gmra.mxu3 %vm819_vm4, %v1523_v7  ;;  %3443 = vmatmul.msk.f32.vlgmr.msrb.gmra.mxu1 %vm819_vm4, %v1523_v7 }
 0xfae   :  { %v3687_v8 = vpop.eup %3686 }
 0xfaf   :  { %v1520_v9 = vadd.f32 1.0, %v3687_v8 }
 0xfb1   :  { %v1522_v11 = vmul.f32 0.5, %v1520_v9 }
 0xfb3   :  { %v1524_v12 = vmul.f32 %v1522_v11, %v1506_v63 }
 0xfb5   :  { %3442 = vmatmul.msk.f32.gmra.mxu3 %vm819_vm4, %v1524_v12  ;;  %3444 = vmatmul.msk.f32.gmra.mxu1 %vm819_vm4, %v1524_v12 }
 0xfb6   :  { %1597 = vmatpush.msra.mxu2 %v1524_v12 }
 0xfb8   :  { %1598 = vmatpush.msra.mxu2 %v1523_v7 }
 0xfb9   :  { %3445 = vmatmul.msk.f32.vlgmr.msra.gmra.mxu2 %vm959_vm15, %v5087_v13 }
 0xfba   :  { %1721 = vmatpush.msrb.mxu2 %v4977_v16 }
 0xfbc   :  { %1722 = vmatpush.msrb.mxu2 %v4985_v18 }
 0xfbe   :  { %1723 = vmatpush.msrb.mxu2 %v4991_v37 }
 0xfc0   :  { %1724 = vmatpush.msrb.mxu2 %v5008_v26 }
 0xfc1   :  { %3446 = vmatmul.msk.f32.gmra.mxu2 %vm959_vm15, %v5095_v14 }
 0xfc2   :  { %1841 = vmatpush.msra.mxu2 %v4974_v15  ;;  %v5102_v15 = vld [vmem:[%s5600_s0 + $0x20] sm:$0xff] }
 0xfc4   :  { %1842 = vmatpush.msra.mxu2 %v4980_v17 }
 0xfc6   :  { %1843 = vmatpush.msra.mxu2 %v4988_v19  ;;  %v5107_v19 = vld [vmem:[%s5600_s0] sm:$0xff] }
 0xfc8   :  { %1844 = vmatpush.msra.mxu2 %v5005_v25  ;;  %v5117_v25 = vld [vmem:[%s5600_s0 + $0x8] sm:$0xff] }
0x102a   :  { %v1571_v21 = vpop.f32.mrf.mxu1 }
0x1030   :  { %v1548_v22 = vpop.f32.mrf.mxu3 }
0x1032   :  { %v1574_v23 = vpop.f32.mrf.mxu1 }
0x1033   :  { %1655 = vmatpush.msra.mxu3 %v1574_v23 }
0x1035   :  { %1656 = vmatpush.msra.mxu3 %v1571_v21 }
0x1036   :  { %3449 = vmatmul.msk.f32.vlgmr.msra.gmra.mxu3 %vm959_vm15, %v5102_v15 }
0x1038   :  { %v1551_v17 = vpop.f32.mrf.mxu3 }
0x1039   :  { %1626 = vmatpush.msra.mxu0 %v1551_v17 }
0x103b   :  { %1627 = vmatpush.msra.mxu0 %v1548_v22 }
0x103c   :  { %3447 = vmatmul.msk.f32.vlgmr.msra.gmra.mxu0 %vm959_vm15, %v5107_v19  ;;  %v1600_v31 = vpop.f32.mrf.mxu2 }
0x103e   :  { %3450 = vmatmul.msk.f32.gmra.mxu3 %vm959_vm15, %v5110_v24 }
0x1044   :  { %3448 = vmatmul.msk.f32.gmra.mxu0 %vm959_vm15, %v5117_v25  ;;  %v1603_v42 = vpop.f32.mrf.mxu2 }
0x10b9   :  { %v1629_v32 = vpop.f32.mrf.mxu0  ;;  %v1658_v33 = vpop.f32.mrf.mxu3 }
0x10ba   :  { %v1630_v34 = vadd.f32 %v1629_v32, %v1600_v31 }
0x10bc   :  { %v1664_v36 = vadd.f32 %v1658_v33, %v1630_v34 }
0x10be   :  { %v1676_v39 = vadd.f32 %v5121_v35, %v1664_v36 }
0x10c0   :  { %v5125_v47 = vadd.f32 %v1676_v39, %v5017_v27 }
0x10c1   :  { %v1632_v48 = vpop.f32.mrf.mxu0  ;;  %v1661_v50 = vpop.f32.mrf.mxu3 }
0x10c2   :  { %v1633_v44 = vadd.f32 %v1632_v48, %v1603_v42  ;;  %3451 = vmatmul.msk.f32.vlgmr.msra.gmra.mxu1 %vm819_vm4, %v5125_v47  ;;  %3453 = vmatmul.msk.f32.vlgmr.msrb.gmra.mxu2 %vm819_vm4, %v5125_v47 }
0x10c4   :  { %v1665_v45 = vadd.f32 %v1661_v50, %v1633_v44 }
0x10c6   :  { %v1677_v51 = vadd.f32 %v5131_v49, %v1665_v45 }
0x10c8   :  { %v5135_v52 = vadd.f32 %v1677_v51, %v5023_v28 }
0x10ca   :  { %3452 = vmatmul.msk.f32.gmra.mxu1 %vm819_vm4, %v5135_v52  ;;  %3454 = vmatmul.msk.f32.gmra.mxu2 %vm819_vm4, %v5135_v52 }
0x10cb   :  { %1746 = vmatpush.msrb.mxu0 %v5135_v52 }
0x10cd   :  { %1747 = vmatpush.msrb.mxu0 %v5125_v47 }
0x10ce   :  { %3455 = vmatmul.msk.f32.vlgmr.msrb.gmra.mxu0 %vm959_vm15, %v5036_v29 }
0x10cf   :  { %1864 = vmatpush.msra.mxu0 %v4977_v16 }
0x10d1   :  { %1865 = vmatpush.msra.mxu0 %v4985_v18 }
0x10d3   :  { %1866 = vmatpush.msra.mxu0 %v4991_v37 }
0x10d5   :  { %1867 = vmatpush.msra.mxu0 %v5008_v26 }
0x10d6   :  { %3456 = vmatmul.msk.f32.gmra.mxu0 %vm959_vm15, %v5043_v30 }
0x113f   :  { %v1703_v27 = vpop.f32.mrf.mxu1 }
0x1145   :  { %v1726_v28 = vpop.f32.mrf.mxu2 }
0x1147   :  { %v1706_v54 = vpop.f32.mrf.mxu1 }
0x1148   :  { %1769 = vmatpush.msrb.mxu3 %v1706_v54  ;;  %v2012_v54 = vld [vmem:[%s5601_s2 + $0x10] sm:$0xff] }
0x114a   :  { %1770 = vmatpush.msrb.mxu3 %v1703_v27 }
0x114b   :  { %3457 = vmatmul.msk.f32.vlgmr.msrb.gmra.mxu3 %vm959_vm15, %v5053_v38  ;;  %v1749_v16 = vpop.f32.mrf.mxu0 }
0x114d   :  { %v1729_v29 = vpop.f32.mrf.mxu2 }
0x114e   :  { %1792 = vmatpush.msrb.mxu1 %v1729_v29  ;;  %v2011_v29 = vld [vmem:[%s5601_s2 + $0x8] sm:$0xff] }
0x1150   :  { %1793 = vmatpush.msrb.mxu1 %v1726_v28  ;;  %v2013_v28 = vld [vmem:[%s5601_s2 + $0x18] sm:$0xff] }
0x1151   :  { %3459 = vmatmul.msk.f32.vlgmr.msrb.gmra.mxu1 %vm959_vm15, %v5061_v41  ;;  %2039 = vmatpush.msrb.mxu0 %v2013_v28 }
0x1153   :  { %3458 = vmatmul.msk.f32.gmra.mxu3 %vm959_vm15, %v5058_v40  ;;  %v1752_v38 = vpop.f32.mrf.mxu0  ;;  %2040 = vmatpush.msrb.mxu0 %v2012_v54 }
0x1155   :  { %2041 = vmatpush.msrb.mxu0 %v2011_v29 }
0x1159   :  { %3460 = vmatmul.msk.f32.gmra.mxu1 %vm959_vm15, %v5068_v43 }
0x11ce   :  { %v1772_v18 = vpop.f32.mrf.mxu3  ;;  %v1795_v37 = vpop.f32.mrf.mxu1 }
0x11cf   :  { %v1773_v26 = vadd.f32 %v1772_v18, %v1749_v16  ;;  %v2010_v16 = vld [vmem:[%s5601_s2] sm:$0xff] }
0x11d0   :  { %2042 = vmatpush.msrb.mxu0 %v2010_v16 }
0x11d1   :  { %v1801_v30 = vadd.f32 %v1795_v37, %v1773_v26 }
0x11d3   :  { %v1803_v55 = vadd.f32 %v1801_v30, %v5072_v46 }
0x11d5   :  { %v1805_v59 = vmul.f32 %v1803_v55, %v1803_v55 }
0x11d6   :  { %v1775_v56 = vpop.f32.mrf.mxu3  ;;  %v1798_v60 = vpop.f32.mrf.mxu1 }
0x11d7   :  { %v1807_v61 = vmul.f32 %v1805_v59, %v1803_v55  ;;  %v1776_v62 = vadd.f32 %v1775_v56, %v1752_v38 }
0x11d9   :  { %v1809_v41 = vmul.f32 0.044715, %v1807_v61  ;;  %v1802_v63 = vadd.f32 %v1798_v60, %v1776_v62 }
0x11db   :  { %v1811_v0 = vadd.f32 %v1809_v41, %v1803_v55  ;;  %v1804_v40 = vadd.f32 %v1802_v63, %v5075_v57 }
0x11dd   :  { %v1813_v58 = vmul.f32 0.7978846, %v1811_v0  ;;  %v1806_v43 = vmul.f32 %v1804_v40, %v1804_v40 }
0x11df   :  { %3688 = vtanh.f32 %v1813_v58  ;;  %v1808_v1 = vmul.f32 %v1806_v43, %v1804_v40 }
0x11e1   :  { %v1810_v2 = vmul.f32 0.044715, %v1808_v1  ;;  %v3644_v1 = vld [vmem:[%s5603_s24] ss:$0 sm:$0xff] }
0x11e3   :  { %v1812_v53 = vadd.f32 %v1810_v2, %v1804_v40 }
0x11e5   :  { %v3689_v3 = vpop.eup %3688  ;;  %v1814_v4 = vmul.f32 0.7978846, %v1812_v53 }
0x11e6   :  { %v1817_v46 = vadd.f32 1.0, %v3689_v3 }
0x11e7   :  { %3690 = vtanh.f32 %v1814_v4 }
0x11e8   :  { %v1819_v5 = vmul.f32 0.5, %v1817_v46  ;;  %v2006_v46 = vld [vmem:[%s4660_s3] sm:$0xff] }
0x11ea   :  { %v1821_v6 = vmul.f32 %v1819_v5, %v1803_v55 }
0x11ec   :  { %3461 = vmatmul.msk.f32.vlgmr.msra.gmra.mxu2 %vm819_vm4, %v1821_v6  ;;  %3463 = vmatmul.msk.f32.vlgmr.msra.gmra.mxu0 %vm819_vm4, %v1821_v6 }
0x11ed   :  { %v3691_v7 = vpop.eup %3690 }
0x11ee   :  { %v1818_v8 = vadd.f32 1.0, %v3691_v7 }
0x11f0   :  { %v1820_v9 = vmul.f32 0.5, %v1818_v8 }
0x11f2   :  { %v1822_v57 = vmul.f32 %v1820_v9, %v1804_v40  ;;  %v3643_v40 = vld [vmem:[%s5602_s13] ss:$0 sm:$0xff] }
0x11f4   :  { %3462 = vmatmul.msk.f32.gmra.mxu2 %vm819_vm4, %v1822_v57  ;;  %3464 = vmatmul.msk.f32.gmra.mxu0 %vm819_vm4, %v1822_v57 }
0x11f5   :  { %1889 = vmatpush.msra.mxu3 %v1822_v57 }
0x11f7   :  { %1890 = vmatpush.msra.mxu3 %v1821_v6 }
0x11f8   :  { %3465 = vmatmul.msk.f32.vlgmr.msra.gmra.mxu3 %vm959_vm15, %v5087_v13 }
0x1200   :  { %3466 = vmatmul.msk.f32.gmra.mxu3 %vm959_vm15, %v5095_v14 }
0x1269   :  { %v1869_v11 = vpop.f32.mrf.mxu0 }
0x126f   :  { %v1846_v12 = vpop.f32.mrf.mxu2 }
0x1271   :  { %v1872_v20 = vpop.f32.mrf.mxu0 }
0x1272   :  { %1935 = vmatpush.msrb.mxu2 %v1872_v20 }
0x1274   :  { %1936 = vmatpush.msrb.mxu2 %v1869_v11  ;;  %v2007_v11 = vld [vmem:[%s4660_s3 + $0x8] sm:$0xff]  ;;  %s5604_s3 = sld [smem:[#allocation47_spill]] }
0x1275   :  { %3469 = vmatmul.msk.f32.vlgmr.msrb.gmra.mxu2 %vm959_vm15, %v5102_v15 }
0x1277   :  { %v1849_v21 = vpop.f32.mrf.mxu2 }
0x1278   :  { %1912 = vmatpush.msra.mxu1 %v1849_v21 }
0x127a   :  { %1913 = vmatpush.msra.mxu1 %v1846_v12 }
0x127b   :  { %3467 = vmatmul.msk.f32.vlgmr.msra.gmra.mxu1 %vm959_vm15, %v5107_v19  ;;  %v1892_v13 = vpop.f32.mrf.mxu3 }
0x127d   :  { %3470 = vmatmul.msk.f32.gmra.mxu2 %vm959_vm15, %v5110_v24 }
0x1283   :  { %3468 = vmatmul.msk.f32.gmra.mxu1 %vm959_vm15, %v5117_v25  ;;  %v1895_v15 = vpop.f32.mrf.mxu3 }
0x12f8   :  { %v1915_v14 = vpop.f32.mrf.mxu1  ;;  %v1938_v22 = vpop.f32.mrf.mxu2 }
0x12f9   :  { %v1916_v23 = vadd.f32 %v1915_v14, %v1892_v13 }
0x12fb   :  { %v1944_v17 = vadd.f32 %v1938_v22, %v1916_v23 }
0x12fd   :  { %v1946_v31 = vadd.f32 %v1944_v17, %v5121_v35 }
0x12ff   :  { %v1948_v32 = vadd.f32 %v1946_v31, %v5125_v47 }
0x1300   :  { %v1918_v33 = vpop.f32.mrf.mxu1  ;;  %v1941_v34 = vpop.f32.mrf.mxu2 }
0x1301   :  { %v1919_v36 = vadd.f32 %v1918_v33, %v1895_v15  ;;  %v1952_v19 = vsel %vm819_vm4, %v1948_v32, 0.0 }
0x1302   :  { %1953 = vadd.xlane.f32.xlu1 %v1952_v19 }
0x1303   :  { %v1945_v24 = vadd.f32 %v1941_v34, %v1919_v36 }
0x1305   :  { %v1947_v39 = vadd.f32 %v1945_v24, %v5131_v49 }
0x1307   :  { %v1949_v25 = vadd.f32 %v1947_v39, %v5135_v52 }
0x1309   :  { %v1955_v42 = vsel %vm819_vm4, %v1949_v25, 0.0 }
0x130a   :  { %1956 = vadd.xlane.f32.xlu2 %v1955_v42 }
0x1375   :  { %v1954_v35 = vpop.xlane.xlu1 %1953 }
0x1376   :  { %v1958_v47 = vmul.f32 %v1954_v35, %v4887_v10 }
0x1378   :  { %v1960_v48 = vsub.f32 %v1948_v32, %v1958_v47 }
0x137a   :  { %v1962_v50 = vmul.f32 %v1960_v48, %v1960_v48 }
0x137c   :  { %v1964_v44 = vsel %vm819_vm4, %v1962_v50, 0.0 }
0x137d   :  { %v1957_v45 = vpop.xlane.xlu2 %1956  ;;  %1965 = vadd.xlane.f32.xlu0 %v1964_v44 }
0x137e   :  { %v1959_v49 = vmul.f32 %v1957_v45, %v4887_v10 }
0x1380   :  { %v1961_v51 = vsub.f32 %v1949_v25, %v1959_v49 }
0x1382   :  { %v1963_v27 = vmul.f32 %v1961_v51, %v1961_v51 }
0x1384   :  { %v1967_v52 = vsel %vm819_vm4, %v1963_v27, 0.0 }
0x1385   :  { %1968 = vadd.xlane.f32.xlu1 %v1967_v52 }
0x13f0   :  { %v1966_v18 = vpop.xlane.xlu0 %1965 }
0x13f1   :  { %v1970_v37 = vmul.f32 %v1966_v18, %v4887_v10 }
0x13f3   :  { %v1972_v26 = vadd.f32 1e-05, %v1970_v37 }
0x13f5   :  { %3692 = vrsqrt.f32 %v1972_v26  ;;  %vm1980_vm9 = vweird.f32 %v1972_v26 }
0x13f8   :  { %v1969_v30 = vpop.xlane.xlu1 %1968 }
0x13f9   :  { %v1971_v55 = vmul.f32 %v1969_v30, %v4887_v10 }
0x13fb   :  { %v3693_v38 = vpop.eup %3692  ;;  %v1973_v59 = vadd.f32 1e-05, %v1971_v55 }
0x13fc   :  { %v1975_v56 = vmul.f32 %v3693_v38, %v1972_v26  ;;  %vm1981_vm8 = vweird.f32 %v3693_v38 }
0x13fd   :  { %3694 = vrsqrt.f32 %v1973_v59  ;;  %vm1982_vm10 = vmor %vm1980_vm9, %vm1981_vm8  ;;  %vm1990_vm12 = vweird.f32 %v1973_v59 }
0x13fe   :  { %v1976_v60 = vmul.f32 %v3693_v38, %v1975_v56 }
0x1400   :  { %v1977_v61 = vmul.f32 0.5, %v1976_v60 }
0x1402   :  { %v1978_v62 = vsub.f32 1.5, %v1977_v61 }
0x1403   :  { %v3695_v41 = vpop.eup %3694 }
0x1404   :  { %v1979_v63 = vmul.f32 %v3693_v38, %v1978_v62  ;;  %v1985_v0 = vmul.f32 %v3695_v41, %v1973_v59  ;;  %vm1991_vm11 = vweird.f32 %v3695_v41 }
0x1405   :  { %vm1992_vm13 = vmor %vm1990_vm12, %vm1991_vm11 }
0x1406   :  { %v1983_v58 = vsel %vm1982_vm10, %v3693_v38, %v1979_v63  ;;  %v1986_v43 = vmul.f32 %v3695_v41, %v1985_v0 }
0x1407   :  { %v1994_v2 = vmul.f32 %v1983_v58, %v1960_v48 }
0x1408   :  { %v1987_v53 = vmul.f32 0.5, %v1986_v43 }
0x1409   :  { %v1999_v3 = vmul.f32 %v3643_v40, %v1994_v2 }
0x140a   :  { %v1988_v4 = vsub.f32 1.5, %v1987_v53 }
0x140b   :  { %v2004_v5 = vadd.f32 %v3644_v1, %v1999_v3 }
0x140c   :  { %v1989_v6 = vmul.f32 %v3695_v41, %v1988_v4 }
0x140d   :  { %v5196_v7 = vadd.f32 %v2006_v46, %v2004_v5 }
0x140e   :  { %v1993_v8 = vsel %vm1992_vm13, %v3695_v41, %v1989_v6 }
0x140f   :  { %v1995_v9 = vmul.f32 %v1993_v8, %v1961_v51  ;;  %3471 = vmatmul.msk.f32.vlgmr.msrb.gmra.mxu0 %vm819_vm4, %v5196_v7 }
0x1411   :  { %v2000_v57 = vmul.f32 %v3643_v40, %v1995_v9 }
0x1413   :  { %v2005_v12 = vadd.f32 %v3644_v1, %v2000_v57 }
0x1415   :  { %v5201_v20 = vadd.f32 %v2007_v11, %v2005_v12 }
0x1417   :  { %3472 = vmatmul.msk.f32.gmra.mxu0 %vm819_vm4, %v5201_v20 }
0x148c   :  { %v5205_v21 = vpop.f32.mrf.mxu0 }
0x148d   :  { %v5209_v13 = vmul.f32 %v5205_v21, %v5205_v21 }
0x148f   :  { %2222 = vrot.lane.b32.xlu0 %v5209_v13, %s4354_s16  ;;  %2258 = vrot.lane.b32.xlu1 %v5209_v13, %s4355_s18 }
0x1494   :  { %v5215_v14 = vpop.f32.mrf.mxu0 }
0x1495   :  { %v5219_v22 = vmul.f32 %v5215_v14, %v5215_v14 }
0x1497   :  { %2086 = vrot.lane.b32.xlu0 %v5219_v22, %s4356_s22  ;;  %2260 = vrot.lane.b32.xlu2 %v5219_v22, %s4355_s18 }
0x149f   :  { %2224 = vrot.lane.b32.xlu2 %v5219_v22, %s4354_s16 }
0x14a7   :  { %2084 = vrot.lane.b32.xlu2 %v5209_v13, %s4356_s22 }
0x14f1   :  { %v2261_v23 = vpop.permute.xlu2 %2260 }
0x14f2   :  { %v2267_v17 = vsel %vm959_vm15, %v2261_v23, 0.0 }
0x14f3   :  { %2268 = vadd.xlane.f32.xlu1 %v2267_v17 }
0x14f9   :  { %v2225_v31 = vpop.permute.xlu2 %2224 }
0x14fa   :  { %v2231_v15 = vsel %vm959_vm15, %v2225_v31, 0.0 }
0x14fb   :  { %2232 = vadd.xlane.f32.xlu1 %v2231_v15 }
0x1501   :  { %v2223_v32 = vpop.permute.xlu0 %2222  ;;  %v2085_v33 = vpop.permute.xlu2 %2084 }
0x1502   :  { %v2259_v34 = vpop.permute.xlu1 %2258  ;;  %v2228_v36 = vsel %vm959_vm15, %v2223_v32, 0.0  ;;  %v2090_v19 = vsel %vm959_vm15, %v2085_v33, 0.0 }
0x1503   :  { %2229 = vadd.xlane.f32.xlu2 %v2228_v36  ;;  %2091 = vadd.xlane.f32.xlu1 %v2090_v19  ;;  %v2264_v24 = vsel %vm959_vm15, %v2259_v34, 0.0 }
0x1504   :  { %2265 = vadd.xlane.f32.xlu0 %v2264_v24 }
0x1509   :  { %v2087_v39 = vpop.permute.xlu0 %2086 }
0x150a   :  { %v2093_v25 = vsel %vm959_vm15, %v2087_v39, 0.0 }
0x150c   :  { %2094 = vadd.xlane.f32.xlu0 %v2093_v25 }
0x1566   :  { %v2269_v42 = vpop.xlane.xlu1 %2268 }
0x1567   :  { %v2271_v35 = vadd.f32 1e-08, %v2269_v42 }
0x1569   :  { %3696 = vrsqrt.f32 %v2271_v35  ;;  %vm2288_vm0 = vweird.f32 %v2271_v35 }
0x156e   :  { %v2233_v47 = vpop.xlane.xlu1 %2232 }
0x156f   :  { %v3697_v48 = vpop.eup %3696  ;;  %v2235_v50 = vadd.f32 1e-08, %v2233_v47 }
0x1570   :  { %v2283_v44 = vmul.f32 %v3697_v48, %v2271_v35  ;;  %vm2289_vm14 = vweird.f32 %v3697_v48 }
0x1571   :  { %3698 = vrsqrt.f32 %v2235_v50  ;;  %vm2290_vm1 = vmor %vm2288_vm0, %vm2289_vm14  ;;  %vm2252_vm3 = vweird.f32 %v2235_v50 }
0x1572   :  { %v2284_v45 = vmul.f32 %v3697_v48, %v2283_v44 }
0x1574   :  { %v2285_v49 = vmul.f32 0.5, %v2284_v45 }
0x1576   :  { %v2286_v51 = vsub.f32 1.5, %v2285_v49  ;;  %v2230_v27 = vpop.xlane.xlu2 %2229  ;;  %v2092_v52 = vpop.xlane.xlu1 %2091 }
0x1577   :  { %v3699_v28 = vpop.eup %3698  ;;  %v2234_v54 = vadd.f32 1e-08, %v2230_v27  ;;  %v2266_v29 = vpop.xlane.xlu0 %2265  ;;  %v5235_v37 = vadd.f32 1e-08, %v2092_v52 }
0x1578   :  { %v2247_v16 = vmul.f32 %v3699_v28, %v2235_v50  ;;  %v2270_v18 = vadd.f32 1e-08, %v2266_v29  ;;  %v2287_v26 = vmul.f32 %v3697_v48, %v2286_v51  ;;  %vm2253_vm2 = vweird.f32 %v3699_v28 }
0x1579   :  { %3700 = vrsqrt.f32 %v2234_v54  ;;  %vm2254_vm5 = vmor %vm2252_vm3, %vm2253_vm2  ;;  %vm2242_vm8 = vweird.f32 %v2234_v54  ;;  %v2052_v50 = vsel %vm959_vm15, %v5209_v13, 0.0 }
0x157a   :  { %v2248_v30 = vmul.f32 %v3699_v28, %v2247_v16  ;;  %3702 = vrsqrt.f32 %v2270_v18  ;;  %v2291_v55 = vsel %vm2290_vm1, %v3697_v48, %v2287_v26  ;;  %vm2278_vm10 = vweird.f32 %v2270_v18 }
0x157b   :  { %v2293_v38 = vmul.f32 %v2291_v55, %v5215_v14  ;;  %3704 = vrsqrt.f32 %v5235_v37  ;;  %vm2104_vm1 = vweird.f32 %v5235_v37  ;;  %v2055_v48 = vsel %vm959_vm15, %v5219_v22, 0.0 }
0x157c   :  { %v2249_v59 = vmul.f32 0.5, %v2248_v30 }
0x157d   :  { %2304 = vrot.lane.b32.xlu2 %v2293_v38, %s4355_s18 }
0x157e   :  { %v2250_v56 = vsub.f32 1.5, %v2249_v59 }
0x157f   :  { %v3701_v60 = vpop.eup %3700  ;;  %v2095_v61 = vpop.xlane.xlu0 %2094 }
0x1580   :  { %v3703_v62 = vpop.eup %3702  ;;  %v2237_v41 = vmul.f32 %v3701_v60, %v2234_v54  ;;  %v2097_v63 = vadd.f32 1e-08, %v2095_v61  ;;  %v2251_v0 = vmul.f32 %v3699_v28, %v2250_v56  ;;  %vm2243_vm6 = vweird.f32 %v3701_v60 }
0x1581   :  { %v2273_v40 = vmul.f32 %v3703_v62, %v2270_v18  ;;  %v3705_v58 = vpop.eup %3704  ;;  %vm2279_vm7 = vweird.f32 %v3703_v62  ;;  %vm2244_vm9 = vmor %vm2242_vm8, %vm2243_vm6 }
0x1582   :  { %v2238_v43 = vmul.f32 %v3701_v60, %v2237_v41  ;;  %3706 = vrsqrt.f32 %v2097_v63  ;;  %v2255_v2 = vsel %vm2254_vm5, %v3699_v28, %v2251_v0  ;;  %v2099_v46 = vmul.f32 %v3705_v58, %v5235_v37  ;;  %vm2280_vm11 = vmor %vm2278_vm10, %vm2279_vm7 }
0x1583   :  { %v2274_v1 = vmul.f32 %v3703_v62, %v2273_v40  ;;  %v2257_v3 = vmul.f32 %v2255_v2, %v5215_v14  ;;  %vm2114_vm13 = vweird.f32 %v2097_v63  ;;  %vm2105_vm0 = vweird.f32 %v3705_v58 }
0x1584   :  { %v2239_v53 = vmul.f32 0.5, %v2238_v43  ;;  %v2100_v57 = vmul.f32 %v3705_v58, %v2099_v46  ;;  %vm2106_vm2 = vmor %vm2104_vm1, %vm2105_vm0 }
0x1585   :  { %v2275_v4 = vmul.f32 0.5, %v2274_v1  ;;  %2298 = vrot.lane.b32.xlu2 %v2257_v3, %s4354_s16  ;;  %v5272_v3 = vld [vmem:[%s5604_s3 + $0x8] sm:$0xff] }
0x1586   :  { %v2240_v5 = vsub.f32 1.5, %v2239_v53  ;;  %v2101_v33 = vmul.f32 0.5, %v2100_v57 }
0x1587   :  { %v2276_v6 = vsub.f32 1.5, %v2275_v4 }
0x1588   :  { %v3707_v8 = vpop.eup %3706  ;;  %v2241_v9 = vmul.f32 %v3701_v60, %v2240_v5  ;;  %v2102_v19 = vsub.f32 1.5, %v2101_v33 }
0x1589   :  { %v2109_v11 = vmul.f32 %v3707_v8, %v2097_v63  ;;  %v2277_v12 = vmul.f32 %v3703_v62, %v2276_v6  ;;  %vm2115_vm12 = vweird.f32 %v3707_v8 }
0x158a   :  { %v2245_v23 = vsel %vm2244_vm9, %v3701_v60, %v2241_v9  ;;  %vm2116_vm14 = vmor %vm2114_vm13, %vm2115_vm12  ;;  %v2103_v42 = vmul.f32 %v3705_v58, %v2102_v19 }
0x158b   :  { %v2110_v17 = vmul.f32 %v3707_v8, %v2109_v11  ;;  %v2256_v31 = vmul.f32 %v2245_v23, %v5205_v21  ;;  %v2281_v15 = vsel %vm2280_vm11, %v3703_v62, %v2277_v12 }
0x158c   :  { %v2292_v32 = vmul.f32 %v2281_v15, %v5205_v21  ;;  %v2107_v35 = vsel %vm2106_vm2, %v3705_v58, %v2103_v42  ;;  %v5267_v58 = vld [vmem:[%s5604_s3] sm:$0xff] }
0x158d   :  { %v2111_v34 = vmul.f32 0.5, %v2110_v17  ;;  %2296 = vrot.lane.b32.xlu1 %v2256_v31, %s4354_s16  ;;  %v2118_v47 = vmul.f32 %v2107_v35, %v5205_v21  ;;  %v3608_v31 = vpack.i.bf16 %v5205_v21, %v5215_v14 }
0x158e   :  { %2302 = vrot.lane.b32.xlu0 %v2292_v32, %s4355_s18 }
0x158f   :  { %v2112_v36 = vsub.f32 1.5, %v2111_v34 }
0x1591   :  { %v2113_v24 = vmul.f32 %v3707_v8, %v2112_v36 }
0x1593   :  { %v2117_v39 = vsel %vm2116_vm14, %v3707_v8, %v2113_v24 }
0x1594   :  { %v2119_v25 = vmul.f32 %v2117_v39, %v5215_v14 }
0x1596   :  { %2124 = vrot.lane.b32.xlu1 %v2119_v25, %s4356_s22 }
0x159e   :  { %2122 = vrot.lane.b32.xlu1 %v2118_v47, %s4356_s22 }
0x15ae   :  { %2056 = vadd.xlane.f32.xlu2 %v2055_v48 }
0x15b8   :  { %2053 = vadd.xlane.f32.xlu0 %v2052_v50 }
0x15d7   :  { %v2305_v44 = vpop.permute.xlu2 %2304 }
0x15d8   :  { %3479 = vmatpush.xpose.msk.msra.mxu2 %vm959_vm15, %v2305_v44 }
0x15df   :  { %v2299_v27 = vpop.permute.xlu2 %2298 }
0x15ff   :  { %v2297_v45 = vpop.permute.xlu1 %2296 }
0x1600   :  { %v2303_v49 = vpop.permute.xlu0 %2302 }
0x1601   :  { %3480 = vmatpush.xpose.msk.msra.mxu2 %vm959_vm15, %v2303_v49 }
0x1604   :  { %3481 = vmatmul.msk.f32.vlgmr.msra.gmra.mxu2 %vm959_vm15, %v2297_v45 }
0x1608   :  { %v2125_v51 = vpop.permute.xlu1 %2124 }
0x1609   :  { %3473 = vmatpush.xpose.msk.msrb.mxu3 %vm959_vm15, %v2125_v51 }
0x160c   :  { %3482 = vmatmul.msk.f32.gmra.mxu2 %vm959_vm15, %v2299_v27 }
0x1610   :  { %v2123_v22 = vpop.permute.xlu1 %2122 }
0x1611   :  { %3474 = vmatpush.xpose.msk.msrb.mxu3 %vm959_vm15, %v2123_v22 }
0x1621   :  { %v2057_v13 = vpop.xlane.xlu2 %2056 }
0x1622   :  { %v2059_v52 = vadd.f32 1e-08, %v2057_v13 }
0x1624   :  { %3708 = vrsqrt.f32 %v2059_v52  ;;  %vm2076_vm8 = vweird.f32 %v2059_v52 }
0x162a   :  { %v3709_v29 = vpop.eup %3708 }
0x162b   :  { %v2054_v28 = vpop.xlane.xlu0 %2053  ;;  %v2071_v16 = vmul.f32 %v3709_v29, %v2059_v52  ;;  %vm2077_vm7 = vweird.f32 %v3709_v29 }
0x162c   :  { %v2058_v54 = vadd.f32 1e-08, %v2054_v28  ;;  %vm2078_vm9 = vmor %vm2076_vm8, %vm2077_vm7 }
0x162d   :  { %v2072_v37 = vmul.f32 %v3709_v29, %v2071_v16 }
0x162e   :  { %3710 = vrsqrt.f32 %v2058_v54  ;;  %vm2066_vm5 = vweird.f32 %v2058_v54 }
0x162f   :  { %v2073_v55 = vmul.f32 0.5, %v2072_v37 }
0x1631   :  { %v2074_v56 = vsub.f32 1.5, %v2073_v55 }
0x1633   :  { %v2075_v41 = vmul.f32 %v3709_v29, %v2074_v56 }
0x1634   :  { %v3711_v18 = vpop.eup %3710 }
0x1635   :  { %v2061_v26 = vmul.f32 %v3711_v18, %v2058_v54  ;;  %vm2067_vm3 = vweird.f32 %v3711_v18  ;;  %v2079_v63 = vsel %vm2078_vm9, %v3709_v29, %v2075_v41 }
0x1636   :  { %vm2068_vm6 = vmor %vm2066_vm5, %vm2067_vm3  ;;  %v2081_v0 = vmul.f32 %v2079_v63, %v5215_v14  ;;  %v2017_v63 = vld [vmem:[%s5605_s7 + $0x18] sm:$0xff] }
0x1637   :  { %v2062_v30 = vmul.f32 %v3711_v18, %v2061_v26  ;;  %2429 = vmatpush.msra.mxu3 %v2017_v63 }
0x1639   :  { %v2063_v38 = vmul.f32 0.5, %v2062_v30 }
0x163b   :  { %v2064_v59 = vsub.f32 1.5, %v2063_v38 }
0x163d   :  { %v2065_v60 = vmul.f32 %v3711_v18, %v2064_v59 }
0x163f   :  { %v2069_v61 = vsel %vm2068_vm6, %v3711_v18, %v2065_v60 }
0x1640   :  { %v2080_v62 = vmul.f32 %v2069_v61, %v5205_v21 }
0x1642   :  { %3475 = vmatmul.msk.f32.vlgmr.msrb.gmra.mxu3 %vm959_vm15, %v2080_v62 }
0x164a   :  { %3476 = vmatmul.msk.f32.gmra.mxu3 %vm959_vm15, %v2081_v0  ;;  %v2016_v0 = vld [vmem:[%s5605_s7 + $0x10] sm:$0xff] }
0x164b   :  { %2430 = vmatpush.msra.mxu3 %v2016_v0 }
0x1687   :  { %v2331_v40 = vpop.f32.mrf.mxu2 }
0x1688   :  { %v2337_v43 = vmul.f32 10.0, %v2331_v40  ;;  %v2015_v40 = vld [vmem:[%s5605_s7 + $0x8] sm:$0xff] }
0x1689   :  { %2431 = vmatpush.msra.mxu3 %v2015_v40 }
0x168a   :  { %v2339_v1 = vadd.f32 %v2337_v43, %v5267_v58  ;;  %v2014_v43 = vld [vmem:[%s5605_s7] sm:$0xff] }
0x168b   :  { %2432 = vmatpush.msra.mxu3 %v2014_v43 }
0x168c   :  { %v2341_v2 = vsel %vm959_vm15, %v2339_v1, -inf }
0x168d   :  { %2342 = vmax.xlane.f32.xlu1 %v2341_v2 }
0x168f   :  { %v2334_v53 = vpop.f32.mrf.mxu2 }
0x1690   :  { %v2338_v4 = vmul.f32 10.0, %v2334_v53 }
0x1692   :  { %v2340_v46 = vadd.f32 %v2338_v4, %v5272_v3 }
0x1694   :  { %v2344_v5 = vsel %vm959_vm15, %v2340_v46, -inf }
0x1695   :  { %2345 = vmax.xlane.f32.xlu0 %v2344_v5 }
0x16c5   :  { %v2153_v6 = vpop.f32.mrf.mxu3 }
0x16c6   :  { %v2159_v8 = vmul.f32 10.0, %v2153_v6 }
0x16c8   :  { %v2161_v9 = vadd.f32 %v2159_v8, %v5267_v58  ;;  %v2444_v8 = vld [vmem:[%s5606_s10 + $0x10] sm:$0xff] }
0x16ca   :  { %v2163_v57 = vsel %vm959_vm15, %v2161_v9, -inf }
0x16cb   :  { %2164 = vmax.xlane.f32.xlu2 %v2163_v57  ;;  %v2442_v57 = vld [vmem:[%s5606_s10] sm:$0xff] }
0x16cd   :  { %v2156_v11 = vpop.f32.mrf.mxu3 }
0x16ce   :  { %v2160_v12 = vmul.f32 10.0, %v2156_v11  ;;  %v3645_v11 = vld [vmem:[%s5607_s15] ss:$0 sm:$0xff] }
0x16d0   :  { %v2162_v23 = vadd.f32 %v2160_v12, %v5272_v3 }
0x16d2   :  { %v2166_v17 = vsel %vm959_vm15, %v2162_v23, -inf }
0x16d3   :  { %2167 = vmax.xlane.f32.xlu0 %v2166_v17 }
0x16e7   :  { %3609 = vrot.lane.b32.xlu0 %v3608_v31, %s4358_s12 }
0x1700   :  { %v2343_v15 = vpop.xlane.xlu1 %2342 }
0x1701   :  { %v2347_v32 = vsub.f32 %v2339_v1, %v2343_v15  ;;  %v2445_v1 = vld [vmem:[%s5606_s10 + $0x18] sm:$0xff] }
0x1703   :  { %v2349_v33 = vmul.f32 1.442695, %v2347_v32 }
0x1705   :  { %3712 = vpow2.f32 %v2349_v33  ;;  %v3646_v33 = vld [vmem:[%s5608_s9] ss:$0 sm:$0xff] }
0x1708   :  { %v2346_v34 = vpop.xlane.xlu0 %2345 }
0x1709   :  { %v2348_v36 = vsub.f32 %v2340_v46, %v2346_v34 }
0x170b   :  { %v3713_v19 = vpop.eup %3712  ;;  %v2351_v24 = vmul.f32 1.442695, %v2348_v36 }
0x170c   :  { %v2353_v39 = vsel %vm959_vm15, %v3713_v19, 0.0 }
0x170d   :  { %3714 = vpow2.f32 %v2351_v24  ;;  %2354 = vadd.xlane.f32.xlu2 %v2353_v39 }
0x1713   :  { %v3715_v25 = vpop.eup %3714 }
0x1714   :  { %v2356_v42 = vsel %vm959_vm15, %v3715_v25, 0.0 }
0x1715   :  { %2357 = vadd.xlane.f32.xlu2 %v2356_v42 }
0x172d   :  { %3614 = vrot.lane.b32.xlu2 %v3608_v31, %s4357_s6 }
0x173e   :  { %v2165_v21 = vpop.xlane.xlu2 %2164 }
0x173f   :  { %v2169_v14 = vsub.f32 %v2161_v9, %v2165_v21  ;;  %v2443_v9 = vld [vmem:[%s5606_s10 + $0x8] sm:$0xff] }
0x1741   :  { %v2171_v35 = vmul.f32 1.442695, %v2169_v14 }
0x1743   :  { %3716 = vpow2.f32 %v2171_v35 }
0x1746   :  { %v2168_v47 = vpop.xlane.xlu0 %2167 }
0x1747   :  { %v2170_v48 = vsub.f32 %v2162_v23, %v2168_v47 }
0x1749   :  { %v3717_v50 = vpop.eup %3716  ;;  %v2173_v44 = vmul.f32 1.442695, %v2170_v48 }
0x174a   :  { %v2175_v45 = vsel %vm959_vm15, %v3717_v50, 0.0 }
0x174b   :  { %3718 = vpow2.f32 %v2173_v44  ;;  %2176 = vadd.xlane.f32.xlu1 %v2175_v45 }
0x1751   :  { %v3719_v49 = vpop.eup %3718 }
0x1752   :  { %v2178_v51 = vsel %vm959_vm15, %v3719_v49, 0.0 }
0x1753   :  { %2179 = vadd.xlane.f32.xlu1 %v2178_v51 }
0x1759   :  { %v3610_v27 = vpop.permute.xlu0 %3609 }
0x175a   :  { %v3611_v22 = vunpack.i.l.bf16 %v3610_v27  ;;  %v3612_v13 = vunpack.i.h.bf16 %v3610_v27 }
0x175c   :  { %2389 = vmatpush.msra.mxu0 %v3611_v22 }
0x175e   :  { %2390 = vmatpush.msra.mxu0 %v3612_v13 }
0x1780   :  { %v2355_v52 = vpop.xlane.xlu2 %2354 }
0x1781   :  { %3720 = vrcp.f32 %v2355_v52 }
0x1787   :  { %v3721_v28 = vpop.eup %3720 }
0x1788   :  { %v2361_v54 = vmul.f32 %v3721_v28, %v3713_v19  ;;  %v2358_v29 = vpop.xlane.xlu2 %2357 }
0x1789   :  { %3722 = vrcp.f32 %v2358_v29 }
0x178a   :  { %3483 = vmatmul.msk.f32.vlgmr.msra.gmra.mxu0 %vm959_vm15, %v2361_v54 }
0x178f   :  { %v3723_v16 = vpop.eup %3722 }
0x1790   :  { %v3615_v18 = vpop.permute.xlu2 %3614  ;;  %v2362_v37 = vmul.f32 %v3723_v16, %v3715_v25 }
0x1791   :  { %v3616_v26 = vunpack.i.l.bf16 %v3615_v18  ;;  %v3617_v30 = vunpack.i.h.bf16 %v3615_v18 }
0x1792   :  { %3484 = vmatmul.msk.f32.gmra.mxu0 %vm959_vm15, %v2362_v37 }
0x1793   :  { %2213 = vmatpush.msrb.mxu1 %v3616_v26 }
0x1795   :  { %2214 = vmatpush.msrb.mxu1 %v3617_v30 }
0x1797   :  { %2468 = vmatpush.msra.mxu1 %v2445_v1 }
0x1799   :  { %2469 = vmatpush.msra.mxu1 %v2444_v8  ;;  %v2590_v8 = vld [vmem:[%s5609_s4 + $0x60] sm:$0xff] }
0x179b   :  { %2470 = vmatpush.msra.mxu1 %v2443_v9  ;;  %v2589_v9 = vld [vmem:[%s5609_s4 + $0x58] sm:$0xff] }
0x179d   :  { %2471 = vmatpush.msra.mxu1 %v2442_v57  ;;  %v2588_v57 = vld [vmem:[%s5609_s4 + $0x50] sm:$0xff] }
0x17be   :  { %v2177_v55 = vpop.xlane.xlu1 %2176 }
0x17bf   :  { %3724 = vrcp.f32 %v2177_v55 }
0x17c5   :  { %v3725_v38 = vpop.eup %3724 }
0x17c6   :  { %v2183_v59 = vmul.f32 %v3725_v38, %v3717_v50  ;;  %v2180_v56 = vpop.xlane.xlu1 %2179  ;;  %v4361_v38 = vmov 128.0  }
0x17c7   :  { %3726 = vrcp.f32 %v2180_v56 }
0x17c8   :  { %3477 = vmatmul.msk.f32.vlgmr.msrb.gmra.mxu1 %vm959_vm15, %v2183_v59 }
0x17cd   :  { %v3727_v60 = vpop.eup %3726 }
0x17ce   :  { %v2184_v61 = vmul.f32 %v3727_v60, %v3719_v49  ;;  %v2593_v60 = vld [vmem:[%s5609_s4 + $0x78] sm:$0xff] }
0x17cf   :  { %2598 = vmatpush.msrb.mxu2 %v2593_v60  ;;  %v2623_v60 = vld [vmem:[%s5610_s29] sm:$0xff] }
0x17d0   :  { %3478 = vmatmul.msk.f32.gmra.mxu1 %vm959_vm15, %v2184_v61  ;;  %v2592_v61 = vld [vmem:[%s5609_s4 + $0x70] sm:$0xff] }
0x17d1   :  { %2599 = vmatpush.msrb.mxu2 %v2592_v61  ;;  %v3649_v61 = vld [vmem:[%s5613_s11] ss:$0 sm:$0xff] }
0x1807   :  { %v2392_v62 = vpop.f32.mrf.mxu0 }
0x1808   :  { %2400 = vrot.lane.b32.xlu0 %v2392_v62, %s4359_s23 }
0x180f   :  { %v2395_v41 = vpop.f32.mrf.mxu0 }
0x1810   :  { %2402 = vrot.lane.b32.xlu1 %v2395_v41, %s4359_s23 }
0x1845   :  { %v2216_v2 = vpop.f32.mrf.mxu1 }
0x184d   :  { %v2219_v46 = vpop.f32.mrf.mxu1 }
0x187a   :  { %v2401_v53 = vpop.permute.xlu0 %2400 }
0x187b   :  { %v2406_v4 = vsel %vm959_vm15, %v2216_v2, %v2401_v53 }
0x187c   :  { %3485 = vmatmul.msk.f32.vlgmr.msra.gmra.mxu3 %vm819_vm4, %v2406_v4 }
0x1882   :  { %v2403_v5 = vpop.permute.xlu1 %2402 }
0x1883   :  { %v2407_v6 = vsel %vm959_vm15, %v2219_v46, %v2403_v5 }
0x1884   :  { %3486 = vmatmul.msk.f32.gmra.mxu3 %vm819_vm4, %v2407_v6  ;;  %v2591_v6 = vld [vmem:[%s5609_s4 + $0x68] sm:$0xff] }
0x1885   :  { %2600 = vmatpush.msrb.mxu2 %v2591_v6 }
0x1887   :  { %2601 = vmatpush.msrb.mxu2 %v2590_v8 }
0x1889   :  { %2602 = vmatpush.msrb.mxu2 %v2589_v9 }
0x188b   :  { %2603 = vmatpush.msrb.mxu2 %v2588_v57 }
0x18ff   :  { %v2434_v12 = vpop.f32.mrf.mxu3 }
0x1900   :  { %v2435_v23 = vadd.f32 %v3645_v11, %v2434_v12  ;;  %v2586_v12 = vld [vmem:[%s5609_s4 + $0x40] sm:$0xff] }
0x1902   :  { %v5308_v17 = vadd.f32 %v2435_v23, %v5196_v7  ;;  %v2585_v23 = vld [vmem:[%s5609_s4 + $0x38] sm:$0xff] }
0x1904   :  { %3487 = vmatmul.msk.f32.vlgmr.msra.gmra.mxu1 %vm819_vm4, %v5308_v17 }
0x1907   :  { %v2437_v31 = vpop.f32.mrf.mxu3 }
0x1908   :  { %v2438_v15 = vadd.f32 %v3645_v11, %v2437_v31  ;;  %v2587_v11 = vld [vmem:[%s5609_s4 + $0x48] sm:$0xff]  ;;  %v2584_v31 = vld [vmem:[%s5609_s4 + $0x30] sm:$0xff] }
0x1909   :  { %2604 = vmatpush.msrb.mxu2 %v2587_v11 }
0x190a   :  { %v5313_v32 = vadd.f32 %v2438_v15, %v5201_v20  ;;  %v2583_v15 = vld [vmem:[%s5609_s4 + $0x28] sm:$0xff] }
0x190b   :  { %2605 = vmatpush.msrb.mxu2 %v2586_v12 }
0x190c   :  { %3488 = vmatmul.msk.f32.gmra.mxu1 %vm819_vm4, %v5313_v32 }
0x190d   :  { %2606 = vmatpush.msrb.mxu2 %v2585_v23 }
0x190f   :  { %2607 = vmatpush.msrb.mxu2 %v2584_v31 }
0x1911   :  { %2608 = vmatpush.msrb.mxu2 %v2583_v15 }
0x1981   :  { %v2473_v34 = vpop.f32.mrf.mxu1 }
0x1982   :  { %v2474_v36 = vadd.f32 %v3646_v33, %v2473_v34  ;;  %v2581_v34 = vld [vmem:[%s5609_s4 + $0x18] sm:$0xff] }
0x1984   :  { %v3489_v19 = vmul.f32 -1.442695, %v2474_v36 }
0x1986   :  { %3728 = vpow2.f32 %v3489_v19  ;;  %v2579_v19 = vld [vmem:[%s5609_s4 + $0x8] sm:$0xff] }
0x1989   :  { %v2476_v24 = vpop.f32.mrf.mxu1 }
0x198a   :  { %v2477_v39 = vadd.f32 %v3646_v33, %v2476_v24  ;;  %v2582_v33 = vld [vmem:[%s5609_s4 + $0x20] sm:$0xff] }
0x198b   :  { %2609 = vmatpush.msrb.mxu2 %v2582_v33  ;;  %v2578_v24 = vld [vmem:[%s5609_s4] sm:$0xff] }
0x198c   :  { %v3729_v7 = vpop.eup %3728  ;;  %v3490_v25 = vmul.f32 -1.442695, %v2477_v39 }
0x198d   :  { %v2485_v42 = vadd.f32 1.0, %v3729_v7  ;;  %2610 = vmatpush.msrb.mxu2 %v2581_v34 }
0x198e   :  { %3730 = vpow2.f32 %v3490_v25 }
0x198f   :  { %3732 = vrcp.f32 %v2485_v42  ;;  %v2498_v48 = vand.u32 2147483648, %v2485_v42  ;;  %v2496_v44 = vand.u32 2147483647, %v2485_v42  ;;  %vm2492_vm11 = vweird.f32 %v2485_v42 }
0x1991   :  { %v2499_v51 = vor.u32 1.1754944e-38, %v2498_v48  ;;  %vm2497_vm13 = vcmp.eq.f32.partialorder %v2496_v44, 8.507059e+37 }
0x1994   :  { %v3731_v21 = vpop.eup %3730 }
0x1995   :  { %v3733_v14 = vpop.eup %3732  ;;  %v2486_v35 = vadd.f32 1.0, %v3731_v21 }
0x1996   :  { %v2488_v20 = vmul.f32 %v3733_v14, %v2485_v42  ;;  %vm2493_vm10 = vweird.f32 %v3733_v14  ;;  %v2626_v42 = vld [vmem:[%s5610_s29 + $0x18] sm:$0xff] }
0x1997   :  { %3734 = vrcp.f32 %v2486_v35  ;;  %vm2494_vm12 = vmor %vm2492_vm11, %vm2493_vm10  ;;  %v2513_v54 = vand.u32 2147483648, %v2486_v35  ;;  %v2511_v16 = vand.u32 2147483647, %v2486_v35  ;;  %vm2507_vm0 = vweird.f32 %v2486_v35  ;;  %2650 = vmatpush.msrb.mxu0 %v2626_v42 }
0x1998   :  { %v2489_v47 = vsub.f32 1.0, %v2488_v20  ;;  %3736 = vrcp.f32 %v4361_v38 }
0x1999   :  { %v2514_v37 = vor.u32 1.1754944e-38, %v2513_v54  ;;  %vm2512_vm2 = vcmp.eq.f32.partialorder %v2511_v16, 8.507059e+37 }
0x199a   :  { %v2490_v50 = vmul.f32 %v3733_v14, %v2489_v47 }
0x199c   :  { %v2491_v45 = vadd.f32 %v3733_v14, %v2490_v50 }
0x199d   :  { %v3735_v49 = vpop.eup %3734 }
0x199e   :  { %v2495_v27 = vsel %vm2494_vm12, %v3733_v14, %v2491_v45  ;;  %v2503_v22 = vmul.f32 %v3735_v49, %v2486_v35  ;;  %vm2508_vm14 = vweird.f32 %v3735_v49  ;;  %v3737_v59 = vpop.eup %3736 }
0x199f   :  { %v2500_v13 = vsel %vm2497_vm13, %v2499_v51, %v2495_v27  ;;  %vm2509_vm1 = vmor %vm2507_vm0, %vm2508_vm14  ;;  %v2526_v56 = vmul.f32 128.0, %v3737_v59  ;;  %vm2530_vm3 = vweird.f32 %v3737_v59  ;;  %v3647_v27 = vld [vmem:[%s5611_s8] ss:$0 sm:$0xff] }
0x19a0   :  { %v2517_v52 = vmul.f32 %v2500_v13, %v2474_v36  ;;  %v2504_v28 = vsub.f32 1.0, %v2503_v22  ;;  %v2580_v36 = vld [vmem:[%s5609_s4 + $0x10] sm:$0xff] }
0x19a1   :  { %v2527_v62 = vsub.f32 1.0, %v2526_v56  ;;  %2611 = vmatpush.msrb.mxu2 %v2580_v36  ;;  %v2624_v56 = vld [vmem:[%s5610_s29 + $0x8] sm:$0xff] }
0x19a2   :  { %2521 = vadd.xlane.f32.xlu0 %v2517_v52  ;;  %v2505_v29 = vmul.f32 %v3735_v49, %v2504_v28  ;;  %v3648_v28 = vld [vmem:[%s5612_s19] ss:$0 sm:$0xff] }
0x19a3   :  { %v2528_v41 = vmul.f32 %v3737_v59, %v2527_v62  ;;  %2612 = vmatpush.msrb.mxu2 %v2579_v19 }
0x19a4   :  { %v2506_v18 = vadd.f32 %v3735_v49, %v2505_v29 }
0x19a5   :  { %v2529_v63 = vadd.f32 %v3737_v59, %v2528_v41  ;;  %2613 = vmatpush.msrb.mxu2 %v2578_v24 }
0x19a6   :  { %v2510_v26 = vsel %vm2509_vm1, %v3735_v49, %v2506_v18 }
0x19a7   :  { %v2515_v30 = vsel %vm2512_vm2, %v2514_v37, %v2510_v26  ;;  %v5320_v0 = vsel %vm2530_vm3, %v3737_v59, %v2529_v63  ;;  %v2625_v59 = vld [vmem:[%s5610_s29 + $0x10] sm:$0xff] }
0x19a8   :  { %v2518_v55 = vmul.f32 %v2515_v30, %v2477_v39  ;;  %2651 = vmatpush.msrb.mxu0 %v2625_v59 }
0x19aa   :  { %2523 = vadd.xlane.f32.xlu2 %v2518_v55  ;;  %2652 = vmatpush.msrb.mxu0 %v2624_v56 }
0x19ac   :  { %2653 = vmatpush.msrb.mxu0 %v2623_v60 }
0x1a15   :  { %v2522_v40 = vpop.xlane.xlu0 %2521 }
0x1a16   :  { %v2532_v43 = vmul.f32 %v5320_v0, %v2522_v40 }
0x1a18   :  { %v2534_v1 = vsub.f32 %v2517_v52, %v2532_v43 }
0x1a1a   :  { %v2536_v2 = vmul.f32 %v2534_v1, %v2534_v1 }
0x1a1c   :  { %2538 = vadd.xlane.f32.xlu1 %v2536_v2 }
0x1a1d   :  { %v2524_v53 = vpop.xlane.xlu2 %2523 }
0x1a1e   :  { %v2533_v4 = vmul.f32 %v5320_v0, %v2524_v53 }
0x1a20   :  { %v5324_v46 = vsub.f32 %v2518_v55, %v2533_v4 }
0x1a22   :  { %v2537_v5 = vmul.f32 %v5324_v46, %v5324_v46 }
0x1a24   :  { %2540 = vadd.xlane.f32.xlu0 %v2537_v5 }
0x1a8f   :  { %v2539_v39 = vpop.xlane.xlu1 %2538 }
0x1a90   :  { %v2542_v7 = vmul.f32 %v2539_v39, %v5320_v0 }
0x1a92   :  { %v2544_v25 = vadd.f32 1e-05, %v2542_v7 }
0x1a94   :  { %3738 = vrsqrt.f32 %v2544_v25  ;;  %vm2552_vm6 = vweird.f32 %v2544_v25 }
0x1a97   :  { %v2541_v21 = vpop.xlane.xlu0 %2540 }
0x1a98   :  { %v2543_v14 = vmul.f32 %v2541_v21, %v5320_v0 }
0x1a9a   :  { %v3739_v35 = vpop.eup %3738  ;;  %v2545_v20 = vadd.f32 1e-05, %v2543_v14 }
0x1a9b   :  { %v2547_v47 = vmul.f32 %v3739_v35, %v2544_v25  ;;  %vm2553_vm5 = vweird.f32 %v3739_v35 }
0x1a9c   :  { %3740 = vrsqrt.f32 %v2545_v20  ;;  %vm2554_vm7 = vmor %vm2552_vm6, %vm2553_vm5  ;;  %vm2562_vm9 = vweird.f32 %v2545_v20 }
0x1a9d   :  { %v2548_v48 = vmul.f32 %v3739_v35, %v2547_v47 }
0x1a9f   :  { %v2549_v50 = vmul.f32 0.5, %v2548_v48 }
0x1aa1   :  { %v2550_v44 = vsub.f32 1.5, %v2549_v50 }
0x1aa2   :  { %v3741_v45 = vpop.eup %3740 }
0x1aa3   :  { %v2551_v49 = vmul.f32 %v3739_v35, %v2550_v44  ;;  %v2557_v51 = vmul.f32 %v3741_v45, %v2545_v20  ;;  %vm2563_vm8 = vweird.f32 %v3741_v45 }
0x1aa4   :  { %vm2564_vm10 = vmor %vm2562_vm9, %vm2563_vm8 }
0x1aa5   :  { %v2555_v22 = vsel %vm2554_vm7, %v3739_v35, %v2551_v49  ;;  %v2558_v13 = vmul.f32 %v3741_v45, %v2557_v51 }
0x1aa6   :  { %v2566_v52 = vmul.f32 %v2555_v22, %v2534_v1 }
0x1aa7   :  { %v2559_v54 = vmul.f32 0.5, %v2558_v13 }
0x1aa8   :  { %v2571_v29 = vmul.f32 %v3647_v27, %v2566_v52 }
0x1aa9   :  { %v2560_v16 = vsub.f32 1.5, %v2559_v54 }
0x1aaa   :  { %v2576_v18 = vadd.f32 %v3648_v28, %v2571_v29 }
0x1aab   :  { %v2561_v37 = vmul.f32 %v3741_v45, %v2560_v16 }
0x1aac   :  { %2614 = vmatmul.f32.vlgmr.msrb.gmra.mxu2 %v2576_v18 }
0x1aad   :  { %v2565_v26 = vsel %vm2564_vm10, %v3741_v45, %v2561_v37 }
0x1aae   :  { %v2567_v30 = vmul.f32 %v2565_v26, %v5324_v46 }
0x1ab0   :  { %v2572_v55 = vmul.f32 %v3647_v27, %v2567_v30 }
0x1ab2   :  { %v2577_v38 = vadd.f32 %v3648_v28, %v2572_v55 }
0x1ab4   :  { %2617 = vmatmul.f32.gmra.mxu2 %v2577_v38 }
0x1b2f   :  { %v2615_v62 = vpop.f32.mrf.mxu2 }
0x1b30   :  { %v2616_v41 = vadd.f32 %v3649_v61, %v2615_v62 }
0x1b32   :  { %v5353_v63 = vadd.f32 %v2616_v41, %v5308_v17 }
0x1b34   :  { %3491 = vmatmul.msk.f32.vlgmr.msrb.gmra.mxu0 %vm819_vm4, %v5353_v63 }
0x1b37   :  { %v2618_v40 = vpop.f32.mrf.mxu2 }
0x1b38   :  { %v2619_v43 = vadd.f32 %v3649_v61, %v2618_v40 }
0x1b3a   :  { %v5358_v1 = vadd.f32 %v2619_v43, %v5313_v32 }
0x1b3c   :  { %3492 = vmatmul.msk.f32.gmra.mxu0 %vm819_vm4, %v5358_v1 }
0x1bb1   :  { %v5362_v2 = vpop.f32.mrf.mxu0 }
0x1bb2   :  { %v5366_v53 = vmul.f32 %v5362_v2, %v5362_v2 }
0x1bb4   :  { %2833 = vrot.lane.b32.xlu1 %v5366_v53, %s4354_s16  ;;  %2869 = vrot.lane.b32.xlu0 %v5366_v53, %s4355_s18 }
0x1bb9   :  { %v5372_v17 = vpop.f32.mrf.mxu0 }
0x1bba   :  { %v5376_v32 = vmul.f32 %v5372_v17, %v5372_v17 }
0x1bbc   :  { %2835 = vrot.lane.b32.xlu0 %v5376_v32, %s4354_s16  ;;  %2871 = vrot.lane.b32.xlu2 %v5376_v32, %s4355_s18 }
0x1bc4   :  { %2697 = vrot.lane.b32.xlu2 %v5376_v32, %s4356_s22 }
0x1bcc   :  { %2695 = vrot.lane.b32.xlu2 %v5366_v53, %s4356_s22 }
0x1c16   :  { %v2872_v4 = vpop.permute.xlu2 %2871 }
0x1c17   :  { %v2878_v46 = vsel %vm959_vm15, %v2872_v4, 0.0 }
0x1c18   :  { %2879 = vadd.xlane.f32.xlu0 %v2878_v46 }
0x1c1e   :  { %v2698_v57 = vpop.permute.xlu2 %2697 }
0x1c1f   :  { %v2704_v23 = vsel %vm959_vm15, %v2698_v57, 0.0 }
0x1c26   :  { %v2834_v5 = vpop.permute.xlu1 %2833  ;;  %v2870_v6 = vpop.permute.xlu0 %2869 }
0x1c27   :  { %v2875_v8 = vsel %vm959_vm15, %v2870_v6, 0.0  ;;  %v2839_v9 = vsel %vm959_vm15, %v2834_v5, 0.0  ;;  %v2696_v31 = vpop.permute.xlu2 %2695 }
0x1c28   :  { %2876 = vadd.xlane.f32.xlu1 %v2875_v8  ;;  %2840 = vadd.xlane.f32.xlu2 %v2839_v9  ;;  %v2701_v15 = vsel %vm959_vm15, %v2696_v31, 0.0 }
0x1c2e   :  { %v2836_v11 = vpop.permute.xlu0 %2835 }
0x1c2f   :  { %v2842_v12 = vsel %vm959_vm15, %v2836_v11, 0.0 }
0x1c30   :  { %2843 = vadd.xlane.f32.xlu0 %v2842_v12  ;;  %2705 = vadd.xlane.f32.xlu1 %v2704_v23 }
0x1c38   :  { %2702 = vadd.xlane.f32.xlu0 %v2701_v15 }
0x1c8b   :  { %v2880_v33 = vpop.xlane.xlu0 %2879 }
0x1c8c   :  { %v2882_v34 = vadd.f32 1e-08, %v2880_v33 }
0x1c8e   :  { %3742 = vrsqrt.f32 %v2882_v34  ;;  %vm2899_vm12 = vweird.f32 %v2882_v34 }
0x1c94   :  { %v3743_v36 = vpop.eup %3742 }
0x1c95   :  { %v2894_v19 = vmul.f32 %v3743_v36, %v2882_v34  ;;  %vm2900_vm11 = vweird.f32 %v3743_v36 }
0x1c96   :  { %vm2901_vm13 = vmor %vm2899_vm12, %vm2900_vm11 }
0x1c97   :  { %v2895_v24 = vmul.f32 %v3743_v36, %v2894_v19 }
0x1c99   :  { %v2896_v39 = vmul.f32 0.5, %v2895_v24 }
0x1c9b   :  { %v2897_v7 = vsub.f32 1.5, %v2896_v39  ;;  %v2877_v25 = vpop.xlane.xlu1 %2876  ;;  %v2841_v42 = vpop.xlane.xlu2 %2840 }
0x1c9c   :  { %v2881_v21 = vadd.f32 1e-08, %v2877_v25  ;;  %v2845_v14 = vadd.f32 1e-08, %v2841_v42  ;;  %v2663_v25 = vsel %vm959_vm15, %v5366_v53, 0.0 }
0x1c9d   :  { %v2898_v35 = vmul.f32 %v3743_v36, %v2897_v7  ;;  %v2666_v7 = vsel %vm959_vm15, %v5376_v32, 0.0 }
0x1c9e   :  { %3744 = vrsqrt.f32 %v2881_v21  ;;  %vm2889_vm0 = vweird.f32 %v2881_v21  ;;  %vm2853_vm3 = vweird.f32 %v2845_v14 }
0x1c9f   :  { %3746 = vrsqrt.f32 %v2845_v14  ;;  %v2902_v20 = vsel %vm2901_vm13, %v3743_v36, %v2898_v35 }
0x1ca0   :  { %v2904_v47 = vmul.f32 %v2902_v20, %v5372_v17 }
0x1ca2   :  { %2915 = vrot.lane.b32.xlu2 %v2904_v47, %s4355_s18 }
0x1ca3   :  { %v2844_v48 = vpop.xlane.xlu0 %2843  ;;  %v2706_v50 = vpop.xlane.xlu1 %2705 }
0x1ca4   :  { %v3745_v44 = vpop.eup %3744  ;;  %v2846_v45 = vadd.f32 1e-08, %v2844_v48  ;;  %v2708_v49 = vadd.f32 1e-08, %v2706_v50 }
0x1ca5   :  { %v3747_v51 = vpop.eup %3746  ;;  %v2884_v27 = vmul.f32 %v3745_v44, %v2881_v21  ;;  %vm2890_vm14 = vweird.f32 %v3745_v44 }
0x1ca6   :  { %v2848_v22 = vmul.f32 %v3747_v51, %v2845_v14  ;;  %3748 = vrsqrt.f32 %v2846_v45  ;;  %vm2854_vm1 = vweird.f32 %v3747_v51  ;;  %vm2891_vm2 = vmor %vm2889_vm0, %vm2890_vm14  ;;  %vm2863_vm7 = vweird.f32 %v2846_v45 }
0x1ca7   :  { %v2885_v13 = vmul.f32 %v3745_v44, %v2884_v27  ;;  %3750 = vrsqrt.f32 %v2708_v49  ;;  %vm2855_vm5 = vmor %vm2853_vm3, %vm2854_vm1  ;;  %vm2725_vm10 = vweird.f32 %v2708_v49 }
0x1ca8   :  { %v2849_v52 = vmul.f32 %v3747_v51, %v2848_v22 }
0x1ca9   :  { %v2886_v28 = vmul.f32 0.5, %v2885_v13 }
0x1caa   :  { %v2850_v54 = vmul.f32 0.5, %v2849_v52 }
0x1cab   :  { %v2887_v29 = vsub.f32 1.5, %v2886_v28  ;;  %v2703_v16 = vpop.xlane.xlu0 %2702 }
0x1cac   :  { %v3749_v18 = vpop.eup %3748  ;;  %v2851_v37 = vsub.f32 1.5, %v2850_v54  ;;  %v2707_v26 = vadd.f32 1e-08, %v2703_v16 }
0x1cad   :  { %v3751_v30 = vpop.eup %3750  ;;  %v2858_v55 = vmul.f32 %v3749_v18, %v2846_v45  ;;  %v2888_v38 = vmul.f32 %v3745_v44, %v2887_v29  ;;  %vm2864_vm6 = vweird.f32 %v3749_v18 }
0x1cae   :  { %v2720_v59 = vmul.f32 %v3751_v30, %v2708_v49  ;;  %3752 = vrsqrt.f32 %v2707_v26  ;;  %v2852_v61 = vmul.f32 %v3747_v51, %v2851_v37  ;;  %vm2865_vm8 = vmor %vm2863_vm7, %vm2864_vm6  ;;  %vm2726_vm9 = vweird.f32 %v3751_v30 }
0x1caf   :  { %v2859_v56 = vmul.f32 %v3749_v18, %v2858_v55  ;;  %v2892_v60 = vsel %vm2891_vm2, %v3745_v44, %v2888_v38  ;;  %vm2727_vm11 = vmor %vm2725_vm10, %vm2726_vm9  ;;  %vm2715_vm13 = vweird.f32 %v2707_v26 }
0x1cb0   :  { %v2721_v62 = vmul.f32 %v3751_v30, %v2720_v59  ;;  %v2903_v41 = vmul.f32 %v2892_v60, %v5362_v2  ;;  %v2856_v43 = vsel %vm2855_vm5, %v3747_v51, %v2852_v61 }
0x1cb1   :  { %v2860_v40 = vmul.f32 0.5, %v2859_v56  ;;  %v2867_v46 = vmul.f32 %v2856_v43, %v5362_v2 }
0x1cb2   :  { %v2722_v4 = vmul.f32 0.5, %v2721_v62  ;;  %2913 = vrot.lane.b32.xlu1 %v2903_v41, %s4355_s18  ;;  %s5615_s18 = sld [smem:[#allocation62_spill]] }
0x1cb3   :  { %v2861_v5 = vsub.f32 1.5, %v2860_v40  ;;  %2907 = vrot.lane.b32.xlu0 %v2867_v46, %s4354_s16 }
0x1cb4   :  { %v3753_v6 = vpop.eup %3752  ;;  %v2723_v8 = vsub.f32 1.5, %v2722_v4 }
0x1cb5   :  { %v2710_v9 = vmul.f32 %v3753_v6, %v2707_v26  ;;  %v2862_v57 = vmul.f32 %v3749_v18, %v2861_v5  ;;  %vm2716_vm12 = vweird.f32 %v3753_v6 }
0x1cb6   :  { %v2724_v15 = vmul.f32 %v3751_v30, %v2723_v8  ;;  %vm2717_vm14 = vmor %vm2715_vm13, %vm2716_vm12 }
0x1cb7   :  { %v2711_v11 = vmul.f32 %v3753_v6, %v2710_v9  ;;  %v2866_v12 = vsel %vm2865_vm8, %v3749_v18, %v2862_v57 }
0x1cb8   :  { %v2868_v23 = vmul.f32 %v2866_v12, %v5372_v17  ;;  %v2728_v34 = vsel %vm2727_vm11, %v3751_v30, %v2724_v15 }
0x1cb9   :  { %v2712_v31 = vmul.f32 0.5, %v2711_v11  ;;  %v2730_v36 = vmul.f32 %v2728_v34, %v5372_v17 }
0x1cba   :  { %2909 = vrot.lane.b32.xlu2 %v2868_v23, %s4354_s16  ;;  %s5614_s16 = sld [smem:[#allocation64_spill]] }
0x1cbb   :  { %v2713_v33 = vsub.f32 1.5, %v2712_v31 }
0x1cbd   :  { %v2714_v19 = vmul.f32 %v3753_v6, %v2713_v33 }
0x1cbf   :  { %v2718_v24 = vsel %vm2717_vm14, %v3753_v6, %v2714_v19 }
0x1cc0   :  { %v2729_v39 = vmul.f32 %v2718_v24, %v5362_v2 }
0x1cc2   :  { %2735 = vrot.lane.b32.xlu2 %v2730_v36, %s4356_s22 }
0x1cca   :  { %2733 = vrot.lane.b32.xlu2 %v2729_v39, %s4356_s22  ;;  %s5616_s22 = sld [smem:[#allocation61_spill]] }
0x1cdc   :  { %2667 = vadd.xlane.f32.xlu1 %v2666_v7 }
0x1cdd   :  { %2664 = vadd.xlane.f32.xlu0 %v2663_v25 }
0x1cfc   :  { %v2916_v42 = vpop.permute.xlu2 %2915 }
0x1cfd   :  { %3499 = vmatpush.xpose.msk.msra.mxu0 %vm959_vm15, %v2916_v42 }
0x1d14   :  { %v2910_v21 = vpop.permute.xlu2 %2909 }
0x1d1c   :  { %v2736_v14 = vpop.permute.xlu2 %2735 }
0x1d1d   :  { %3493 = vmatpush.xpose.msk.msrb.mxu3 %vm959_vm15, %v2736_v14 }
0x1d24   :  { %v2914_v35 = vpop.permute.xlu1 %2913  ;;  %v2734_v20 = vpop.permute.xlu2 %2733 }
0x1d25   :  { %3494 = vmatpush.xpose.msk.msrb.mxu3 %vm959_vm15, %v2734_v20  ;;  %3500 = vmatpush.xpose.msk.msra.mxu0 %vm959_vm15, %v2914_v35  ;;  %v2908_v47 = vpop.permute.xlu0 %2907 }
0x1d28   :  { %3501 = vmatmul.msk.f32.vlgmr.msra.gmra.mxu0 %vm959_vm15, %v2908_v47 }
0x1d30   :  { %3502 = vmatmul.msk.f32.gmra.mxu0 %vm959_vm15, %v2910_v21 }
0x1d4f   :  { %v2668_v53 = vpop.xlane.xlu1 %2667 }
0x1d50   :  { %v2670_v32 = vadd.f32 1e-08, %v2668_v53  ;;  %v2665_v48 = vpop.xlane.xlu0 %2664 }
0x1d51   :  { %v2669_v50 = vadd.f32 1e-08, %v2665_v48 }
0x1d52   :  { %3754 = vrsqrt.f32 %v2670_v32  ;;  %vm2687_vm5 = vweird.f32 %v2670_v32 }
0x1d53   :  { %3756 = vrsqrt.f32 %v2669_v50  ;;  %vm2677_vm1 = vweird.f32 %v2669_v50 }
0x1d58   :  { %v3755_v44 = vpop.eup %3754 }
0x1d59   :  { %v2682_v45 = vmul.f32 %v3755_v44, %v2670_v32  ;;  %v3757_v49 = vpop.eup %3756  ;;  %vm2688_vm3 = vweird.f32 %v3755_v44 }
0x1d5a   :  { %v2672_v51 = vmul.f32 %v3757_v49, %v2669_v50  ;;  %vm2678_vm0 = vweird.f32 %v3757_v49  ;;  %vm2689_vm6 = vmor %vm2687_vm5, %vm2688_vm3 }
0x1d5b   :  { %v2683_v27 = vmul.f32 %v3755_v44, %v2682_v45  ;;  %vm2679_vm2 = vmor %vm2677_vm1, %vm2678_vm0 }
0x1d5c   :  { %v2673_v22 = vmul.f32 %v3757_v49, %v2672_v51 }
0x1d5d   :  { %v2684_v52 = vmul.f32 0.5, %v2683_v27 }
0x1d5e   :  { %v2674_v13 = vmul.f32 0.5, %v2673_v22 }
0x1d5f   :  { %v2685_v29 = vsub.f32 1.5, %v2684_v52 }
0x1d60   :  { %v2675_v28 = vsub.f32 1.5, %v2674_v13 }
0x1d61   :  { %v2686_v37 = vmul.f32 %v3755_v44, %v2685_v29 }
0x1d62   :  { %v2676_v54 = vmul.f32 %v3757_v49, %v2675_v28 }
0x1d63   :  { %v2690_v26 = vsel %vm2689_vm6, %v3755_v44, %v2686_v37  ;;  %v2630_v37 = vld [vmem:[%s5614_s16 + $0x18] sm:$0xff] }
0x1d64   :  { %v2680_v16 = vsel %vm2679_vm2, %v3757_v49, %v2676_v54  ;;  %v2692_v30 = vmul.f32 %v2690_v26, %v5372_v17  ;;  %v2629_v26 = vld [vmem:[%s5614_s16 + $0x10] sm:$0xff] }
0x1d65   :  { %v2691_v18 = vmul.f32 %v2680_v16, %v5362_v2 }
0x1d67   :  { %3495 = vmatmul.msk.f32.vlgmr.msrb.gmra.mxu3 %vm959_vm15, %v2691_v18 }
0x1d6f   :  { %3496 = vmatmul.msk.f32.gmra.mxu3 %vm959_vm15, %v2692_v30  ;;  %v2628_v30 = vld [vmem:[%s5614_s16 + $0x8] sm:$0xff] }
0x1da5   :  { %v2942_v55 = vpop.f32.mrf.mxu0 }
0x1da6   :  { %v2948_v38 = vmul.f32 10.0, %v2942_v55  ;;  %v2627_v55 = vld [vmem:[%s5614_s16] sm:$0xff] }
0x1da8   :  { %v2950_v59 = vadd.f32 %v2948_v38, %v5267_v58  ;;  %v3056_v38 = vld [vmem:[%s5615_s18 + $0x18] sm:$0xff] }
0x1da9   :  { %3079 = vmatpush.msra.mxu2 %v3056_v38 }
0x1daa   :  { %v2952_v56 = vsel %vm959_vm15, %v2950_v59, -inf }
0x1dab   :  { %2953 = vmax.xlane.f32.xlu2 %v2952_v56 }
0x1dad   :  { %v2945_v60 = vpop.f32.mrf.mxu0 }
0x1dae   :  { %v2949_v61 = vmul.f32 10.0, %v2945_v60 }
0x1db0   :  { %v2951_v62 = vadd.f32 %v2949_v61, %v5272_v3 }
0x1db2   :  { %v2955_v41 = vsel %vm959_vm15, %v2951_v62, -inf }
0x1db3   :  { %2956 = vmax.xlane.f32.xlu0 %v2955_v41 }
0x1dea   :  { %v2764_v40 = vpop.f32.mrf.mxu3 }
0x1deb   :  { %v2770_v43 = vmul.f32 10.0, %v2764_v40  ;;  %v3055_v40 = vld [vmem:[%s5615_s18 + $0x10] sm:$0xff] }
0x1dec   :  { %3080 = vmatpush.msra.mxu2 %v3055_v40 }
0x1ded   :  { %v2772_v4 = vadd.f32 %v2770_v43, %v5267_v58  ;;  %v3054_v43 = vld [vmem:[%s5615_s18 + $0x8] sm:$0xff] }
0x1dee   :  { %3081 = vmatpush.msra.mxu2 %v3054_v43 }
0x1def   :  { %v2774_v46 = vsel %vm959_vm15, %v2772_v4, -inf }
0x1df0   :  { %2775 = vmax.xlane.f32.xlu1 %v2774_v46  ;;  %v3650_v46 = vld [vmem:[#allocation4] ss:$0 sm:$0xff] }
0x1df2   :  { %v2767_v5 = vpop.f32.mrf.mxu3 }
0x1df3   :  { %v2771_v6 = vmul.f32 10.0, %v2767_v5 }
0x1df5   :  { %v2773_v8 = vadd.f32 %v2771_v6, %v5272_v3  ;;  %v3618_v3 = vpack.i.bf16 %v5362_v2, %v5372_v17 }
0x1df7   :  { %v2777_v9 = vsel %vm959_vm15, %v2773_v8, -inf }
0x1df8   :  { %2778 = vmax.xlane.f32.xlu1 %v2777_v9 }
0x1e1e   :  { %v2954_v57 = vpop.xlane.xlu2 %2953 }
0x1e1f   :  { %v2958_v11 = vsub.f32 %v2950_v59, %v2954_v57 }
0x1e21   :  { %v2960_v12 = vmul.f32 1.442695, %v2958_v11 }
0x1e23   :  { %3758 = vpow2.f32 %v2960_v12  ;;  %v3651_v12 = vld [vmem:[%s5616_s22] ss:$0 sm:$0xff] }
0x1e26   :  { %v2957_v23 = vpop.xlane.xlu0 %2956 }
0x1e27   :  { %v2959_v31 = vsub.f32 %v2951_v62, %v2957_v23 }
0x1e29   :  { %v3759_v15 = vpop.eup %3758  ;;  %v2962_v33 = vmul.f32 1.442695, %v2959_v31 }
0x1e2a   :  { %v2964_v58 = vsel %vm959_vm15, %v3759_v15, 0.0 }
0x1e2b   :  { %3760 = vpow2.f32 %v2962_v33  ;;  %2965 = vadd.xlane.f32.xlu0 %v2964_v58 }
0x1e31   :  { %v3761_v34 = vpop.eup %3760 }
0x1e32   :  { %v2967_v36 = vsel %vm959_vm15, %v3761_v34, 0.0 }
0x1e33   :  { %2968 = vadd.xlane.f32.xlu1 %v2967_v36 }
0x1e3f   :  { %3619 = vrot.lane.b32.xlu0 %v3618_v3, %s4358_s12  ;;  %s5619_s12 = sld [smem:[#allocation50_spill]] }
0x1e4c   :  { %3624 = vrot.lane.b32.xlu1 %v3618_v3, %s4357_s6  ;;  %s5617_s6 = sld [smem:[#allocation63_spill]] }
0x1e52   :  { %v3193_v38 = vld [vmem:[%s5617_s6 + $0x58] sm:$0xff]  ;;  %v3186_v40 = vld [vmem:[%s5617_s6 + $0x20] sm:$0xff] }
0x1e53   :  { %v3185_v43 = vld [vmem:[%s5617_s6 + $0x18] sm:$0xff] }
0x1e63   :  { %v2776_v19 = vpop.xlane.xlu1 %2775 }
0x1e64   :  { %v2780_v24 = vsub.f32 %v2772_v4, %v2776_v19  ;;  %v3053_v4 = vld [vmem:[%s5615_s18] sm:$0xff] }
0x1e65   :  { %3082 = vmatpush.msra.mxu2 %v3053_v4  ;;  %v3184_v4 = vld [vmem:[%s5617_s6 + $0x10] sm:$0xff] }
0x1e66   :  { %v2782_v39 = vmul.f32 1.442695, %v2780_v24 }
0x1e68   :  { %3762 = vpow2.f32 %v2782_v39 }
0x1e6b   :  { %v2779_v7 = vpop.xlane.xlu1 %2778 }
0x1e6c   :  { %v2781_v25 = vsub.f32 %v2773_v8, %v2779_v7 }
0x1e6e   :  { %v3763_v42 = vpop.eup %3762  ;;  %v2784_v21 = vmul.f32 1.442695, %v2781_v25 }
0x1e6f   :  { %v2786_v14 = vsel %vm959_vm15, %v3763_v42, 0.0 }
0x1e70   :  { %3764 = vpow2.f32 %v2784_v21  ;;  %2787 = vadd.xlane.f32.xlu2 %v2786_v14 }
0x1e76   :  { %v3765_v35 = vpop.eup %3764 }
0x1e77   :  { %v2789_v20 = vsel %vm959_vm15, %v3765_v35, 0.0 }
0x1e78   :  { %2790 = vadd.xlane.f32.xlu2 %v2789_v20 }
0x1e9e   :  { %v2966_v2 = vpop.xlane.xlu0 %2965 }
0x1e9f   :  { %3766 = vrcp.f32 %v2966_v2 }
0x1ea5   :  { %v3767_v53 = vpop.eup %3766 }
0x1ea6   :  { %v2969_v17 = vpop.xlane.xlu1 %2968  ;;  %v2972_v50 = vmul.f32 %v3767_v53, %v3759_v15 }
0x1ea7   :  { %3768 = vrcp.f32 %v2969_v17 }
0x1ead   :  { %v3769_v44 = vpop.eup %3768 }
0x1eae   :  { %v2973_v45 = vmul.f32 %v3769_v44, %v3761_v34 }
0x1eb1   :  { %v3620_v47 = vpop.permute.xlu0 %3619 }
0x1eb2   :  { %v3621_v32 = vunpack.i.l.bf16 %v3620_v47  ;;  %v3622_v48 = vunpack.i.h.bf16 %v3620_v47 }
0x1eb4   :  { %3000 = vmatpush.msra.mxu3 %v3621_v32 }
0x1eb6   :  { %3001 = vmatpush.msra.mxu3 %v3622_v48 }
0x1eb7   :  { %3503 = vmatmul.msk.f32.vlgmr.msra.gmra.mxu3 %vm959_vm15, %v2972_v50 }
0x1ebe   :  { %v3625_v49 = vpop.permute.xlu1 %3624 }
0x1ebf   :  { %v3626_v51 = vunpack.i.l.bf16 %v3625_v49  ;;  %3504 = vmatmul.msk.f32.gmra.mxu3 %vm959_vm15, %v2973_v45  ;;  %v3627_v27 = vunpack.i.h.bf16 %v3625_v49 }
0x1ec1   :  { %2824 = vmatpush.msrb.mxu1 %v3626_v51 }
0x1ec3   :  { %2825 = vmatpush.msrb.mxu1 %v3627_v27 }
0x1ec5   :  { %3040 = vmatpush.msra.mxu1 %v2630_v37 }
0x1ec7   :  { %3041 = vmatpush.msra.mxu1 %v2629_v26 }
0x1ec9   :  { %3042 = vmatpush.msra.mxu1 %v2628_v30  ;;  %v3195_v30 = vld [vmem:[%s5617_s6 + $0x68] sm:$0xff] }
0x1ecb   :  { %3043 = vmatpush.msra.mxu1 %v2627_v55  ;;  %v3194_v55 = vld [vmem:[%s5617_s6 + $0x60] sm:$0xff] }
0x1ee3   :  { %v2788_v22 = vpop.xlane.xlu2 %2787 }
0x1ee4   :  { %3770 = vrcp.f32 %v2788_v22  ;;  %v3197_v22 = vld [vmem:[%s5617_s6 + $0x78] sm:$0xff] }
0x1ee5   :  { %3202 = vmatpush.msrb.mxu0 %v3197_v22 }
0x1eea   :  { %v3771_v13 = vpop.eup %3770 }
0x1eeb   :  { %v2794_v52 = vmul.f32 %v3771_v13, %v3763_v42  ;;  %v2791_v28 = vpop.xlane.xlu2 %2790  ;;  %v3196_v13 = vld [vmem:[%s5617_s6 + $0x70] sm:$0xff] }
0x1eec   :  { %3772 = vrcp.f32 %v2791_v28  ;;  %3203 = vmatpush.msrb.mxu0 %v3196_v13 }
0x1eed   :  { %3497 = vmatmul.msk.f32.vlgmr.msrb.gmra.mxu1 %vm959_vm15, %v2794_v52 }
0x1eee   :  { %3204 = vmatpush.msrb.mxu0 %v3195_v30  ;;  %v3284_v30 = vld [vmem:[%s5618_s20 + $0x8] sm:$0xff] }
0x1ef0   :  { %3205 = vmatpush.msrb.mxu0 %v3194_v55  ;;  %v3283_v55 = vld [vmem:[%s5618_s20] sm:$0xff] }
0x1ef2   :  { %v3773_v54 = vpop.eup %3772  ;;  %3206 = vmatpush.msrb.mxu0 %v3193_v38 }
0x1ef3   :  { %v2795_v29 = vmul.f32 %v3773_v54, %v3765_v35 }
0x1ef5   :  { %3498 = vmatmul.msk.f32.gmra.mxu1 %vm959_vm15, %v2795_v29 }
0x1f3a   :  { %v3003_v16 = vpop.f32.mrf.mxu3 }
0x1f3b   :  { %3011 = vrot.lane.b32.xlu0 %v3003_v16, %s4359_s23 }
0x1f42   :  { %v3006_v18 = vpop.f32.mrf.mxu3 }
0x1f43   :  { %3013 = vrot.lane.b32.xlu2 %v3006_v18, %s4359_s23  ;;  %s5620_s23 = sld [smem:[#allocation49_spill]] }
0x1f6a   :  { %v2827_v59 = vpop.f32.mrf.mxu1 }
0x1f72   :  { %v2830_v62 = vpop.f32.mrf.mxu1 }
0x1f9d   :  { %v3014_v61 = vpop.permute.xlu2 %3013 }
0x1f9e   :  { %v3018_v41 = vsel %vm959_vm15, %v2830_v62, %v3014_v61  ;;  %v3189_v61 = vld [vmem:[%s5617_s6 + $0x38] sm:$0xff]  ;;  %v3188_v62 = vld [vmem:[%s5617_s6 + $0x30] sm:$0xff] }
0x1fad   :  { %v3012_v56 = vpop.permute.xlu0 %3011 }
0x1fae   :  { %v3017_v60 = vsel %vm959_vm15, %v2827_v59, %v3012_v56  ;;  %v3192_v59 = vld [vmem:[%s5617_s6 + $0x50] sm:$0xff]  ;;  %v3191_v56 = vld [vmem:[%s5617_s6 + $0x48] sm:$0xff] }
0x1faf   :  { %3505 = vmatmul.msk.f32.vlgmr.msra.gmra.mxu1 %vm819_vm4, %v3017_v60  ;;  %3207 = vmatpush.msrb.mxu0 %v3192_v59  ;;  %v3190_v60 = vld [vmem:[%s5617_s6 + $0x40] sm:$0xff] }
0x1fb1   :  { %3208 = vmatpush.msrb.mxu0 %v3191_v56 }
0x1fb3   :  { %3209 = vmatpush.msrb.mxu0 %v3190_v60 }
0x1fb5   :  { %3210 = vmatpush.msrb.mxu0 %v3189_v61 }
0x1fb7   :  { %3506 = vmatmul.msk.f32.gmra.mxu1 %vm819_vm4, %v3018_v41  ;;  %3211 = vmatpush.msrb.mxu0 %v3188_v62  ;;  %v3187_v41 = vld [vmem:[%s5617_s6 + $0x28] sm:$0xff] }
0x1fb9   :  { %3212 = vmatpush.msrb.mxu0 %v3187_v41 }
0x1fbb   :  { %3213 = vmatpush.msrb.mxu0 %v3186_v40 }
0x1fbd   :  { %3214 = vmatpush.msrb.mxu0 %v3185_v43 }
0x1fbf   :  { %3215 = vmatpush.msrb.mxu0 %v3184_v4 }
0x202c   :  { %v3045_v5 = vpop.f32.mrf.mxu1 }
0x202d   :  { %v3046_v6 = vadd.f32 %v3650_v46, %v3045_v5  ;;  %v3182_v5 = vld [vmem:[%s5617_s6] sm:$0xff] }
0x202f   :  { %v5453_v8 = vadd.f32 %v3046_v6, %v5353_v63 }
0x2031   :  { %3507 = vmatmul.msk.f32.vlgmr.msra.gmra.mxu2 %vm819_vm4, %v5453_v8 }
0x2034   :  { %v3048_v9 = vpop.f32.mrf.mxu1 }
0x2035   :  { %v3049_v57 = vadd.f32 %v3650_v46, %v3048_v9  ;;  %v3183_v46 = vld [vmem:[%s5617_s6 + $0x8] sm:$0xff] }
0x2036   :  { %3216 = vmatpush.msrb.mxu0 %v3183_v46 }
0x2037   :  { %v5458_v11 = vadd.f32 %v3049_v57, %v5358_v1 }
0x2038   :  { %3217 = vmatpush.msrb.mxu0 %v3182_v5 }
0x2039   :  { %3508 = vmatmul.msk.f32.gmra.mxu2 %vm819_vm4, %v5458_v11 }
0x20b4   :  { %v3084_v23 = vpop.f32.mrf.mxu2 }
0x20b5   :  { %v3085_v31 = vadd.f32 %v3651_v12, %v3084_v23 }
0x20b7   :  { %v3509_v15 = vmul.f32 -1.442695, %v3085_v31 }
0x20b9   :  { %3774 = vpow2.f32 %v3509_v15 }
0x20bc   :  { %v3087_v33 = vpop.f32.mrf.mxu2 }
0x20bd   :  { %v3088_v58 = vadd.f32 %v3651_v12, %v3087_v33 }
0x20bf   :  { %v3775_v63 = vpop.eup %3774  ;;  %v3510_v34 = vmul.f32 -1.442695, %v3088_v58 }
0x20c0   :  { %v3096_v36 = vadd.f32 1.0, %v3775_v63 }
0x20c1   :  { %3776 = vpow2.f32 %v3510_v34 }
0x20c2   :  { %3778 = vrcp.f32 %v3096_v36  ;;  %v3109_v7 = vand.u32 2147483648, %v3096_v36  ;;  %v3107_v42 = vand.u32 2147483647, %v3096_v36  ;;  %vm3103_vm7 = vweird.f32 %v3096_v36 }
0x20c4   :  { %v3110_v35 = vor.u32 1.1754944e-38, %v3109_v7  ;;  %vm3108_vm9 = vcmp.eq.f32.partialorder %v3107_v42, 8.507059e+37 }
0x20c7   :  { %v3777_v3 = vpop.eup %3776 }
0x20c8   :  { %v3779_v19 = vpop.eup %3778  ;;  %v3097_v24 = vadd.f32 1.0, %v3777_v3 }
0x20c9   :  { %v3099_v1 = vmul.f32 %v3779_v19, %v3096_v36  ;;  %vm3104_vm15 = vweird.f32 %v3779_v19 }
0x20ca   :  { %3780 = vrcp.f32 %v3097_v24  ;;  %vm3105_vm8 = vmor %vm3103_vm7, %vm3104_vm15  ;;  %v3124_v32 = vand.u32 2147483648, %v3097_v24  ;;  %v3122_v50 = vand.u32 2147483647, %v3097_v24  ;;  %vm3118_vm11 = vweird.f32 %v3097_v24 }
0x20cb   :  { %v3100_v39 = vsub.f32 1.0, %v3099_v1 }
0x20cc   :  { %v3125_v45 = vor.u32 1.1754944e-38, %v3124_v32  ;;  %vm3123_vm13 = vcmp.eq.f32.partialorder %v3122_v50, 8.507059e+37 }
0x20cd   :  { %v3101_v25 = vmul.f32 %v3779_v19, %v3100_v39 }
0x20cf   :  { %v3102_v21 = vadd.f32 %v3779_v19, %v3101_v25  ;;  %v3653_v25 = vld [vmem:[#allocation6] ss:$0 sm:$0xff] }
0x20d0   :  { %v3781_v14 = vpop.eup %3780 }
0x20d1   :  { %v3106_v20 = vsel %vm3105_vm8, %v3779_v19, %v3102_v21  ;;  %v3114_v2 = vmul.f32 %v3781_v14, %v3097_v24  ;;  %vm3119_vm10 = vweird.f32 %v3781_v14  ;;  %v3652_v24 = vld [vmem:[#allocation7] ss:$0 sm:$0xff] }
0x20d2   :  { %v3111_v17 = vsel %vm3108_vm9, %v3110_v35, %v3106_v20  ;;  %vm3120_vm12 = vmor %vm3118_vm11, %vm3119_vm10 }
0x20d3   :  { %v3128_v47 = vmul.f32 %v3111_v17, %v3085_v31  ;;  %v3115_v53 = vsub.f32 1.0, %v3114_v2 }
0x20d5   :  { %3132 = vadd.xlane.f32.xlu0 %v3128_v47  ;;  %v3116_v48 = vmul.f32 %v3781_v14, %v3115_v53  ;;  %v3654_v53 = vld [vmem:[#allocation2] ss:$0 sm:$0xff] }
0x20d7   :  { %v3117_v44 = vadd.f32 %v3781_v14, %v3116_v48 }
0x20d9   :  { %v3121_v49 = vsel %vm3120_vm12, %v3781_v14, %v3117_v44 }
0x20da   :  { %v3126_v51 = vsel %vm3123_vm13, %v3125_v45, %v3121_v49 }
0x20db   :  { %v3129_v27 = vmul.f32 %v3126_v51, %v3088_v58 }
0x20dd   :  { %3134 = vadd.xlane.f32.xlu1 %v3129_v27 }
0x2148   :  { %v3133_v52 = vpop.xlane.xlu0 %3132 }
0x2149   :  { %v3136_v28 = vmul.f32 %v3133_v52, %v5320_v0 }
0x214b   :  { %v3138_v54 = vsub.f32 %v3128_v47, %v3136_v28 }
0x214d   :  { %v3140_v29 = vmul.f32 %v3138_v54, %v3138_v54 }
0x214f   :  { %3142 = vadd.xlane.f32.xlu2 %v3140_v29 }
0x2150   :  { %v3135_v16 = vpop.xlane.xlu1 %3134 }
0x2151   :  { %v3137_v18 = vmul.f32 %v3135_v16, %v5320_v0 }
0x2153   :  { %v5467_v37 = vsub.f32 %v3129_v27, %v3137_v18 }
0x2155   :  { %v3141_v26 = vmul.f32 %v5467_v37, %v5467_v37 }
0x2157   :  { %3144 = vadd.xlane.f32.xlu0 %v3141_v26  ;;  %v3285_v26 = vld [vmem:[%s5618_s20 + $0x10] sm:$0xff] }
0x21c2   :  { %v3143_v6 = vpop.xlane.xlu2 %3142 }
0x21c3   :  { %v3146_v9 = vmul.f32 %v3143_v6, %v5320_v0 }
0x21c5   :  { %v3148_v57 = vadd.f32 1e-05, %v3146_v9 }
0x21c7   :  { %3782 = vrsqrt.f32 %v3148_v57  ;;  %vm3156_vm0 = vweird.f32 %v3148_v57 }
0x21ca   :  { %v3145_v12 = vpop.xlane.xlu0 %3144 }
0x21cb   :  { %v3147_v23 = vmul.f32 %v3145_v12, %v5320_v0 }
0x21cd   :  { %v3783_v31 = vpop.eup %3782  ;;  %v3149_v15 = vadd.f32 1e-05, %v3147_v23 }
0x21ce   :  { %v3151_v33 = vmul.f32 %v3783_v31, %v3148_v57  ;;  %vm3157_vm14 = vweird.f32 %v3783_v31  ;;  %v3655_v57 = vld [vmem:[%s5619_s12] ss:$0 sm:$0xff] }
0x21cf   :  { %3784 = vrsqrt.f32 %v3149_v15  ;;  %vm3158_vm1 = vmor %vm3156_vm0, %vm3157_vm14  ;;  %vm3166_vm3 = vweird.f32 %v3149_v15 }
0x21d0   :  { %v3152_v58 = vmul.f32 %v3783_v31, %v3151_v33 }
0x21d2   :  { %v3153_v63 = vmul.f32 0.5, %v3152_v58 }
0x21d4   :  { %v3154_v34 = vsub.f32 1.5, %v3153_v63 }
0x21d5   :  { %v3785_v36 = vpop.eup %3784 }
0x21d6   :  { %v3155_v3 = vmul.f32 %v3783_v31, %v3154_v34  ;;  %v3161_v19 = vmul.f32 %v3785_v36, %v3149_v15  ;;  %vm3167_vm2 = vweird.f32 %v3785_v36 }
0x21d7   :  { %vm3168_vm5 = vmor %vm3166_vm3, %vm3167_vm2 }
0x21d8   :  { %v3159_v1 = vsel %vm3158_vm1, %v3783_v31, %v3155_v3  ;;  %v3162_v39 = vmul.f32 %v3785_v36, %v3161_v19 }
0x21d9   :  { %v3170_v7 = vmul.f32 %v3159_v1, %v3138_v54  ;;  %v3657_v1 = vld [vmem:[%s5621_s17] ss:$0 sm:$0xff] }
0x21da   :  { %v3163_v42 = vmul.f32 0.5, %v3162_v39 }
0x21db   :  { %v3175_v0 = vmul.f32 %v3652_v24, %v3170_v7 }
0x21dc   :  { %v3164_v21 = vsub.f32 1.5, %v3163_v42 }
0x21dd   :  { %v3180_v14 = vadd.f32 %v3653_v25, %v3175_v0 }
0x21de   :  { %v3165_v35 = vmul.f32 %v3785_v36, %v3164_v21 }
0x21df   :  { %3218 = vmatmul.f32.vlgmr.msrb.gmra.mxu0 %v3180_v14 }
0x21e0   :  { %v3169_v20 = vsel %vm3168_vm5, %v3785_v36, %v3165_v35 }
0x21e1   :  { %v3171_v2 = vmul.f32 %v3169_v20, %v5467_v37  ;;  %v3286_v37 = vld [vmem:[%s5618_s20 + $0x18] sm:$0xff] }
0x21e2   :  { %3309 = vmatpush.msrb.mxu3 %v3286_v37 }
0x21e3   :  { %v3176_v17 = vmul.f32 %v3652_v24, %v3171_v2 }
0x21e4   :  { %3310 = vmatpush.msrb.mxu3 %v3285_v26 }
0x21e5   :  { %v3181_v47 = vadd.f32 %v3653_v25, %v3176_v17 }
0x21e6   :  { %3311 = vmatpush.msrb.mxu3 %v3284_v30 }
0x21e7   :  { %3221 = vmatmul.f32.gmra.mxu0 %v3181_v47 }
0x21e8   :  { %3312 = vmatpush.msrb.mxu3 %v3283_v55 }
0x225c   :  { %v3219_v32 = vpop.f32.mrf.mxu0 }
0x225d   :  { %v3220_v48 = vadd.f32 %v3654_v53, %v3219_v32 }
0x225f   :  { %v3225_v50 = vadd.f32 %v3220_v48, %v5453_v8 }
0x2261   :  { %v3229_v44 = vsel %vm819_vm4, %v3225_v50, 0.0 }
0x2262   :  { %3230 = vadd.xlane.f32.xlu0 %v3229_v44 }
0x2264   :  { %v3222_v45 = vpop.f32.mrf.mxu0 }
0x2265   :  { %v3223_v49 = vadd.f32 %v3654_v53, %v3222_v45 }
0x2267   :  { %v3226_v51 = vadd.f32 %v3223_v49, %v5458_v11 }
0x2269   :  { %v3232_v27 = vsel %vm819_vm4, %v3226_v51, 0.0 }
0x226a   :  { %3233 = vadd.xlane.f32.xlu1 %v3232_v27 }
0x22d5   :  { %v3231_v22 = vpop.xlane.xlu0 %3230 }
0x22d6   :  { %v3235_v13 = vmul.f32 %v3231_v22, %v4887_v10 }
0x22d8   :  { %v3237_v52 = vsub.f32 %v3225_v50, %v3235_v13 }
0x22da   :  { %v3239_v28 = vmul.f32 %v3237_v52, %v3237_v52 }
0x22dc   :  { %v3241_v8 = vsel %vm819_vm4, %v3239_v28, 0.0 }
0x22dd   :  { %v3234_v54 = vpop.xlane.xlu1 %3233  ;;  %3242 = vadd.xlane.f32.xlu2 %v3241_v8 }
0x22de   :  { %v3236_v29 = vmul.f32 %v3234_v54, %v4887_v10 }
0x22e0   :  { %v3238_v16 = vsub.f32 %v3226_v51, %v3236_v29 }
0x22e2   :  { %v3240_v18 = vmul.f32 %v3238_v16, %v3238_v16 }
0x22e4   :  { %v3244_v11 = vsel %vm819_vm4, %v3240_v18, 0.0 }
0x22e5   :  { %3245 = vadd.xlane.f32.xlu0 %v3244_v11 }
0x2350   :  { %v3243_v38 = vpop.xlane.xlu2 %3242 }
0x2351   :  { %v3247_v59 = vmul.f32 %v3243_v38, %v4887_v10 }
0x2353   :  { %v3249_v56 = vadd.f32 1e-05, %v3247_v59 }
0x2355   :  { %3786 = vrsqrt.f32 %v3249_v56  ;;  %vm3257_vm15 = vweird.f32 %v3249_v56 }
0x2358   :  { %v3246_v60 = vpop.xlane.xlu0 %3245 }
0x2359   :  { %v3248_v61 = vmul.f32 %v3246_v60, %v4887_v10  ;;  %v3656_v10 = vld [vmem:[%s5620_s23] ss:$0 sm:$0xff] }
0x235b   :  { %v3787_v62 = vpop.eup %3786  ;;  %v3250_v41 = vadd.f32 1e-05, %v3248_v61 }
0x235c   :  { %v3252_v40 = vmul.f32 %v3787_v62, %v3249_v56  ;;  %vm3258_vm6 = vweird.f32 %v3787_v62 }
0x235d   :  { %3788 = vrsqrt.f32 %v3250_v41  ;;  %vm3259_vm7 = vmor %vm3257_vm15, %vm3258_vm6  ;;  %vm3267_vm9 = vweird.f32 %v3250_v41 }
0x235e   :  { %v3253_v43 = vmul.f32 %v3787_v62, %v3252_v40 }
0x2360   :  { %v3254_v4 = vmul.f32 0.5, %v3253_v43 }
0x2362   :  { %v3255_v46 = vsub.f32 1.5, %v3254_v4 }
0x2363   :  { %v3789_v5 = vpop.eup %3788 }
0x2364   :  { %v3256_v6 = vmul.f32 %v3787_v62, %v3255_v46  ;;  %v3262_v9 = vmul.f32 %v3789_v5, %v3250_v41  ;;  %vm3268_vm8 = vweird.f32 %v3789_v5 }
0x2365   :  { %vm3269_vm10 = vmor %vm3267_vm9, %vm3268_vm8 }
0x2366   :  { %v3260_v12 = vsel %vm3259_vm7, %v3787_v62, %v3256_v6  ;;  %v3263_v23 = vmul.f32 %v3789_v5, %v3262_v9 }
0x2367   :  { %v3271_v31 = vmul.f32 %v3260_v12, %v3237_v52 }
0x2368   :  { %v3264_v15 = vmul.f32 0.5, %v3263_v23 }
0x2369   :  { %v3276_v33 = vmul.f32 %v3655_v57, %v3271_v31 }
0x236a   :  { %v3265_v58 = vsub.f32 1.5, %v3264_v15 }
0x236b   :  { %v3281_v63 = vadd.f32 %v3656_v10, %v3276_v33 }
0x236c   :  { %v3266_v34 = vmul.f32 %v3789_v5, %v3265_v58 }
0x236d   :  { %3511 = vmatmul.msk.f32.vlgmr.msrb.gmra.mxu3 %vm819_vm4, %v3281_v63 }
0x236e   :  { %v3270_v36 = vsel %vm3269_vm10, %v3789_v5, %v3266_v34 }
0x236f   :  { %v3272_v3 = vmul.f32 %v3270_v36, %v3238_v16 }
0x2371   :  { %v3277_v19 = vmul.f32 %v3655_v57, %v3272_v3 }
0x2373   :  { %v3282_v24 = vadd.f32 %v3656_v10, %v3277_v19 }
0x2375   :  { %3512 = vmatmul.msk.f32.gmra.mxu3 %vm819_vm4, %v3282_v24 }
0x23f0   :  { %v3314_v39 = vpop.f32.mrf.mxu3 }
0x23f1   :  { %v3315_v7 = vadd.f32 %v3657_v1, %v3314_v39 }
0x23f3   :  { %3320 = vmax.xlane.f32.xlu1 %v3315_v7 }
0x23f8   :  { %v3317_v25 = vpop.f32.mrf.mxu3 }
0x23f9   :  { %v3318_v42 = vadd.f32 %v3657_v1, %v3317_v25 }
0x23fb   :  { %3322 = vmax.xlane.f32.xlu2 %v3318_v42 }
0x2466   :  { %v3321_v0 = vpop.xlane.xlu1 %3320 }
0x2467   :  { %v3324_v21 = vsub.f32 %v3315_v7, %v3321_v0 }
0x2469   :  { %v3326_v14 = vmul.f32 1.442695, %v3324_v21 }
0x246b   :  { %3790 = vpow2.f32 %v3326_v14 }
0x246e   :  { %v3323_v35 = vpop.xlane.xlu2 %3322 }
0x246f   :  { %v3325_v20 = vsub.f32 %v3318_v42, %v3323_v35 }
0x2471   :  { %v3791_v2 = vpop.eup %3790  ;;  %v3328_v17 = vmul.f32 1.442695, %v3325_v20 }
0x2472   :  { %3330 = vadd.xlane.f32.xlu0 %v3791_v2 }
0x2473   :  { %3792 = vpow2.f32 %v3328_v17 }
0x2479   :  { %v3793_v47 = vpop.eup %3792 }
0x247a   :  { %3332 = vadd.xlane.f32.xlu1 %v3793_v47 }
0x24e5   :  { %v3331_v53 = vpop.xlane.xlu0 %3330 }
0x24e6   :  { %3794 = vrcp.f32 %v3331_v53 }
0x24ec   :  { %v3795_v32 = vpop.eup %3794 }
0x24ed   :  { %v3336_v48 = vmul.f32 %v3795_v32, %v3331_v53  ;;  %v3333_v50 = vpop.xlane.xlu1 %3332 }
0x24ee   :  { %3796 = vrcp.f32 %v3333_v50 }
0x24ef   :  { %v3338_v44 = vsub.f32 2.0, %v3336_v48 }
0x24f1   :  { %v3340_v45 = vmul.f32 %v3795_v32, %v3338_v44 }
0x24f3   :  { %v3342_v49 = vmul.f32 %v3791_v2, %v3340_v45 }
0x24f4   :  { %v3797_v51 = vpop.eup %3796 }
0x24f5   :  { %3344 = vst [vmem:[%s4665_s21] sm:$0xff] %v3342_v49  ;;  %v3337_v27 = vmul.f32 %v3797_v51, %v3333_v50 }
0x24f7   :  { %v3339_v22 = vsub.f32 2.0, %v3337_v27 }
0x24f9   :  { %v3341_v13 = vmul.f32 %v3797_v51, %v3339_v22 }
0x24fb   :  { %v3343_v52 = vmul.f32 %v3793_v47, %v3341_v13 }
0x24fd   :  { %3345 = vst [vmem:[%s4665_s21 + $0x8] sm:$0xff] %v3343_v52 }
0x24fe   :  { %3350 = vsyncpa [#allocation3], 1 }
0x24ff   :  { %3351 = vsyncpa [#allocation5], 1 }
0x2500   :  { %3352 = vsyncpa [#allocation8], 1 }
0x2501   :  { %3353 = vsyncpa [#allocation11], 1 }
0x2502   :  { %3354 = vsyncpa [#allocation14], 1 }
0x2503   :  { %3355 = vsyncpa [#allocation17], 1 }
0x2504   :  { %3356 = vsyncpa [#allocation20], 1 }
0x2505   :  { %3357 = vsyncpa [#allocation23], 1 }
0x2506   :  { %3358 = vsyncpa [#allocation26], 1 }
0x2507   :  { %3359 = vsyncpa [#allocation29], 1 }

</bundles_post_ra>
